<compile_context>
chip_gen: v6e
topology: v6e:2x2x1
jax: 0.10.0
libtpu: 0.0.40
codegen_flags: <defaults>
</compile_context>

<pallas_src>
import math

import jax
import jax.numpy as jnp
import numpy as np
from jax import lax
from jax.experimental import pallas as pl
from jax.experimental.pallas import tpu as pltpu

PAD_LOGIT = -10000000000.0
AVAIL_LOGIT = 10000000000.0

_FALLBACK_VMEM_LIMIT = 32 * 1024 * 1024


def _round_up(x, m):
    return ((x + m - 1) // m) * m


def _vmem_limit_bytes():
    """Scoped-VMEM request: half the physical VMEM, capped at 64 MiB.

    -> 64 MiB on v5e/v6e (128 MiB physical), 32 MiB on v7x (64 MiB physical).
    Falls back to a safe 32 MiB if the hardware query is unavailable.
    """
    try:
        cap = int(pltpu.get_tpu_info().vmem_capacity_bytes)
    except Exception:
        return _FALLBACK_VMEM_LIMIT
    return int(max(min(cap // 2, 64 * 1024 * 1024), 16 * 1024 * 1024))


def _pick_batch_tile(B, N, F, H, *, obs_bytes, budget_bytes):
    """Rows of the batch processed per grid step.

    Constraints:
      * bt * N must be a multiple of 128 so the flat (1, bt*N) mask / logit
        blocks are lane-dense (unmasked vst stores, clean output DMA).
      * bt a multiple of 8 keeps the (bt, N, F) obs block sublane aligned.
      * as large as the VMEM budget allows: each extra grid step is ~0.35 us
        of pipeline overhead and buys nothing on single-TC chips (v5e/v6e).
    """
    align = max(8, 128 // math.gcd(N, 128))
    # Per batch row: double-buffered obs block + flat mask/logit blocks, plus
    # the in-kernel bf16 copy of x and ~3 live f32 (N, H) intermediates.
    per_row = 2 * N * (F * obs_bytes + 4 + 4) + N * F * 2 + 3 * N * H * 4
    weights = 2 * ((F * H + H * H) * 2 + 4 * H * 4)
    bt = max(align, (budget_bytes - weights) // per_row)
    bt = min(bt, _round_up(B, align))    # never more than one partial tile past B
    bt -= bt % align
    return int(max(align, bt))


def selection_head_kernel(x_ref, m_ref, w1_ref, w2_ref, p_ref, b3_ref, logits_ref):
    """One batch tile: (bt, N, F) obs -> (1, bt*N) masked f32 logits.

    p_ref packs the small f32 parameters: row 0 = b1, row 1 = b2, row 2 = w3.
    b3 lives in SMEM.  trunk == Linear(F,H)-ReLU-Linear(H,H)-ReLU-Linear(H,1)
    (hidden_depth = 2).
    """
    bt, n, f = x_ref.shape
    h_dim = w1_ref.shape[1]
    rows = bt * n

    # Leading-dim merge (free for f32 when N % 8 == 0; other N may cost a
    # relayout copy — pad N in the caller's layout if that matters), then cast
    # to the compute dtype right at the MXU input so obs travels HBM->VMEM in
    # the producer's dtype with no separate wrapper cast pass.
    x = x_ref[...].reshape(rows, f).astype(w1_ref.dtype)

    b1 = p_ref[0:1, :]                      # (1, H) f32
    b2 = p_ref[1:2, :]                      # (1, H) f32
    w3 = p_ref[2:3, :]                      # (1, H) f32

    h = jnp.dot(x, w1_ref[...], preferred_element_type=jnp.float32) + b1
    h = jnp.maximum(h, 0.0)                 # f32 ReLU (v5e has no bf16 VALU)
    h = jnp.dot(h.astype(w2_ref.dtype), w2_ref[...],
                preferred_element_type=jnp.float32) + b2
    h = jnp.maximum(h, 0.0)                 # (rows, H) f32

    # Final Linear(H, 1): VPU multiply + XLU lane reduce over H, landing
    # directly in the lane-major (1, rows) layout of the output slab — no
    # transpose, and rows % 128 == 0 makes the HBM store fully unmasked.
    lo = jnp.sum(h.reshape(1, rows, h_dim) * w3.reshape(1, 1, h_dim), axis=-1)
    lo = lo + b3_ref[0]                     # (1, rows) f32

    m = m_ref[...]                          # (1, rows) int32 flat masks
    logits_ref[...] = jnp.where(m != 0, lo, jnp.float32(PAD_LOGIT))


def selection_head(obs, masks, params, *, compute_dtype=jnp.bfloat16):
    """obs: (B, N, F) float, masks: (B, N) bool
       -> (logits (B, N) f32, no_available (B,) bool)."""
    B, N, F = obs.shape
    w1, b1, w2, b2, w3, b3 = params
    H = w1.shape[1]

    vmem_limit = _vmem_limit_bytes()
    bt = _pick_batch_tile(B, N, F, H,
                          obs_bytes=jnp.dtype(obs.dtype).itemsize,
                          budget_bytes=vmem_limit // 3)
    grid = (pl.cdiv(B, bt),)

    # obs goes in untouched (no pad, no cast pass).  Masks/logits use a flat
    # lane-dense layout; reshaping these tiny arrays in XLA is negligible.
    masks_flat = masks.reshape(1, B * N).astype(jnp.int32)
    w1c = w1.astype(compute_dtype)
    w2c = w2.astype(compute_dtype)
    packed = jnp.stack([b1.reshape(H), b2.reshape(H),
                        w3.reshape(H)]).astype(jnp.float32)      # (3, H)
    b3v = b3.reshape(1).astype(jnp.float32)

    flat = pl.pallas_call(
        selection_head_kernel,
        out_shape=jax.ShapeDtypeStruct((1, B * N), jnp.float32),
        grid=grid,
        in_specs=[
            pl.BlockSpec((bt, N, F), lambda b: (b, 0, 0)),       # obs tile
            pl.BlockSpec((1, bt * N), lambda b: (0, b)),         # flat mask tile
            # Grid-invariant weights: constant index_map -> DMA'd once, resident.
            # TODO(synk): pipeline_mode=pl.Buffered(1) would single-buffer them
            # (worth it on v7x at F=H=512+; negligible at these sizes).
            pl.BlockSpec((F, H), lambda b: (0, 0)),              # W1 (bf16)
            pl.BlockSpec((H, H), lambda b: (0, 0)),              # W2 (bf16)
            pl.BlockSpec((3, H), lambda b: (0, 0)),              # packed b1/b2/w3
            pl.BlockSpec(memory_space=pltpu.MemorySpace.SMEM),   # b3 scalar
        ],
        out_specs=pl.BlockSpec((1, bt * N), lambda b: (0, b)),   # lane-dense slab
        compiler_params=pltpu.CompilerParams(
            # TODO(synk): gate (pltpu.CORE_PARALLEL,) on v7x (2 TCs) once the
            # chip generation is reliably detectable; parallel vs. arbitrary is
            # a no-op on single-TC v5e/v6e.
            dimension_semantics=("parallel",),
            vmem_limit_bytes=vmem_limit,
        ),
    )(obs, masks_flat, w1c, w2c, packed, b3v)

    logits = flat.reshape(B, N)
    no_available = jnp.sum(masks, axis=-1) == 0
    # Column-0 override for rows with no available action: touches B scalars,
    # cheaper as a fused XLA op than an in-kernel iota + per-row reduction.
    logits = logits.at[:, 0].set(
        jnp.where(no_available, jnp.float32(AVAIL_LOGIT), logits[:, 0]))
    # TODO(synk): FixedCategorical(logits=logits) is a Python distribution
    # wrapper; the kernel returns its `logits` parameter (and no_available).
    return logits, no_available


def selection_head_ref(obs, masks, params, compute_dtype=jnp.bfloat16):
    """Pure-JAX reference mirroring the PyTorch forward (same bf16 rounding points)."""
    w1, b1, w2, b2, w3, b3 = params
    B, N, F = obs.shape
    hi = lax.Precision.HIGHEST
    x = obs.astype(compute_dtype).astype(jnp.float32).reshape(-1, F)
    w1q = w1.astype(compute_dtype).astype(jnp.float32)
    w2q = w2.astype(compute_dtype).astype(jnp.float32)
    h = jnp.maximum(jnp.dot(x, w1q, precision=hi) + b1, 0.0)
    h = h.astype(compute_dtype).astype(jnp.float32)
    h = jnp.maximum(jnp.dot(h, w2q, precision=hi) + b2, 0.0)
    logits = (jnp.dot(h, w3, precision=hi) + b3).reshape(B, N)
    logits = jnp.where(masks, logits, PAD_LOGIT)
    no_available = masks.sum(-1) == 0
    logits = logits.at[:, 0].set(jnp.where(no_available, AVAIL_LOGIT, logits[:, 0]))
    return logits, no_available


def init_params(key, node_fdim, hidden_dim):
    """Deterministic PyTorch-default-style init; weights stored (in, out)."""
    def linear(k, fan_in, fan_out):
        kw, kb = jax.random.split(k)
        bound = 1.0 / np.sqrt(fan_in)
        w = jax.random.uniform(kw, (fan_in, fan_out), jnp.float32, -bound, bound)
        b = jax.random.uniform(kb, (fan_out,), jnp.float32, -bound, bound)
        return w, b

    k1, k2, k3 = jax.random.split(key, 3)
    w1, b1 = linear(k1, node_fdim, hidden_dim)
    w2, b2 = linear(k2, hidden_dim, hidden_dim)   # hidden_depth = 2
    w3, b3 = linear(k3, hidden_dim, 1)
    return (w1, b1, w2, b2, w3, b3)


if __name__ == "__main__":
    # B=30 exercises the un-padded partial-block path (one (32, 16, 32) obs
    # block over 30 valid rows) and the single-grid-step fast path.
    B, N, NODE_FDIM, HIDDEN_DIM = 30, 16, 32, 32   # hidden_depth = 2

    key = jax.random.PRNGKey(0)
    k_obs, k_mask, k_par = jax.random.split(key, 3)

    obs = jax.random.normal(k_obs, (B, N, NODE_FDIM), dtype=jnp.float32)
    masks = jax.random.bernoulli(k_mask, 0.6, (B, N))
    masks = masks.at[1].set(False)                 # force the no_available branch

    params = init_params(k_par, NODE_FDIM, HIDDEN_DIM)

    logits, no_available = jax.jit(selection_head)(obs, masks, params)
    jax.block_until_ready((logits, no_available))

    ref_logits, ref_noav = selection_head_ref(obs, masks, params)
    np.testing.assert_allclose(np.asarray(logits), np.asarray(ref_logits),
                               rtol=1e-3, atol=1e-3)
    assert np.array_equal(np.asarray(no_available), np.asarray(ref_noav))

    print("KERNEL_OK")
</pallas_src>

<mosaic_0001>
module attributes {stable_mosaic.version = 11 : i64} {
  func.func @selection_head_kernel(%arg0: i32, %arg1: memref<32x16x32xf32, #tpu.memory_space<vmem>>, %arg2: memref<1x512xi32, #tpu.memory_space<vmem>>, %arg3: memref<32x32xbf16, #tpu.memory_space<vmem>>, %arg4: memref<32x32xbf16, #tpu.memory_space<vmem>>, %arg5: memref<3x32xf32, #tpu.memory_space<vmem>>, %arg6: memref<1xf32, #tpu.memory_space<smem>>, %arg7: memref<1x512xf32, #tpu.memory_space<vmem>>) attributes {dimension_semantics = [#tpu.dimension_semantics<parallel>], iteration_bounds = array<i64: 1>, scalar_prefetch = 0 : i64, scratch_operands = 0 : i64, tpu.core_type = #tpu.core_type<tc>, window_params = [{transform_indices = @transform_0, window_bounds = array<i64: 32, 16, 32>}, {transform_indices = @transform_1, window_bounds = array<i64: 1, 512>}, {pipeline_mode = #tpu.pipeline_mode<synchronous>, transform_indices = @transform_2, window_bounds = array<i64: 32, 32>}, {pipeline_mode = #tpu.pipeline_mode<synchronous>, transform_indices = @transform_3, window_bounds = array<i64: 32, 32>}, {pipeline_mode = #tpu.pipeline_mode<synchronous>, transform_indices = @transform_4, window_bounds = array<i64: 3, 32>}, {transform_indices = @transform_5, window_bounds = array<i64: 1>}, {transform_indices = @transform_6, window_bounds = array<i64: 1, 512>}]} {
    %c0 = arith.constant 0 : index
    %c0_0 = arith.constant 0 : index
    %c0_1 = arith.constant 0 : index
    %0 = vector.load %arg1[%c0, %c0_0, %c0_1] : memref<32x16x32xf32, #tpu.memory_space<vmem>>, vector<32x16x32xf32>
    %1 = vector.shape_cast %0 : vector<32x16x32xf32> to vector<512x32xf32>
    %2 = arith.truncf %1 : vector<512x32xf32> to vector<512x32xbf16>
    %c0_2 = arith.constant 0 : index
    %c0_3 = arith.constant 0 : index
    %3 = vector.load %arg5[%c0_2, %c0_3] : memref<3x32xf32, #tpu.memory_space<vmem>>, vector<1x32xf32>
    %c1 = arith.constant 1 : index
    %c0_4 = arith.constant 0 : index
    %4 = vector.load %arg5[%c1, %c0_4] : memref<3x32xf32, #tpu.memory_space<vmem>>, vector<1x32xf32>
    %c2 = arith.constant 2 : index
    %c0_5 = arith.constant 0 : index
    %5 = vector.load %arg5[%c2, %c0_5] : memref<3x32xf32, #tpu.memory_space<vmem>>, vector<1x32xf32>
    %c0_6 = arith.constant 0 : index
    %c0_7 = arith.constant 0 : index
    %6 = vector.load %arg3[%c0_6, %c0_7] : memref<32x32xbf16, #tpu.memory_space<vmem>>, vector<32x32xbf16>
    %cst = arith.constant dense<0.000000e+00> : vector<512x32xf32>
    %7 = tpu.matmul %2, %6, %cst {dimension_numbers = #tpu.dot_dimension_numbers<[1], [0], [0], [1], [0, 0, 1, 1], [], []>} : vector<512x32xbf16>, vector<32x32xbf16>, vector<512x32xf32> -> vector<512x32xf32>
    %8 = vector.broadcast %3 : vector<1x32xf32> to vector<512x32xf32>
    %9 = arith.addf %7, %8 : vector<512x32xf32>
    %cst_8 = arith.constant 0.000000e+00 : f32
    %10 = vector.broadcast %cst_8 : f32 to vector<512x32xf32>
    %11 = arith.maximumf %9, %10 : vector<512x32xf32>
    %12 = arith.truncf %11 : vector<512x32xf32> to vector<512x32xbf16>
    %c0_9 = arith.constant 0 : index
    %c0_10 = arith.constant 0 : index
    %13 = vector.load %arg4[%c0_9, %c0_10] : memref<32x32xbf16, #tpu.memory_space<vmem>>, vector<32x32xbf16>
    %cst_11 = arith.constant dense<0.000000e+00> : vector<512x32xf32>
    %14 = tpu.matmul %12, %13, %cst_11 {dimension_numbers = #tpu.dot_dimension_numbers<[1], [0], [0], [1], [0, 0, 1, 1], [], []>} : vector<512x32xbf16>, vector<32x32xbf16>, vector<512x32xf32> -> vector<512x32xf32>
    %15 = vector.broadcast %4 : vector<1x32xf32> to vector<512x32xf32>
    %16 = arith.addf %14, %15 : vector<512x32xf32>
    %cst_12 = arith.constant 0.000000e+00 : f32
    %17 = vector.broadcast %cst_12 : f32 to vector<512x32xf32>
    %18 = arith.maximumf %16, %17 : vector<512x32xf32>
    %19 = vector.shape_cast %18 : vector<512x32xf32> to vector<1x512x32xf32>
    %20 = vector.shape_cast %5 : vector<1x32xf32> to vector<1x1x32xf32>
    %21 = vector.broadcast %20 : vector<1x1x32xf32> to vector<1x512x32xf32>
    %22 = arith.mulf %19, %21 : vector<1x512x32xf32>
    %cst_13 = arith.constant dense<0.000000e+00> : vector<1x512xf32>
    %23 = vector.multi_reduction <add>, %22, %cst_13 [2] : vector<1x512x32xf32> to vector<1x512xf32>
    %c0_14 = arith.constant 0 : index
    %24 = memref.load %arg6[%c0_14] : memref<1xf32, #tpu.memory_space<smem>>
    %25 = vector.broadcast %24 : f32 to vector<1x512xf32>
    %26 = arith.addf %23, %25 : vector<1x512xf32>
    %c0_15 = arith.constant 0 : index
    %c0_16 = arith.constant 0 : index
    %27 = vector.load %arg2[%c0_15, %c0_16] : memref<1x512xi32, #tpu.memory_space<vmem>>, vector<1x512xi32>
    %c0_i32 = arith.constant 0 : i32
    %28 = vector.broadcast %c0_i32 : i32 to vector<1x512xi32>
    %29 = arith.cmpi ne, %27, %28 : vector<1x512xi32>
    %cst_17 = arith.constant -1.000000e+10 : f32
    %30 = vector.broadcast %cst_17 : f32 to vector<1x512xf32>
    %31 = arith.select %29, %26, %30 : vector<1x512xi1>, vector<1x512xf32>
    %c0_18 = arith.constant 0 : index
    %c0_19 = arith.constant 0 : index
    %32 = vector.load %arg7[%c0_18, %c0_19] : memref<1x512xf32, #tpu.memory_space<vmem>>, vector<1x512xf32>
    tpu.vector_store %arg7[%c0_18, %c0_19], %31 {strides = array<i32>} : memref<1x512xf32, #tpu.memory_space<vmem>>, vector<1x512xf32>,
    return
  }
  func.func @transform_0(%arg0: i32) -> (i32, i32, i32) {
    %c0_i32 = arith.constant 0 : i32
    %c0_i32_0 = arith.constant 0 : i32
    %c0_i32_1 = arith.constant 0 : i32
    return %arg0, %c0_i32, %c0_i32_0 : i32, i32, i32
  }
  func.func @transform_1(%arg0: i32) -> (i32, i32) {
    %c0_i32 = arith.constant 0 : i32
    %c0_i32_0 = arith.constant 0 : i32
    return %c0_i32, %arg0 : i32, i32
  }
  func.func @transform_2(%arg0: i32) -> (i32, i32) {
    %c0_i32 = arith.constant 0 : i32
    %c0_i32_0 = arith.constant 0 : i32
    %c0_i32_1 = arith.constant 0 : i32
    return %c0_i32, %c0_i32_0 : i32, i32
  }
  func.func @transform_3(%arg0: i32) -> (i32, i32) {
    %c0_i32 = arith.constant 0 : i32
    %c0_i32_0 = arith.constant 0 : i32
    %c0_i32_1 = arith.constant 0 : i32
    return %c0_i32, %c0_i32_0 : i32, i32
  }
  func.func @transform_4(%arg0: i32) -> (i32, i32) {
    %c0_i32 = arith.constant 0 : i32
    %c0_i32_0 = arith.constant 0 : i32
    %c0_i32_1 = arith.constant 0 : i32
    return %c0_i32, %c0_i32_0 : i32, i32
  }
  func.func @transform_5(%arg0: i32) -> i32 {
    %c0_i32 = arith.constant 0 : i32
    %c0_i32_0 = arith.constant 0 : i32
    return %c0_i32 : i32
  }
  func.func @transform_6(%arg0: i32) -> (i32, i32) {
    %c0_i32 = arith.constant 0 : i32
    %c0_i32_0 = arith.constant 0 : i32
    return %c0_i32, %arg0 : i32, i32
  }
}

</mosaic_0001>

<bundles_post_ra>
// kernel: selection_head.1
= control target key start
LH: loop header
LB: loop body
LE: loop exit
PB: predicated region body
PF: predicated region fallthrough
CT: control target
= control target key end

     0   :  { %12 = vsyncpa [#allocation4], 0  ;;  %s9614_s0 = inlined_call_operand.hbm [shape: f32[30,16,32], index: 0, kind: input, shape index: {}]   ;;  %s9615_s1 = inlined_call_operand.vmem [shape: s32[1,480], index: 1, kind: input, shape index: {}]   ;;  %s9616_s2 = inlined_call_operand.vmem [shape: bf16[32,32], index: 2, kind: input, shape index: {}]   ;;  %s9617_s3 = inlined_call_operand.vmem [shape: bf16[32,32], index: 3, kind: input, shape index: {}]   ;;  %s9618_s4 = inlined_call_operand.vmem [shape: f32[3,32], index: 4, kind: input, shape index: {}]   ;;  %s9619_s5 = inlined_call_operand.<no memory space> [shape: f32[1], index: 5, kind: input, shape index: {}]   ;;  %s9620_s6 = inlined_call_operand.vmem [shape: f32[1,480], index: 6, kind: output, shape index: {}]  }
   0x1   :  { %17 = vsyncadd [#allocation4], 512  ;;  %s7569_s21 = smov [#allocation3]  }
   0x2   :  { %s18_s22 = sshll.u32 %s7569_s21, 4  ;;  %s19_s22 = int_to_ptr.vmem [resolvable:$true] %s18_s22 }
   0x3   :  { %s7555_s23 = scalar_lea.vmem %s19_s22, 7680  ;;  %s7559_s24 = scalar_lea.vmem %s19_s22, 8192 }
   0x4   :  { %p7556_p0 = scmp.ne.s32.totalorder %s19_s22, %s7555_s23  ;;  %p7560_p1 = scmp.lt.s32.totalorder %s19_s22, %s19_s22 }
   0x5   :  { %p7561_p2 = scmp.lt.s32.totalorder %s7559_s24, %s7555_s23 }
   0x7   :  { %p7562_p3 = por %p7561_p2, %p7560_p1 }
   0x9   :  { %p7563_p4 = pnand %p7562_p3, %p7556_p0 }
   0xb   :  { %7566 = shalt.err (!%p7563_p4)
}
   0xc   :  { %s7570_s25 = smov 128   ;;  %s7571_s26 = smov 8  }
   0xd   :  { %24 = dma.hbm_to_vmem [thread:$0]  %s9614_s0, 7680, %s19_s22, [#allocation4], %s7570_s25, %s7570_s25, %s7571_s26  }
   0xe   :  { %7567 = dma.done.wait [#allocation4], 8192  }
   0xf   :  { %7568 = vsyncadd [#allocation4], 4294959104  ;;  %v7543_v0 = vld [vmem:[%s9616_s2 + $0x8] sm:$0xff]   ;;  %v7544_v1 = vld [vmem:[%s9616_s2] sm:$0xff]   ;;  %vm158_vm0 = vcmask 261120   ;;  %vm6888_vm1 = vcmask 130112  }
  0x10   :  { %7400 = vmatprep.subr.bf16.mxu0 %v7543_v0  ;;  %v39_v2 = vld [vmem:[#allocation3] sm:$0xff]  ;;  %v40_v3 = vld [vmem:[#allocation3 + $0x8] sm:$0xff]  ;;  %v41_v5 = vld [vmem:[#allocation3 + $0x10] sm:$0xff]  ;;  %vm6895_vm2 = vcmask 195712   ;;  %vm6902_vm3 = vcmask 261312   ;;  %vm6909_vm4 = vcmask 326912  }
  0x11   :  { %7401 = vmatpush3.bf16.msra.mxu0 %v7543_v0  ;;  %v103_v4 = vpack.c.bf16 %v40_v3, %v39_v2  ;;  %v42_v6 = vld [vmem:[#allocation3 + $0x18] sm:$0xff]  ;;  %v43_v7 = vld [vmem:[#allocation3 + $0x20] sm:$0xff]  ;;  %v44_v8 = vld [vmem:[#allocation3 + $0x28] sm:$0xff]  ;;  %vm6916_vm5 = vcmask 392512   ;;  %vm6923_vm6 = vcmask 458112   ;;  %vm6930_vm7 = vcmask 523712  }
  0x12   :  { %7402 = vmatprep.subr.bf16.mxu0 %v7544_v1  ;;  %v104_v9 = vpack.c.bf16 %v42_v6, %v41_v5  ;;  %v105_v10 = vpack.c.bf16 %v44_v8, %v43_v7  ;;  %v45_v11 = vld [vmem:[#allocation3 + $0x30] sm:$0xff]  ;;  %v46_v12 = vld [vmem:[#allocation3 + $0x38] sm:$0xff]  ;;  %v47_v13 = vld [vmem:[#allocation3 + $0x40] sm:$0xff]  ;;  %vm6937_vm8 = vcmask 589312   ;;  %vm6944_vm9 = vcmask 654912  }
  0x13   :  { %7404 = vmatprep.mubr.msk.bf16.mxu0 %vm158_vm0, %v103_v4  ;;  %v48_v14 = vld [vmem:[#allocation3 + $0x48] sm:$0xff]  ;;  %v106_v15 = vpack.c.bf16 %v46_v12, %v45_v11  ;;  %v49_v17 = vld [vmem:[#allocation3 + $0x50] sm:$0xff]  ;;  %v50_v18 = vld [vmem:[#allocation3 + $0x58] sm:$0xff]  ;;  %vm6951_vm10 = vcmask 720512   ;;  %vm6958_vm11 = vcmask 786112   ;;  %vm6965_vm12 = vcmask 851712  }
  0x14   :  { %v107_v16 = vpack.c.bf16 %v48_v14, %v47_v13  ;;  %v51_v19 = vld [vmem:[#allocation3 + $0x60] sm:$0xff]  ;;  %v52_v20 = vld [vmem:[#allocation3 + $0x68] sm:$0xff]  ;;  %v108_v21 = vpack.c.bf16 %v50_v18, %v49_v17  ;;  %v53_v23 = vld [vmem:[#allocation3 + $0x70] sm:$0xff]  ;;  %vm6972_vm13 = vcmask 917312   ;;  %vm6979_vm14 = vcmask 982912  }
  0x15   :  { %7403 = vmatpush3.bf16.msra.mxu0 %v7544_v1  ;;  %v109_v22 = vpack.c.bf16 %v52_v20, %v51_v19  ;;  %v54_v24 = vld [vmem:[#allocation3 + $0x78] sm:$0xff]  ;;  %v55_v25 = vld [vmem:[#allocation3 + $0x80] sm:$0xff]  ;;  %v56_v26 = vld [vmem:[#allocation3 + $0x88] sm:$0xff]  ;;  %vm6986_vm15 = vcmask 1048512  }
  0x16   :  { %v110_v27 = vpack.c.bf16 %v54_v24, %v53_v23  ;;  %v111_v28 = vpack.c.bf16 %v56_v26, %v55_v25  ;;  %v57_v29 = vld [vmem:[#allocation3 + $0x90] sm:$0xff]  ;;  %v58_v30 = vld [vmem:[#allocation3 + $0x98] sm:$0xff]  ;;  %v59_v31 = vld [vmem:[#allocation3 + $0xa0] sm:$0xff] }
  0x17   :  { %v60_v32 = vld [vmem:[#allocation3 + $0xa8] sm:$0xff]  ;;  %v112_v33 = vpack.c.bf16 %v58_v30, %v57_v29  ;;  %v61_v35 = vld [vmem:[#allocation3 + $0xb0] sm:$0xff]  ;;  %v62_v36 = vld [vmem:[#allocation3 + $0xb8] sm:$0xff] }
  0x18   :  { %7405 = vmatmul.mubr.msk.bf16.vlgmr.msra.gmra.mxu0 %vm158_vm0, %v104_v9  ;;  %v113_v34 = vpack.c.bf16 %v60_v32, %v59_v31  ;;  %v63_v37 = vld [vmem:[#allocation3 + $0xc0] sm:$0xff]  ;;  %v64_v38 = vld [vmem:[#allocation3 + $0xc8] sm:$0xff]  ;;  %v114_v39 = vpack.c.bf16 %v62_v36, %v61_v35  ;;  %v65_v41 = vld [vmem:[#allocation3 + $0xd0] sm:$0xff] }
  0x19   :  { %7408 = vmatprep.mubr.msk.bf16.mxu0 %vm158_vm0, %v105_v10  ;;  %v115_v40 = vpack.c.bf16 %v64_v38, %v63_v37  ;;  %v66_v42 = vld [vmem:[#allocation3 + $0xd8] sm:$0xff]  ;;  %v67_v43 = vld [vmem:[#allocation3 + $0xe0] sm:$0xff]  ;;  %v68_v44 = vld [vmem:[#allocation3 + $0xe8] sm:$0xff] }
  0x1a   :  { %v116_v45 = vpack.c.bf16 %v66_v42, %v65_v41  ;;  %v117_v46 = vpack.c.bf16 %v68_v44, %v67_v43  ;;  %v69_v47 = vld [vmem:[#allocation3 + $0xf0] sm:$0xff]  ;;  %v70_v48 = vld [vmem:[#allocation3 + $0xf8] sm:$0xff]  ;;  %v71_v49 = vld [vmem:[#allocation3 + $0x100] sm:$0xff] }
  0x1b   :  { %v72_v50 = vld [vmem:[#allocation3 + $0x108] sm:$0xff]  ;;  %v118_v51 = vpack.c.bf16 %v70_v48, %v69_v47  ;;  %v73_v53 = vld [vmem:[#allocation3 + $0x110] sm:$0xff]  ;;  %v74_v54 = vld [vmem:[#allocation3 + $0x118] sm:$0xff] }
  0x1c   :  { %v119_v52 = vpack.c.bf16 %v72_v50, %v71_v49  ;;  %v75_v55 = vld [vmem:[#allocation3 + $0x120] sm:$0xff]  ;;  %v76_v56 = vld [vmem:[#allocation3 + $0x128] sm:$0xff]  ;;  %v120_v57 = vpack.c.bf16 %v74_v54, %v73_v53  ;;  %v77_v59 = vld [vmem:[#allocation3 + $0x130] sm:$0xff] }
  0x1d   :  { %v121_v58 = vpack.c.bf16 %v76_v56, %v75_v55  ;;  %v78_v60 = vld [vmem:[#allocation3 + $0x138] sm:$0xff]  ;;  %v79_v61 = vld [vmem:[#allocation3 + $0x140] sm:$0xff]  ;;  %v80_v62 = vld [vmem:[#allocation3 + $0x148] sm:$0xff] }
  0x1e   :  { %v122_v63 = vpack.c.bf16 %v78_v60, %v77_v59  ;;  %v7545_v0 = vld [vmem:[%s9617_s3 + $0x8] sm:$0xff]   ;;  %v123_v1 = vpack.c.bf16 %v80_v62, %v79_v61  ;;  %v7546_v2 = vld [vmem:[%s9617_s3] sm:$0xff]   ;;  %v81_v3 = vld [vmem:[#allocation3 + $0x150] sm:$0xff] }
  0x1f   :  { %7468 = vmatprep.subr.bf16.mxu1 %v7545_v0  ;;  %v82_v4 = vld [vmem:[#allocation3 + $0x158] sm:$0xff]  ;;  %v83_v5 = vld [vmem:[#allocation3 + $0x160] sm:$0xff]  ;;  %v84_v6 = vld [vmem:[#allocation3 + $0x168] sm:$0xff] }
  0x20   :  { %7409 = vmatmul.mubr.msk.bf16.gmra.mxu0 %vm158_vm0, %v106_v15  ;;  %7469 = vmatpush3.bf16.msra.mxu1 %v7545_v0  ;;  %v124_v7 = vpack.c.bf16 %v82_v4, %v81_v3  ;;  %v125_v8 = vpack.c.bf16 %v84_v6, %v83_v5  ;;  %v85_v9 = vld [vmem:[#allocation3 + $0x170] sm:$0xff]  ;;  %v86_v10 = vld [vmem:[#allocation3 + $0x178] sm:$0xff]  ;;  %v87_v11 = vld [vmem:[#allocation3 + $0x180] sm:$0xff] }
  0x21   :  { %7412 = vmatprep.mubr.msk.bf16.mxu0 %vm158_vm0, %v107_v16  ;;  %7470 = vmatprep.subr.bf16.mxu1 %v7546_v2  ;;  %v88_v12 = vld [vmem:[#allocation3 + $0x188] sm:$0xff]  ;;  %v126_v13 = vpack.c.bf16 %v86_v10, %v85_v9  ;;  %v89_v15 = vld [vmem:[#allocation3 + $0x190] sm:$0xff]  ;;  %v90_v16 = vld [vmem:[#allocation3 + $0x198] sm:$0xff] }
  0x22   :  { %v127_v14 = vpack.c.bf16 %v88_v12, %v87_v11  ;;  %v91_v17 = vld [vmem:[#allocation3 + $0x1a0] sm:$0xff]  ;;  %v92_v18 = vld [vmem:[#allocation3 + $0x1a8] sm:$0xff]  ;;  %v128_v19 = vpack.c.bf16 %v90_v16, %v89_v15 }
  0x23   :  { %v129_v20 = vpack.c.bf16 %v92_v18, %v91_v17  ;;  %v95_v23 = vld [vmem:[#allocation3 + $0x1c0] sm:$0xff]  ;;  %v96_v24 = vld [vmem:[#allocation3 + $0x1c8] sm:$0xff] }
  0x24   :  { %7471 = vmatpush3.bf16.msra.mxu1 %v7546_v2  ;;  %v131_v26 = vpack.c.bf16 %v96_v24, %v95_v23  ;;  %v99_v29 = vld [vmem:[#allocation3 + $0x1e0] sm:$0xff]  ;;  %v100_v30 = vld [vmem:[#allocation3 + $0x1e8] sm:$0xff] }
  0x25   :  { %v133_v32 = vpack.c.bf16 %v100_v30, %v99_v29  ;;  %v7659_v38 = vld [vmem:[%s9618_s4] ss:$0 sm:$0xff] }
  0x28   :  { %7413 = vmatmul.mubr.msk.bf16.gmra.mxu0 %vm158_vm0, %v108_v21  ;;  %v93_v21 = vld [vmem:[#allocation3 + $0x1b0] sm:$0xff] }
  0x29   :  { %7416 = vmatprep.mubr.msk.bf16.mxu0 %vm158_vm0, %v109_v22  ;;  %v94_v22 = vld [vmem:[#allocation3 + $0x1b8] sm:$0xff] }
  0x2a   :  { %v130_v25 = vpack.c.bf16 %v94_v22, %v93_v21 }
  0x30   :  { %7417 = vmatmul.mubr.msk.bf16.gmra.mxu0 %vm158_vm0, %v110_v27  ;;  %v97_v27 = vld [vmem:[#allocation3 + $0x1d0] sm:$0xff] }
  0x31   :  { %7420 = vmatprep.mubr.msk.bf16.mxu0 %vm158_vm0, %v111_v28  ;;  %v98_v28 = vld [vmem:[#allocation3 + $0x1d8] sm:$0xff] }
  0x32   :  { %v132_v31 = vpack.c.bf16 %v98_v28, %v97_v27 }
  0x38   :  { %7421 = vmatmul.mubr.msk.bf16.gmra.mxu0 %vm158_vm0, %v112_v33  ;;  %v101_v33 = vld [vmem:[#allocation3 + $0x1f0] sm:$0xff] }
  0x39   :  { %7424 = vmatprep.mubr.msk.bf16.mxu0 %vm158_vm0, %v113_v34  ;;  %v102_v34 = vld [vmem:[#allocation3 + $0x1f8] sm:$0xff] }
  0x3a   :  { %v134_v35 = vpack.c.bf16 %v102_v34, %v101_v33 }
  0x40   :  { %7425 = vmatmul.mubr.msk.bf16.gmra.mxu0 %vm158_vm0, %v114_v39 }
  0x41   :  { %7428 = vmatprep.mubr.msk.bf16.mxu0 %vm158_vm0, %v115_v40 }
  0x48   :  { %7429 = vmatmul.mubr.msk.bf16.gmra.mxu0 %vm158_vm0, %v116_v45 }
  0x49   :  { %7432 = vmatprep.mubr.msk.bf16.mxu0 %vm158_vm0, %v117_v46 }
  0x50   :  { %7433 = vmatmul.mubr.msk.bf16.gmra.mxu0 %vm158_vm0, %v118_v51 }
  0x51   :  { %7436 = vmatprep.mubr.msk.bf16.mxu0 %vm158_vm0, %v119_v52 }
  0x58   :  { %7437 = vmatmul.mubr.msk.bf16.gmra.mxu0 %vm158_vm0, %v120_v57 }
  0x59   :  { %7440 = vmatprep.mubr.msk.bf16.mxu0 %vm158_vm0, %v121_v58 }
  0x60   :  { %7441 = vmatmul.mubr.msk.bf16.gmra.mxu0 %vm158_vm0, %v122_v63 }
  0x61   :  { %7444 = vmatprep.mubr.msk.bf16.mxu0 %vm158_vm0, %v123_v1 }
  0x68   :  { %7445 = vmatmul.mubr.msk.bf16.gmra.mxu0 %vm158_vm0, %v124_v7 }
  0x69   :  { %7448 = vmatprep.mubr.msk.bf16.mxu0 %vm158_vm0, %v125_v8 }
  0x70   :  { %7449 = vmatmul.mubr.msk.bf16.gmra.mxu0 %vm158_vm0, %v126_v13 }
  0x71   :  { %7452 = vmatprep.mubr.msk.bf16.mxu0 %vm158_vm0, %v127_v14 }
  0x78   :  { %7453 = vmatmul.mubr.msk.bf16.gmra.mxu0 %vm158_vm0, %v128_v19 }
  0x79   :  { %7456 = vmatprep.mubr.msk.bf16.mxu0 %vm158_vm0, %v129_v20 }
  0x80   :  { %7457 = vmatmul.mubr.msk.bf16.gmra.mxu0 %vm158_vm0, %v130_v25 }
  0x81   :  { %7460 = vmatprep.mubr.msk.bf16.mxu0 %vm158_vm0, %v131_v26 }
  0x88   :  { %7461 = vmatmul.mubr.msk.bf16.gmra.mxu0 %vm158_vm0, %v132_v31 }
  0x89   :  { %7464 = vmatprep.mubr.msk.bf16.mxu0 %vm158_vm0, %v133_v32 }
  0x90   :  { %7465 = vmatmul.mubr.msk.bf16.gmra.mxu0 %vm158_vm0, %v134_v35 }
  0xd8   :  { %v7406_v36 = vpop.f32.mrf.mxu0 }
  0xd9   :  { %v298_v42 = vadd.f32 %v7406_v36, %v7659_v38 }
  0xda   :  { %v289_v37 = vpop.f32.mrf.mxu0 }
  0xdb   :  { %v290_v40 = vadd.f32 %v7659_v38, %v289_v37  ;;  %v546_v49 = vmax.f32 %v298_v42, 0.0 }
  0xdc   :  { %v7407_v39 = vpop.f32.mrf.mxu0 }
  0xdd   :  { %v301_v41 = vadd.f32 %v7407_v39, %v7659_v38  ;;  %v544_v47 = vmax.f32 %v290_v40, 0.0 }
  0xde   :  { %v292_v43 = vpop.f32.mrf.mxu0 }
  0xdf   :  { %v293_v44 = vadd.f32 %v7659_v38, %v292_v43  ;;  %v547_v45 = vmax.f32 %v301_v41, 0.0 }
  0xe0   :  { %v7410_v46 = vpop.f32.mrf.mxu0 }
  0xe1   :  { %v545_v48 = vmax.f32 %v293_v44, 0.0  ;;  %v609_v52 = vpack.c.bf16 %v547_v45, %v546_v49  ;;  %v314_v56 = vadd.f32 %v7410_v46, %v7659_v38 }
  0xe2   :  { %v305_v50 = vpop.f32.mrf.mxu0 }
  0xe3   :  { %v608_v51 = vpack.c.bf16 %v545_v48, %v544_v47  ;;  %v306_v54 = vadd.f32 %v7659_v38, %v305_v50  ;;  %v550_v63 = vmax.f32 %v314_v56, 0.0 }
  0xe4   :  { %v7411_v53 = vpop.f32.mrf.mxu0 }
  0xe5   :  { %v317_v55 = vadd.f32 %v7411_v53, %v7659_v38  ;;  %7472 = vmatprep.mubr.msk.bf16.mxu1 %vm158_vm0, %v608_v51  ;;  %v548_v61 = vmax.f32 %v306_v54, 0.0 }
  0xe6   :  { %v308_v57 = vpop.f32.mrf.mxu0  ;;  %7473 = vmatmul.mubr.msk.bf16.vlgmr.msra.gmra.mxu1 %vm158_vm0, %v609_v52 }
  0xe7   :  { %v309_v58 = vadd.f32 %v7659_v38, %v308_v57  ;;  %v551_v59 = vmax.f32 %v317_v55, 0.0 }
  0xe8   :  { %v7414_v60 = vpop.f32.mrf.mxu0 }
  0xe9   :  { %v549_v62 = vmax.f32 %v309_v58, 0.0  ;;  %v611_v2 = vpack.c.bf16 %v551_v59, %v550_v63  ;;  %v330_v6 = vadd.f32 %v7414_v60, %v7659_v38 }
  0xea   :  { %v321_v0 = vpop.f32.mrf.mxu0 }
  0xeb   :  { %v610_v1 = vpack.c.bf16 %v549_v62, %v548_v61  ;;  %v322_v4 = vadd.f32 %v7659_v38, %v321_v0  ;;  %v554_v13 = vmax.f32 %v330_v6, 0.0 }
  0xec   :  { %v7415_v3 = vpop.f32.mrf.mxu0 }
  0xed   :  { %v333_v5 = vadd.f32 %v7415_v3, %v7659_v38  ;;  %7476 = vmatprep.mubr.msk.bf16.mxu1 %vm158_vm0, %v610_v1  ;;  %v552_v11 = vmax.f32 %v322_v4, 0.0 }
  0xee   :  { %v324_v7 = vpop.f32.mrf.mxu0  ;;  %7477 = vmatmul.mubr.msk.bf16.gmra.mxu1 %vm158_vm0, %v611_v2 }
  0xef   :  { %v325_v8 = vadd.f32 %v7659_v38, %v324_v7  ;;  %v555_v9 = vmax.f32 %v333_v5, 0.0 }
  0xf0   :  { %v7418_v10 = vpop.f32.mrf.mxu0 }
  0xf1   :  { %v553_v12 = vmax.f32 %v325_v8, 0.0  ;;  %v613_v16 = vpack.c.bf16 %v555_v9, %v554_v13  ;;  %v346_v20 = vadd.f32 %v7418_v10, %v7659_v38 }
  0xf2   :  { %v337_v14 = vpop.f32.mrf.mxu0 }
  0xf3   :  { %v612_v15 = vpack.c.bf16 %v553_v12, %v552_v11  ;;  %v338_v18 = vadd.f32 %v7659_v38, %v337_v14  ;;  %v558_v27 = vmax.f32 %v346_v20, 0.0 }
  0xf4   :  { %v7419_v17 = vpop.f32.mrf.mxu0 }
  0xf5   :  { %v349_v19 = vadd.f32 %v7419_v17, %v7659_v38  ;;  %7480 = vmatprep.mubr.msk.bf16.mxu1 %vm158_vm0, %v612_v15  ;;  %v556_v25 = vmax.f32 %v338_v18, 0.0 }
  0xf6   :  { %v340_v21 = vpop.f32.mrf.mxu0  ;;  %7481 = vmatmul.mubr.msk.bf16.gmra.mxu1 %vm158_vm0, %v613_v16 }
  0xf7   :  { %v341_v22 = vadd.f32 %v7659_v38, %v340_v21  ;;  %v559_v23 = vmax.f32 %v349_v19, 0.0 }
  0xf8   :  { %v7422_v24 = vpop.f32.mrf.mxu0 }
  0xf9   :  { %v557_v26 = vmax.f32 %v341_v22, 0.0  ;;  %v615_v30 = vpack.c.bf16 %v559_v23, %v558_v27  ;;  %v362_v34 = vadd.f32 %v7422_v24, %v7659_v38 }
  0xfa   :  { %v353_v28 = vpop.f32.mrf.mxu0 }
  0xfb   :  { %v614_v29 = vpack.c.bf16 %v557_v26, %v556_v25  ;;  %v354_v32 = vadd.f32 %v7659_v38, %v353_v28  ;;  %v562_v42 = vmax.f32 %v362_v34, 0.0 }
  0xfc   :  { %v7423_v31 = vpop.f32.mrf.mxu0 }
  0xfd   :  { %v365_v33 = vadd.f32 %v7423_v31, %v7659_v38  ;;  %7484 = vmatprep.mubr.msk.bf16.mxu1 %vm158_vm0, %v614_v29  ;;  %v560_v40 = vmax.f32 %v354_v32, 0.0 }
  0xfe   :  { %v356_v35 = vpop.f32.mrf.mxu0  ;;  %7485 = vmatmul.mubr.msk.bf16.gmra.mxu1 %vm158_vm0, %v615_v30 }
  0xff   :  { %v357_v36 = vadd.f32 %v7659_v38, %v356_v35  ;;  %v563_v37 = vmax.f32 %v365_v33, 0.0 }
 0x100   :  { %v7426_v39 = vpop.f32.mrf.mxu0 }
 0x101   :  { %v561_v41 = vmax.f32 %v357_v36, 0.0  ;;  %v617_v45 = vpack.c.bf16 %v563_v37, %v562_v42  ;;  %v378_v49 = vadd.f32 %v7426_v39, %v7659_v38 }
 0x102   :  { %v369_v43 = vpop.f32.mrf.mxu0 }
 0x103   :  { %v616_v44 = vpack.c.bf16 %v561_v41, %v560_v40  ;;  %v370_v47 = vadd.f32 %v7659_v38, %v369_v43  ;;  %v566_v56 = vmax.f32 %v378_v49, 0.0 }
 0x104   :  { %v7427_v46 = vpop.f32.mrf.mxu0 }
 0x105   :  { %v381_v48 = vadd.f32 %v7427_v46, %v7659_v38  ;;  %7488 = vmatprep.mubr.msk.bf16.mxu1 %vm158_vm0, %v616_v44  ;;  %v564_v54 = vmax.f32 %v370_v47, 0.0 }
 0x106   :  { %v372_v50 = vpop.f32.mrf.mxu0  ;;  %7489 = vmatmul.mubr.msk.bf16.gmra.mxu1 %vm158_vm0, %v617_v45 }
 0x107   :  { %v373_v51 = vadd.f32 %v7659_v38, %v372_v50  ;;  %v567_v52 = vmax.f32 %v381_v48, 0.0 }
 0x108   :  { %v7430_v53 = vpop.f32.mrf.mxu0 }
 0x109   :  { %v565_v55 = vmax.f32 %v373_v51, 0.0  ;;  %v619_v59 = vpack.c.bf16 %v567_v52, %v566_v56  ;;  %v394_v63 = vadd.f32 %v7430_v53, %v7659_v38 }
 0x10a   :  { %v385_v57 = vpop.f32.mrf.mxu0 }
 0x10b   :  { %v618_v58 = vpack.c.bf16 %v565_v55, %v564_v54  ;;  %v386_v61 = vadd.f32 %v7659_v38, %v385_v57  ;;  %v570_v6 = vmax.f32 %v394_v63, 0.0 }
 0x10c   :  { %v7431_v60 = vpop.f32.mrf.mxu0 }
 0x10d   :  { %v397_v62 = vadd.f32 %v7431_v60, %v7659_v38  ;;  %7492 = vmatprep.mubr.msk.bf16.mxu1 %vm158_vm0, %v618_v58  ;;  %v568_v4 = vmax.f32 %v386_v61, 0.0 }
 0x10e   :  { %v388_v0 = vpop.f32.mrf.mxu0  ;;  %7493 = vmatmul.mubr.msk.bf16.gmra.mxu1 %vm158_vm0, %v619_v59 }
 0x10f   :  { %v389_v1 = vadd.f32 %v7659_v38, %v388_v0  ;;  %v571_v2 = vmax.f32 %v397_v62, 0.0 }
 0x110   :  { %v7434_v3 = vpop.f32.mrf.mxu0 }
 0x111   :  { %v569_v5 = vmax.f32 %v389_v1, 0.0  ;;  %v621_v9 = vpack.c.bf16 %v571_v2, %v570_v6  ;;  %v410_v13 = vadd.f32 %v7434_v3, %v7659_v38 }
 0x112   :  { %v401_v7 = vpop.f32.mrf.mxu0 }
 0x113   :  { %v620_v8 = vpack.c.bf16 %v569_v5, %v568_v4  ;;  %v402_v11 = vadd.f32 %v7659_v38, %v401_v7  ;;  %v574_v20 = vmax.f32 %v410_v13, 0.0 }
 0x114   :  { %v7435_v10 = vpop.f32.mrf.mxu0 }
 0x115   :  { %v413_v12 = vadd.f32 %v7435_v10, %v7659_v38  ;;  %7496 = vmatprep.mubr.msk.bf16.mxu1 %vm158_vm0, %v620_v8  ;;  %v572_v18 = vmax.f32 %v402_v11, 0.0 }
 0x116   :  { %v404_v14 = vpop.f32.mrf.mxu0  ;;  %7497 = vmatmul.mubr.msk.bf16.gmra.mxu1 %vm158_vm0, %v621_v9 }
 0x117   :  { %v405_v15 = vadd.f32 %v7659_v38, %v404_v14  ;;  %v575_v16 = vmax.f32 %v413_v12, 0.0 }
 0x118   :  { %v7438_v17 = vpop.f32.mrf.mxu0 }
 0x119   :  { %v573_v19 = vmax.f32 %v405_v15, 0.0  ;;  %v623_v23 = vpack.c.bf16 %v575_v16, %v574_v20  ;;  %v426_v27 = vadd.f32 %v7438_v17, %v7659_v38 }
 0x11a   :  { %v417_v21 = vpop.f32.mrf.mxu0 }
 0x11b   :  { %v622_v22 = vpack.c.bf16 %v573_v19, %v572_v18  ;;  %v418_v25 = vadd.f32 %v7659_v38, %v417_v21  ;;  %v578_v34 = vmax.f32 %v426_v27, 0.0 }
 0x11c   :  { %v7439_v24 = vpop.f32.mrf.mxu0 }
 0x11d   :  { %v429_v26 = vadd.f32 %v7439_v24, %v7659_v38  ;;  %7500 = vmatprep.mubr.msk.bf16.mxu1 %vm158_vm0, %v622_v22  ;;  %v576_v32 = vmax.f32 %v418_v25, 0.0 }
 0x11e   :  { %v420_v28 = vpop.f32.mrf.mxu0  ;;  %7501 = vmatmul.mubr.msk.bf16.gmra.mxu1 %vm158_vm0, %v623_v23 }
 0x11f   :  { %v421_v29 = vadd.f32 %v7659_v38, %v420_v28  ;;  %v579_v30 = vmax.f32 %v429_v26, 0.0 }
 0x120   :  { %v7442_v31 = vpop.f32.mrf.mxu0 }
 0x121   :  { %v577_v33 = vmax.f32 %v421_v29, 0.0  ;;  %v625_v37 = vpack.c.bf16 %v579_v30, %v578_v34  ;;  %v442_v42 = vadd.f32 %v7442_v31, %v7659_v38 }
 0x122   :  { %v433_v35 = vpop.f32.mrf.mxu0 }
 0x123   :  { %v624_v36 = vpack.c.bf16 %v577_v33, %v576_v32  ;;  %v434_v40 = vadd.f32 %v7659_v38, %v433_v35  ;;  %v582_v49 = vmax.f32 %v442_v42, 0.0 }
 0x124   :  { %v7443_v39 = vpop.f32.mrf.mxu0 }
 0x125   :  { %v445_v41 = vadd.f32 %v7443_v39, %v7659_v38  ;;  %7504 = vmatprep.mubr.msk.bf16.mxu1 %vm158_vm0, %v624_v36  ;;  %v580_v47 = vmax.f32 %v434_v40, 0.0 }
 0x126   :  { %v436_v43 = vpop.f32.mrf.mxu0  ;;  %7505 = vmatmul.mubr.msk.bf16.gmra.mxu1 %vm158_vm0, %v625_v37 }
 0x127   :  { %v437_v44 = vadd.f32 %v7659_v38, %v436_v43  ;;  %v583_v45 = vmax.f32 %v445_v41, 0.0 }
 0x128   :  { %v7446_v46 = vpop.f32.mrf.mxu0 }
 0x129   :  { %v581_v48 = vmax.f32 %v437_v44, 0.0  ;;  %v627_v52 = vpack.c.bf16 %v583_v45, %v582_v49  ;;  %v458_v56 = vadd.f32 %v7446_v46, %v7659_v38 }
 0x12a   :  { %v449_v50 = vpop.f32.mrf.mxu0 }
 0x12b   :  { %v626_v51 = vpack.c.bf16 %v581_v48, %v580_v47  ;;  %v450_v54 = vadd.f32 %v7659_v38, %v449_v50  ;;  %v586_v63 = vmax.f32 %v458_v56, 0.0 }
 0x12c   :  { %v7447_v53 = vpop.f32.mrf.mxu0 }
 0x12d   :  { %v461_v55 = vadd.f32 %v7447_v53, %v7659_v38  ;;  %7508 = vmatprep.mubr.msk.bf16.mxu1 %vm158_vm0, %v626_v51  ;;  %v584_v61 = vmax.f32 %v450_v54, 0.0 }
 0x12e   :  { %v452_v57 = vpop.f32.mrf.mxu0  ;;  %7509 = vmatmul.mubr.msk.bf16.gmra.mxu1 %vm158_vm0, %v627_v52 }
 0x12f   :  { %v453_v58 = vadd.f32 %v7659_v38, %v452_v57  ;;  %v587_v59 = vmax.f32 %v461_v55, 0.0 }
 0x130   :  { %v7450_v60 = vpop.f32.mrf.mxu0 }
 0x131   :  { %v585_v62 = vmax.f32 %v453_v58, 0.0  ;;  %v629_v2 = vpack.c.bf16 %v587_v59, %v586_v63  ;;  %v474_v6 = vadd.f32 %v7450_v60, %v7659_v38 }
 0x132   :  { %v465_v0 = vpop.f32.mrf.mxu0 }
 0x133   :  { %v628_v1 = vpack.c.bf16 %v585_v62, %v584_v61  ;;  %v466_v4 = vadd.f32 %v7659_v38, %v465_v0  ;;  %v590_v13 = vmax.f32 %v474_v6, 0.0 }
 0x134   :  { %v7451_v3 = vpop.f32.mrf.mxu0 }
 0x135   :  { %v477_v5 = vadd.f32 %v7451_v3, %v7659_v38  ;;  %7512 = vmatprep.mubr.msk.bf16.mxu1 %vm158_vm0, %v628_v1  ;;  %v588_v11 = vmax.f32 %v466_v4, 0.0 }
 0x136   :  { %v468_v7 = vpop.f32.mrf.mxu0  ;;  %7513 = vmatmul.mubr.msk.bf16.gmra.mxu1 %vm158_vm0, %v629_v2 }
 0x137   :  { %v469_v8 = vadd.f32 %v7659_v38, %v468_v7  ;;  %v591_v9 = vmax.f32 %v477_v5, 0.0 }
 0x138   :  { %v7454_v10 = vpop.f32.mrf.mxu0 }
 0x139   :  { %v589_v12 = vmax.f32 %v469_v8, 0.0  ;;  %v631_v16 = vpack.c.bf16 %v591_v9, %v590_v13  ;;  %v490_v20 = vadd.f32 %v7454_v10, %v7659_v38  ;;  %v7760_v8 = vld [vmem:[%s9618_s4 + $0x1] ss:$0 sm:$0xff] }
 0x13a   :  { %v481_v14 = vpop.f32.mrf.mxu0 }
 0x13b   :  { %v630_v15 = vpack.c.bf16 %v589_v12, %v588_v11  ;;  %v482_v18 = vadd.f32 %v7659_v38, %v481_v14  ;;  %v594_v27 = vmax.f32 %v490_v20, 0.0 }
 0x13c   :  { %v7455_v17 = vpop.f32.mrf.mxu0 }
 0x13d   :  { %v493_v19 = vadd.f32 %v7455_v17, %v7659_v38  ;;  %7516 = vmatprep.mubr.msk.bf16.mxu1 %vm158_vm0, %v630_v15  ;;  %v592_v25 = vmax.f32 %v482_v18, 0.0 }
 0x13e   :  { %v484_v21 = vpop.f32.mrf.mxu0  ;;  %7517 = vmatmul.mubr.msk.bf16.gmra.mxu1 %vm158_vm0, %v631_v16 }
 0x13f   :  { %v485_v22 = vadd.f32 %v7659_v38, %v484_v21  ;;  %v595_v23 = vmax.f32 %v493_v19, 0.0 }
 0x140   :  { %v7458_v24 = vpop.f32.mrf.mxu0 }
 0x141   :  { %v593_v26 = vmax.f32 %v485_v22, 0.0  ;;  %v633_v30 = vpack.c.bf16 %v595_v23, %v594_v27  ;;  %v506_v34 = vadd.f32 %v7458_v24, %v7659_v38 }
 0x142   :  { %v497_v28 = vpop.f32.mrf.mxu0 }
 0x143   :  { %v632_v29 = vpack.c.bf16 %v593_v26, %v592_v25  ;;  %v498_v32 = vadd.f32 %v7659_v38, %v497_v28  ;;  %v598_v42 = vmax.f32 %v506_v34, 0.0 }
 0x144   :  { %v7459_v31 = vpop.f32.mrf.mxu0 }
 0x145   :  { %v509_v33 = vadd.f32 %v7459_v31, %v7659_v38  ;;  %7520 = vmatprep.mubr.msk.bf16.mxu1 %vm158_vm0, %v632_v29  ;;  %v596_v40 = vmax.f32 %v498_v32, 0.0 }
 0x146   :  { %v500_v35 = vpop.f32.mrf.mxu0  ;;  %7521 = vmatmul.mubr.msk.bf16.gmra.mxu1 %vm158_vm0, %v633_v30 }
 0x147   :  { %v501_v36 = vadd.f32 %v7659_v38, %v500_v35  ;;  %v599_v37 = vmax.f32 %v509_v33, 0.0 }
 0x148   :  { %v7462_v39 = vpop.f32.mrf.mxu0 }
 0x149   :  { %v597_v41 = vmax.f32 %v501_v36, 0.0  ;;  %v635_v45 = vpack.c.bf16 %v599_v37, %v598_v42  ;;  %v522_v46 = vadd.f32 %v7462_v39, %v7659_v38 }
 0x14a   :  { %v513_v43 = vpop.f32.mrf.mxu0 }
 0x14b   :  { %v634_v44 = vpack.c.bf16 %v597_v41, %v596_v40  ;;  %v514_v48 = vadd.f32 %v7659_v38, %v513_v43  ;;  %v602_v52 = vmax.f32 %v522_v46, 0.0 }
 0x14c   :  { %v7463_v47 = vpop.f32.mrf.mxu0 }
 0x14d   :  { %v525_v49 = vadd.f32 %v7463_v47, %v7659_v38  ;;  %7524 = vmatprep.mubr.msk.bf16.mxu1 %vm158_vm0, %v634_v44  ;;  %v600_v55 = vmax.f32 %v514_v48, 0.0 }
 0x14e   :  { %v516_v50 = vpop.f32.mrf.mxu0  ;;  %7525 = vmatmul.mubr.msk.bf16.gmra.mxu1 %vm158_vm0, %v635_v45 }
 0x14f   :  { %v517_v51 = vadd.f32 %v7659_v38, %v516_v50  ;;  %v603_v53 = vmax.f32 %v525_v49, 0.0 }
 0x150   :  { %v7466_v54 = vpop.f32.mrf.mxu0 }
 0x151   :  { %v601_v56 = vmax.f32 %v517_v51, 0.0  ;;  %v538_v57 = vadd.f32 %v7466_v54, %v7659_v38  ;;  %v637_v61 = vpack.c.bf16 %v603_v53, %v602_v52 }
 0x152   :  { %v529_v58 = vpop.f32.mrf.mxu0 }
 0x153   :  { %v636_v59 = vpack.c.bf16 %v601_v56, %v600_v55  ;;  %v530_v60 = vadd.f32 %v7659_v38, %v529_v58  ;;  %v606_v0 = vmax.f32 %v538_v57, 0.0 }
 0x154   :  { %v7467_v62 = vpop.f32.mrf.mxu0 }
 0x155   :  { %v541_v63 = vadd.f32 %v7467_v62, %v7659_v38  ;;  %7528 = vmatprep.mubr.msk.bf16.mxu1 %vm158_vm0, %v636_v59  ;;  %v604_v2 = vmax.f32 %v530_v60, 0.0 }
 0x156   :  { %v532_v1 = vpop.f32.mrf.mxu0  ;;  %7529 = vmatmul.mubr.msk.bf16.gmra.mxu1 %vm158_vm0, %v637_v61 }
 0x157   :  { %v607_v3 = vmax.f32 %v541_v63, 0.0  ;;  %v533_v4 = vadd.f32 %v7659_v38, %v532_v1  ;;  %v7766_v38 = vld [vmem:[%s9618_s4 + $0x2] ss:$0 sm:$0xff] }
 0x159   :  { %v605_v5 = vmax.f32 %v533_v4, 0.0  ;;  %v639_v6 = vpack.c.bf16 %v607_v3, %v606_v0 }
 0x15b   :  { %v638_v7 = vpack.c.bf16 %v605_v5, %v604_v2 }
 0x15d   :  { %7532 = vmatprep.mubr.msk.bf16.mxu1 %vm158_vm0, %v638_v7 }
 0x15e   :  { %7533 = vmatmul.mubr.msk.bf16.gmra.mxu1 %vm158_vm0, %v639_v6 }
 0x1a6   :  { %v7474_v9 = vpop.f32.mrf.mxu1 }
 0x1a7   :  { %v799_v10 = vadd.f32 %v7474_v9, %v7760_v8 }
 0x1a8   :  { %v790_v11 = vpop.f32.mrf.mxu1 }
 0x1a9   :  { %v1047_v12 = vmax.f32 %v799_v10, 0.0  ;;  %v791_v13 = vadd.f32 %v7760_v8, %v790_v11 }
 0x1aa   :  { %v7475_v14 = vpop.f32.mrf.mxu1 }
 0x1ab   :  { %v1045_v15 = vmax.f32 %v791_v13, 0.0  ;;  %v802_v16 = vadd.f32 %v7475_v14, %v7760_v8  ;;  %v1115_v17 = vmul.f32 %v7766_v38, %v1047_v12 }
 0x1ac   :  { %v793_v18 = vpop.f32.mrf.mxu1 }
 0x1ad   :  { %v1048_v19 = vmax.f32 %v802_v16, 0.0  ;;  %v794_v20 = vadd.f32 %v7760_v8, %v793_v18  ;;  %v1183_v21 = vsel %vm158_vm0, %v1115_v17, 0.0  ;;  %v1113_v22 = vmul.f32 %v7766_v38, %v1045_v15 }
 0x1ae   :  { %1184 = vadd.xlane.f32.xlu1 %v1183_v21  ;;  %v7478_v23 = vpop.f32.mrf.mxu1 }
 0x1af   :  { %v1046_v24 = vmax.f32 %v794_v20, 0.0  ;;  %v815_v25 = vadd.f32 %v7478_v23, %v7760_v8  ;;  %v1177_v26 = vsel %vm158_vm0, %v1113_v22, 0.0  ;;  %v1116_v27 = vmul.f32 %v7766_v38, %v1048_v19 }
 0x1b0   :  { %v806_v28 = vpop.f32.mrf.mxu1  ;;  %1178 = vadd.xlane.f32.xlu0 %v1177_v26  ;;  %v7572_v19 = vmov 0  }
 0x1b1   :  { %v1051_v29 = vmax.f32 %v815_v25, 0.0  ;;  %v807_v30 = vadd.f32 %v7760_v8, %v806_v28  ;;  %v1186_v31 = vsel %vm158_vm0, %v1116_v27, 0.0  ;;  %v1114_v32 = vmul.f32 %v7766_v38, %v1046_v24  ;;  %7541 = vset.pattern.permute.xlu1 %v7572_v19  ;;  %7542 = vset.pattern.permute.xlu0 %v7572_v19 }
 0x1b2   :  { %1187 = vadd.xlane.f32.xlu1 %v1186_v31  ;;  %v7479_v33 = vpop.f32.mrf.mxu1 }
 0x1b3   :  { %v1049_v34 = vmax.f32 %v807_v30, 0.0  ;;  %v818_v35 = vadd.f32 %v7479_v33, %v7760_v8  ;;  %v1180_v36 = vsel %vm158_vm0, %v1114_v32, 0.0  ;;  %v1119_v37 = vmul.f32 %v7766_v38, %v1051_v29 }
 0x1b4   :  { %v809_v39 = vpop.f32.mrf.mxu1  ;;  %1181 = vadd.xlane.f32.xlu0 %v1180_v36 }
 0x1b5   :  { %v1052_v40 = vmax.f32 %v818_v35, 0.0  ;;  %v810_v41 = vadd.f32 %v7760_v8, %v809_v39  ;;  %v1195_v43 = vsel %vm158_vm0, %v1119_v37, 0.0  ;;  %v1117_v47 = vmul.f32 %v7766_v38, %v1049_v34 }
 0x1b6   :  { %v7482_v42 = vpop.f32.mrf.mxu1 }
 0x1b7   :  { %v1050_v44 = vmax.f32 %v810_v41, 0.0  ;;  %v831_v45 = vadd.f32 %v7482_v42, %v7760_v8  ;;  %v1120_v46 = vmul.f32 %v7766_v38, %v1052_v40  ;;  %v1189_v56 = vsel %vm158_vm0, %v1117_v47, 0.0 }
 0x1b8   :  { %v822_v48 = vpop.f32.mrf.mxu1  ;;  %1196 = vadd.xlane.f32.xlu0 %v1195_v43 }
 0x1b9   :  { %v1055_v49 = vmax.f32 %v831_v45, 0.0  ;;  %v823_v50 = vadd.f32 %v7760_v8, %v822_v48  ;;  %v1198_v51 = vsel %vm158_vm0, %v1120_v46, 0.0  ;;  %v1118_v52 = vmul.f32 %v7766_v38, %v1050_v44 }
 0x1ba   :  { %1199 = vadd.xlane.f32.xlu1 %v1198_v51  ;;  %v7483_v53 = vpop.f32.mrf.mxu1 }
 0x1bb   :  { %v1053_v54 = vmax.f32 %v823_v50, 0.0  ;;  %v834_v55 = vadd.f32 %v7483_v53, %v7760_v8  ;;  %v1123_v57 = vmul.f32 %v7766_v38, %v1055_v49  ;;  %v1192_v61 = vsel %vm158_vm0, %v1118_v52, 0.0 }
 0x1bc   :  { %v825_v58 = vpop.f32.mrf.mxu1  ;;  %1190 = vadd.xlane.f32.xlu0 %v1189_v56 }
 0x1bd   :  { %v1056_v59 = vmax.f32 %v834_v55, 0.0  ;;  %v826_v60 = vadd.f32 %v7760_v8, %v825_v58  ;;  %v1207_v63 = vsel %vm158_vm0, %v1123_v57, 0.0  ;;  %v1121_v3 = vmul.f32 %v7766_v38, %v1053_v54 }
 0x1be   :  { %v7486_v62 = vpop.f32.mrf.mxu1  ;;  %1193 = vadd.xlane.f32.xlu1 %v1192_v61 }
 0x1bf   :  { %v1054_v0 = vmax.f32 %v826_v60, 0.0  ;;  %v847_v1 = vadd.f32 %v7486_v62, %v7760_v8  ;;  %v1124_v2 = vmul.f32 %v7766_v38, %v1056_v59  ;;  %v1201_v13 = vsel %vm158_vm0, %v1121_v3, 0.0 }
 0x1c0   :  { %v838_v4 = vpop.f32.mrf.mxu1  ;;  %1208 = vadd.xlane.f32.xlu0 %v1207_v63 }
 0x1c1   :  { %v1059_v5 = vmax.f32 %v847_v1, 0.0  ;;  %v839_v6 = vadd.f32 %v7760_v8, %v838_v4  ;;  %v1210_v7 = vsel %vm158_vm0, %v1124_v2, 0.0  ;;  %v1122_v9 = vmul.f32 %v7766_v38, %v1054_v0 }
 0x1c2   :  { %v7487_v10 = vpop.f32.mrf.mxu1  ;;  %1211 = vadd.xlane.f32.xlu1 %v1210_v7 }
 0x1c3   :  { %v1057_v11 = vmax.f32 %v839_v6, 0.0  ;;  %v850_v12 = vadd.f32 %v7487_v10, %v7760_v8  ;;  %v1127_v14 = vmul.f32 %v7766_v38, %v1059_v5  ;;  %v1204_v18 = vsel %vm158_vm0, %v1122_v9, 0.0 }
 0x1c4   :  { %v841_v15 = vpop.f32.mrf.mxu1  ;;  %1202 = vadd.xlane.f32.xlu0 %v1201_v13 }
 0x1c5   :  { %v1060_v16 = vmax.f32 %v850_v12, 0.0  ;;  %v842_v17 = vadd.f32 %v7760_v8, %v841_v15  ;;  %v1219_v21 = vsel %vm158_vm0, %v1127_v14, 0.0  ;;  %v1125_v25 = vmul.f32 %v7766_v38, %v1057_v11 }
 0x1c6   :  { %v7490_v20 = vpop.f32.mrf.mxu1  ;;  %1205 = vadd.xlane.f32.xlu1 %v1204_v18 }
 0x1c7   :  { %v1058_v22 = vmax.f32 %v842_v17, 0.0  ;;  %v863_v23 = vadd.f32 %v7490_v20, %v7760_v8  ;;  %v1128_v24 = vmul.f32 %v7766_v38, %v1060_v16  ;;  %v1213_v34 = vsel %vm158_vm0, %v1125_v25, 0.0 }
 0x1c8   :  { %v854_v26 = vpop.f32.mrf.mxu1  ;;  %1220 = vadd.xlane.f32.xlu0 %v1219_v21 }
 0x1c9   :  { %v1063_v27 = vmax.f32 %v863_v23, 0.0  ;;  %v855_v28 = vadd.f32 %v7760_v8, %v854_v26  ;;  %v1222_v29 = vsel %vm158_vm0, %v1128_v24, 0.0  ;;  %v1126_v30 = vmul.f32 %v7766_v38, %v1058_v22 }
 0x1ca   :  { %v7491_v31 = vpop.f32.mrf.mxu1  ;;  %1223 = vadd.xlane.f32.xlu1 %v1222_v29 }
 0x1cb   :  { %v1061_v32 = vmax.f32 %v855_v28, 0.0  ;;  %v866_v33 = vadd.f32 %v7491_v31, %v7760_v8  ;;  %v1131_v35 = vmul.f32 %v7766_v38, %v1063_v27  ;;  %v1216_v40 = vsel %vm158_vm0, %v1126_v30, 0.0 }
 0x1cc   :  { %v857_v36 = vpop.f32.mrf.mxu1  ;;  %1214 = vadd.xlane.f32.xlu0 %v1213_v34 }
 0x1cd   :  { %v1064_v37 = vmax.f32 %v866_v33, 0.0  ;;  %v858_v39 = vadd.f32 %v7760_v8, %v857_v36  ;;  %v1231_v42 = vsel %vm158_vm0, %v1131_v35, 0.0  ;;  %v1129_v46 = vmul.f32 %v7766_v38, %v1061_v32 }
 0x1ce   :  { %v7494_v41 = vpop.f32.mrf.mxu1  ;;  %1217 = vadd.xlane.f32.xlu1 %v1216_v40 }
 0x1cf   :  { %v1062_v43 = vmax.f32 %v858_v39, 0.0  ;;  %v879_v44 = vadd.f32 %v7494_v41, %v7760_v8  ;;  %v1132_v45 = vmul.f32 %v7766_v38, %v1064_v37  ;;  %v1225_v55 = vsel %vm158_vm0, %v1129_v46, 0.0 }
 0x1d0   :  { %v870_v47 = vpop.f32.mrf.mxu1  ;;  %1232 = vadd.xlane.f32.xlu0 %v1231_v42 }
 0x1d1   :  { %v1067_v48 = vmax.f32 %v879_v44, 0.0  ;;  %v871_v49 = vadd.f32 %v7760_v8, %v870_v47  ;;  %v1234_v50 = vsel %vm158_vm0, %v1132_v45, 0.0  ;;  %v1130_v51 = vmul.f32 %v7766_v38, %v1062_v43 }
 0x1d2   :  { %v7495_v52 = vpop.f32.mrf.mxu1  ;;  %1235 = vadd.xlane.f32.xlu1 %v1234_v50 }
 0x1d3   :  { %v1065_v53 = vmax.f32 %v871_v49, 0.0  ;;  %v882_v54 = vadd.f32 %v7495_v52, %v7760_v8  ;;  %v1135_v56 = vmul.f32 %v7766_v38, %v1067_v48  ;;  %v1228_v60 = vsel %vm158_vm0, %v1130_v51, 0.0 }
 0x1d4   :  { %v873_v57 = vpop.f32.mrf.mxu1  ;;  %1226 = vadd.xlane.f32.xlu0 %v1225_v55 }
 0x1d5   :  { %v1068_v58 = vmax.f32 %v882_v54, 0.0  ;;  %v874_v59 = vadd.f32 %v7760_v8, %v873_v57  ;;  %v1243_v62 = vsel %vm158_vm0, %v1135_v56, 0.0  ;;  %v1133_v2 = vmul.f32 %v7766_v38, %v1065_v53 }
 0x1d6   :  { %v7498_v61 = vpop.f32.mrf.mxu1  ;;  %1229 = vadd.xlane.f32.xlu1 %v1228_v60 }
 0x1d7   :  { %v1066_v63 = vmax.f32 %v874_v59, 0.0  ;;  %v895_v0 = vadd.f32 %v7498_v61, %v7760_v8  ;;  %v1136_v1 = vmul.f32 %v7766_v38, %v1068_v58  ;;  %v1237_v12 = vsel %vm158_vm0, %v1133_v2, 0.0 }
 0x1d8   :  { %v886_v3 = vpop.f32.mrf.mxu1  ;;  %1244 = vadd.xlane.f32.xlu0 %v1243_v62 }
 0x1d9   :  { %v1071_v4 = vmax.f32 %v895_v0, 0.0  ;;  %v887_v5 = vadd.f32 %v7760_v8, %v886_v3  ;;  %v1246_v6 = vsel %vm158_vm0, %v1136_v1, 0.0  ;;  %v1134_v7 = vmul.f32 %v7766_v38, %v1066_v63 }
 0x1da   :  { %v7499_v9 = vpop.f32.mrf.mxu1  ;;  %1247 = vadd.xlane.f32.xlu1 %v1246_v6 }
 0x1db   :  { %v1069_v10 = vmax.f32 %v887_v5, 0.0  ;;  %v898_v11 = vadd.f32 %v7499_v9, %v7760_v8  ;;  %v1139_v13 = vmul.f32 %v7766_v38, %v1071_v4  ;;  %v1240_v17 = vsel %vm158_vm0, %v1134_v7, 0.0 }
 0x1dc   :  { %v889_v14 = vpop.f32.mrf.mxu1  ;;  %1238 = vadd.xlane.f32.xlu0 %v1237_v12 }
 0x1dd   :  { %v1072_v15 = vmax.f32 %v898_v11, 0.0  ;;  %v890_v16 = vadd.f32 %v7760_v8, %v889_v14  ;;  %v1255_v19 = vsel %vm158_vm0, %v1139_v13, 0.0  ;;  %v1137_v23 = vmul.f32 %v7766_v38, %v1069_v10 }
 0x1de   :  { %v7502_v18 = vpop.f32.mrf.mxu1  ;;  %1241 = vadd.xlane.f32.xlu1 %v1240_v17 }
 0x1df   :  { %v1070_v20 = vmax.f32 %v890_v16, 0.0  ;;  %v911_v21 = vadd.f32 %v7502_v18, %v7760_v8  ;;  %v1140_v22 = vmul.f32 %v7766_v38, %v1072_v15  ;;  %v1249_v32 = vsel %vm158_vm0, %v1137_v23, 0.0 }
 0x1e0   :  { %v902_v24 = vpop.f32.mrf.mxu1  ;;  %1256 = vadd.xlane.f32.xlu0 %v1255_v19 }
 0x1e1   :  { %v1075_v25 = vmax.f32 %v911_v21, 0.0  ;;  %v903_v26 = vadd.f32 %v7760_v8, %v902_v24  ;;  %v1258_v27 = vsel %vm158_vm0, %v1140_v22, 0.0  ;;  %v1138_v28 = vmul.f32 %v7766_v38, %v1070_v20 }
 0x1e2   :  { %v7503_v29 = vpop.f32.mrf.mxu1  ;;  %1259 = vadd.xlane.f32.xlu1 %v1258_v27 }
 0x1e3   :  { %v1073_v30 = vmax.f32 %v903_v26, 0.0  ;;  %v914_v31 = vadd.f32 %v7503_v29, %v7760_v8  ;;  %v1143_v33 = vmul.f32 %v7766_v38, %v1075_v25  ;;  %v1252_v37 = vsel %vm158_vm0, %v1138_v28, 0.0 }
 0x1e4   :  { %v905_v34 = vpop.f32.mrf.mxu1  ;;  %1250 = vadd.xlane.f32.xlu0 %v1249_v32 }
 0x1e5   :  { %v1076_v35 = vmax.f32 %v914_v31, 0.0  ;;  %v906_v36 = vadd.f32 %v7760_v8, %v905_v34  ;;  %v1267_v40 = vsel %vm158_vm0, %v1143_v33, 0.0  ;;  %v1141_v44 = vmul.f32 %v7766_v38, %v1073_v30 }
 0x1e6   :  { %v7506_v39 = vpop.f32.mrf.mxu1  ;;  %1253 = vadd.xlane.f32.xlu1 %v1252_v37 }
 0x1e7   :  { %v1074_v41 = vmax.f32 %v906_v36, 0.0  ;;  %v927_v42 = vadd.f32 %v7506_v39, %v7760_v8  ;;  %v1144_v43 = vmul.f32 %v7766_v38, %v1076_v35  ;;  %v1261_v53 = vsel %vm158_vm0, %v1141_v44, 0.0 }
 0x1e8   :  { %v918_v45 = vpop.f32.mrf.mxu1  ;;  %1268 = vadd.xlane.f32.xlu0 %v1267_v40 }
 0x1e9   :  { %v1079_v46 = vmax.f32 %v927_v42, 0.0  ;;  %v919_v47 = vadd.f32 %v7760_v8, %v918_v45  ;;  %v1270_v48 = vsel %vm158_vm0, %v1144_v43, 0.0  ;;  %v1142_v49 = vmul.f32 %v7766_v38, %v1074_v41 }
 0x1ea   :  { %v7507_v50 = vpop.f32.mrf.mxu1  ;;  %1271 = vadd.xlane.f32.xlu1 %v1270_v48 }
 0x1eb   :  { %v1077_v51 = vmax.f32 %v919_v47, 0.0  ;;  %v930_v52 = vadd.f32 %v7507_v50, %v7760_v8  ;;  %v1147_v54 = vmul.f32 %v7766_v38, %v1079_v46  ;;  %v1264_v58 = vsel %vm158_vm0, %v1142_v49, 0.0 }
 0x1ec   :  { %v921_v55 = vpop.f32.mrf.mxu1  ;;  %1262 = vadd.xlane.f32.xlu0 %v1261_v53 }
 0x1ed   :  { %v1080_v56 = vmax.f32 %v930_v52, 0.0  ;;  %v922_v57 = vadd.f32 %v7760_v8, %v921_v55  ;;  %v1279_v60 = vsel %vm158_vm0, %v1147_v54, 0.0  ;;  %v1145_v0 = vmul.f32 %v7766_v38, %v1077_v51 }
 0x1ee   :  { %v7510_v59 = vpop.f32.mrf.mxu1  ;;  %1265 = vadd.xlane.f32.xlu1 %v1264_v58 }
 0x1ef   :  { %v1078_v61 = vmax.f32 %v922_v57, 0.0  ;;  %v943_v62 = vadd.f32 %v7510_v59, %v7760_v8  ;;  %v1148_v63 = vmul.f32 %v7766_v38, %v1080_v56  ;;  %v1273_v10 = vsel %vm158_vm0, %v1145_v0, 0.0 }
 0x1f0   :  { %v934_v1 = vpop.f32.mrf.mxu1  ;;  %1280 = vadd.xlane.f32.xlu0 %v1279_v60 }
 0x1f1   :  { %v1083_v2 = vmax.f32 %v943_v62, 0.0  ;;  %v935_v3 = vadd.f32 %v7760_v8, %v934_v1  ;;  %v1282_v4 = vsel %vm158_vm0, %v1148_v63, 0.0  ;;  %v1146_v5 = vmul.f32 %v7766_v38, %v1078_v61 }
 0x1f2   :  { %v7511_v6 = vpop.f32.mrf.mxu1  ;;  %1283 = vadd.xlane.f32.xlu1 %v1282_v4 }
 0x1f3   :  { %v1081_v7 = vmax.f32 %v935_v3, 0.0  ;;  %v946_v9 = vadd.f32 %v7511_v6, %v7760_v8  ;;  %v1151_v11 = vmul.f32 %v7766_v38, %v1083_v2  ;;  %v1276_v15 = vsel %vm158_vm0, %v1146_v5, 0.0 }
 0x1f4   :  { %v937_v12 = vpop.f32.mrf.mxu1  ;;  %1274 = vadd.xlane.f32.xlu0 %v1273_v10 }
 0x1f5   :  { %v1084_v13 = vmax.f32 %v946_v9, 0.0  ;;  %v938_v14 = vadd.f32 %v7760_v8, %v937_v12  ;;  %v1291_v17 = vsel %vm158_vm0, %v1151_v11, 0.0  ;;  %v1149_v21 = vmul.f32 %v7766_v38, %v1081_v7 }
 0x1f6   :  { %v7514_v16 = vpop.f32.mrf.mxu1  ;;  %1277 = vadd.xlane.f32.xlu1 %v1276_v15 }
 0x1f7   :  { %v1082_v18 = vmax.f32 %v938_v14, 0.0  ;;  %v959_v19 = vadd.f32 %v7514_v16, %v7760_v8  ;;  %v1152_v20 = vmul.f32 %v7766_v38, %v1084_v13  ;;  %v1285_v30 = vsel %vm158_vm0, %v1149_v21, 0.0 }
 0x1f8   :  { %v950_v22 = vpop.f32.mrf.mxu1  ;;  %1292 = vadd.xlane.f32.xlu0 %v1291_v17 }
 0x1f9   :  { %v1087_v23 = vmax.f32 %v959_v19, 0.0  ;;  %v951_v24 = vadd.f32 %v7760_v8, %v950_v22  ;;  %v1294_v25 = vsel %vm158_vm0, %v1152_v20, 0.0  ;;  %v1150_v26 = vmul.f32 %v7766_v38, %v1082_v18 }
 0x1fa   :  { %v7515_v27 = vpop.f32.mrf.mxu1  ;;  %1295 = vadd.xlane.f32.xlu1 %v1294_v25 }
 0x1fb   :  { %v1085_v28 = vmax.f32 %v951_v24, 0.0  ;;  %v962_v29 = vadd.f32 %v7515_v27, %v7760_v8  ;;  %v1155_v31 = vmul.f32 %v7766_v38, %v1087_v23  ;;  %v1288_v35 = vsel %vm158_vm0, %v1150_v26, 0.0 }
 0x1fc   :  { %v953_v32 = vpop.f32.mrf.mxu1  ;;  %1286 = vadd.xlane.f32.xlu0 %v1285_v30 }
 0x1fd   :  { %v1088_v33 = vmax.f32 %v962_v29, 0.0  ;;  %v954_v34 = vadd.f32 %v7760_v8, %v953_v32  ;;  %v1303_v37 = vsel %vm158_vm0, %v1155_v31, 0.0  ;;  %v1153_v42 = vmul.f32 %v7766_v38, %v1085_v28 }
 0x1fe   :  { %v7518_v36 = vpop.f32.mrf.mxu1  ;;  %1289 = vadd.xlane.f32.xlu1 %v1288_v35 }
 0x1ff   :  { %v1086_v39 = vmax.f32 %v954_v34, 0.0  ;;  %v975_v40 = vadd.f32 %v7518_v36, %v7760_v8  ;;  %v1156_v41 = vmul.f32 %v7766_v38, %v1088_v33  ;;  %v1297_v51 = vsel %vm158_vm0, %v1153_v42, 0.0 }
 0x200   :  { %v966_v43 = vpop.f32.mrf.mxu1  ;;  %1304 = vadd.xlane.f32.xlu0 %v1303_v37 }
 0x201   :  { %v1091_v44 = vmax.f32 %v975_v40, 0.0  ;;  %v967_v45 = vadd.f32 %v7760_v8, %v966_v43  ;;  %v1306_v46 = vsel %vm158_vm0, %v1156_v41, 0.0  ;;  %v1154_v47 = vmul.f32 %v7766_v38, %v1086_v39 }
 0x202   :  { %v7519_v48 = vpop.f32.mrf.mxu1  ;;  %1307 = vadd.xlane.f32.xlu1 %v1306_v46 }
 0x203   :  { %v1089_v49 = vmax.f32 %v967_v45, 0.0  ;;  %v978_v50 = vadd.f32 %v7519_v48, %v7760_v8  ;;  %v1159_v52 = vmul.f32 %v7766_v38, %v1091_v44  ;;  %v1300_v56 = vsel %vm158_vm0, %v1154_v47, 0.0 }
 0x204   :  { %v969_v53 = vpop.f32.mrf.mxu1  ;;  %1298 = vadd.xlane.f32.xlu0 %v1297_v51 }
 0x205   :  { %v1092_v54 = vmax.f32 %v978_v50, 0.0  ;;  %v970_v55 = vadd.f32 %v7760_v8, %v969_v53  ;;  %v1315_v58 = vsel %vm158_vm0, %v1159_v52, 0.0  ;;  %v1157_v62 = vmul.f32 %v7766_v38, %v1089_v49 }
 0x206   :  { %v7522_v57 = vpop.f32.mrf.mxu1  ;;  %1301 = vadd.xlane.f32.xlu1 %v1300_v56 }
 0x207   :  { %v1090_v59 = vmax.f32 %v970_v55, 0.0  ;;  %v991_v60 = vadd.f32 %v7522_v57, %v7760_v8  ;;  %v1160_v61 = vmul.f32 %v7766_v38, %v1092_v54  ;;  %v1309_v7 = vsel %vm158_vm0, %v1157_v62, 0.0 }
 0x208   :  { %v982_v63 = vpop.f32.mrf.mxu1  ;;  %1316 = vadd.xlane.f32.xlu0 %v1315_v58 }
 0x209   :  { %v1095_v0 = vmax.f32 %v991_v60, 0.0  ;;  %v983_v1 = vadd.f32 %v7760_v8, %v982_v63  ;;  %v1318_v2 = vsel %vm158_vm0, %v1160_v61, 0.0  ;;  %v1158_v3 = vmul.f32 %v7766_v38, %v1090_v59 }
 0x20a   :  { %v7523_v4 = vpop.f32.mrf.mxu1  ;;  %1319 = vadd.xlane.f32.xlu1 %v1318_v2 }
 0x20b   :  { %v1093_v5 = vmax.f32 %v983_v1, 0.0  ;;  %v994_v6 = vadd.f32 %v7523_v4, %v7760_v8  ;;  %v1163_v9 = vmul.f32 %v7766_v38, %v1095_v0  ;;  %v1312_v13 = vsel %vm158_vm0, %v1158_v3, 0.0 }
 0x20c   :  { %v985_v10 = vpop.f32.mrf.mxu1  ;;  %1310 = vadd.xlane.f32.xlu0 %v1309_v7 }
 0x20d   :  { %v1096_v11 = vmax.f32 %v994_v6, 0.0  ;;  %v986_v12 = vadd.f32 %v7760_v8, %v985_v10  ;;  %v1327_v15 = vsel %vm158_vm0, %v1163_v9, 0.0  ;;  %v1161_v19 = vmul.f32 %v7766_v38, %v1093_v5 }
 0x20e   :  { %v7526_v14 = vpop.f32.mrf.mxu1  ;;  %1313 = vadd.xlane.f32.xlu1 %v1312_v13 }
 0x20f   :  { %v1094_v16 = vmax.f32 %v986_v12, 0.0  ;;  %v1007_v17 = vadd.f32 %v7526_v14, %v7760_v8  ;;  %v1164_v18 = vmul.f32 %v7766_v38, %v1096_v11  ;;  %v1321_v28 = vsel %vm158_vm0, %v1161_v19, 0.0 }
 0x210   :  { %v998_v20 = vpop.f32.mrf.mxu1  ;;  %1328 = vadd.xlane.f32.xlu0 %v1327_v15  ;;  %v9621_v19 = vlaneseq }
 0x211   :  { %v1099_v21 = vmax.f32 %v1007_v17, 0.0  ;;  %v999_v22 = vadd.f32 %v7760_v8, %v998_v20  ;;  %v1330_v23 = vsel %vm158_vm0, %v1164_v18, 0.0  ;;  %v1162_v24 = vmul.f32 %v7766_v38, %v1094_v16 }
 0x212   :  { %v7527_v25 = vpop.f32.mrf.mxu1  ;;  %1331 = vadd.xlane.f32.xlu1 %v1330_v23  ;;  %v7573_v20 = vmov 1966171168   ;;  %v7965_v23 = vstv %s9619_s5 }
 0x213   :  { %v1097_v26 = vmax.f32 %v999_v22, 0.0  ;;  %v1010_v27 = vadd.f32 %v7527_v25, %v7760_v8  ;;  %v1167_v29 = vmul.f32 %v7766_v38, %v1099_v21  ;;  %v1324_v33 = vsel %vm158_vm0, %v1162_v24, 0.0 }
 0x214   :  { %v1001_v30 = vpop.f32.mrf.mxu1  ;;  %1322 = vadd.xlane.f32.xlu0 %v1321_v28  ;;  %v3554_v21 = vunpack.c.l.s4 %v7573_v20  ;;  %v7960_v22 = vshrl.u32 %v9621_v19, 7 }
 0x215   :  { %v1100_v31 = vmax.f32 %v1010_v27, 0.0  ;;  %v1002_v32 = vadd.f32 %v7760_v8, %v1001_v30  ;;  %v1339_v35 = vsel %vm158_vm0, %v1167_v29, 0.0  ;;  %v1165_v40 = vmul.f32 %v7766_v38, %v1097_v26 }
 0x216   :  { %v7530_v34 = vpop.f32.mrf.mxu1  ;;  %1325 = vadd.xlane.f32.xlu1 %v1324_v33  ;;  %v3555_v24 = vunpack.c.0.s8 %v3554_v21  ;;  %v7971_v25 = vsub.s32 1, %v7960_v22  ;;  %v7974_v26 = vsub.s32 2, %v7960_v22  ;;  %v7977_v28 = vsub.s32 3, %v7960_v22 }
 0x217   :  { %v1098_v36 = vmax.f32 %v1002_v32, 0.0  ;;  %v1023_v37 = vadd.f32 %v7530_v34, %v7760_v8  ;;  %v1168_v39 = vmul.f32 %v7766_v38, %v1100_v31  ;;  %v1333_v49 = vsel %vm158_vm0, %v1165_v40, 0.0 }
 0x218   :  { %v1014_v41 = vpop.f32.mrf.mxu1  ;;  %1340 = vadd.xlane.f32.xlu0 %v1339_v35  ;;  %v7980_v29 = vsub.s32 4, %v7960_v22  ;;  %v7983_v30 = vsub.s32 5, %v7960_v22  ;;  %v7986_v31 = vsub.s32 6, %v7960_v22  ;;  %v7990_v33 = vsub.s32 7, %v7960_v22 }
 0x219   :  { %v1103_v42 = vmax.f32 %v1023_v37, 0.0  ;;  %v1015_v43 = vadd.f32 %v7760_v8, %v1014_v41  ;;  %v1342_v44 = vsel %vm158_vm0, %v1168_v39, 0.0  ;;  %v1166_v45 = vmul.f32 %v7766_v38, %v1098_v36 }
 0x21a   :  { %v7531_v46 = vpop.f32.mrf.mxu1  ;;  %1343 = vadd.xlane.f32.xlu1 %v1342_v44  ;;  %v7993_v35 = vsub.s32 %v3555_v24, %v7960_v22 }
 0x21b   :  { %v1101_v47 = vmax.f32 %v1015_v43, 0.0  ;;  %v1026_v48 = vadd.f32 %v7531_v46, %v7760_v8  ;;  %v1171_v50 = vmul.f32 %v7766_v38, %v1103_v42  ;;  %v1336_v54 = vsel %vm158_vm0, %v1166_v45, 0.0 }
 0x21c   :  { %v1017_v51 = vpop.f32.mrf.mxu1  ;;  %1334 = vadd.xlane.f32.xlu0 %v1333_v49  ;;  %9624 = vst [vmem:[#allocation6_spill] sm:$0xff] %v7993_v35 }
 0x21d   :  { %v1104_v52 = vmax.f32 %v1026_v48, 0.0  ;;  %v1018_v53 = vadd.f32 %v7760_v8, %v1017_v51  ;;  %v1351_v56 = vsel %vm158_vm0, %v1171_v50, 0.0  ;;  %v1169_v60 = vmul.f32 %v7766_v38, %v1101_v47 }
 0x21e   :  { %v7534_v55 = vpop.f32.mrf.mxu1  ;;  %1337 = vadd.xlane.f32.xlu1 %v1336_v54 }
 0x21f   :  { %v1102_v57 = vmax.f32 %v1018_v53, 0.0  ;;  %v1039_v58 = vadd.f32 %v7534_v55, %v7760_v8  ;;  %v1172_v59 = vmul.f32 %v7766_v38, %v1104_v52  ;;  %v1345_v5 = vsel %vm158_vm0, %v1169_v60, 0.0 }
 0x220   :  { %v1030_v61 = vpop.f32.mrf.mxu1  ;;  %1352 = vadd.xlane.f32.xlu0 %v1351_v56 }
 0x221   :  { %v1107_v62 = vmax.f32 %v1039_v58, 0.0  ;;  %v1031_v63 = vadd.f32 %v7760_v8, %v1030_v61  ;;  %v1354_v0 = vsel %vm158_vm0, %v1172_v59, 0.0  ;;  %v1170_v1 = vmul.f32 %v7766_v38, %v1102_v57 }
 0x222   :  { %v7535_v2 = vpop.f32.mrf.mxu1  ;;  %1355 = vadd.xlane.f32.xlu1 %v1354_v0 }
 0x223   :  { %v1105_v3 = vmax.f32 %v1031_v63, 0.0  ;;  %v1042_v4 = vadd.f32 %v7535_v2, %v7760_v8  ;;  %v1175_v6 = vmul.f32 %v7766_v38, %v1107_v62  ;;  %v1348_v11 = vsel %vm158_vm0, %v1170_v1, 0.0 }
 0x224   :  { %v1033_v7 = vpop.f32.mrf.mxu1  ;;  %1346 = vadd.xlane.f32.xlu0 %v1345_v5 }
 0x225   :  { %v1108_v9 = vmax.f32 %v1042_v4, 0.0  ;;  %v1034_v10 = vadd.f32 %v7760_v8, %v1033_v7  ;;  %v1363_v12 = vsel %vm158_vm0, %v1175_v6, 0.0  ;;  %v1173_v15 = vmul.f32 %v7766_v38, %v1105_v3 }
 0x226   :  { %1349 = vadd.xlane.f32.xlu1 %v1348_v11 }
 0x227   :  { %v1106_v13 = vmax.f32 %v1034_v10, 0.0  ;;  %v1176_v14 = vmul.f32 %v7766_v38, %v1108_v9  ;;  %v1357_v18 = vsel %vm158_vm0, %v1173_v15, 0.0 }
 0x228   :  { %1364 = vadd.xlane.f32.xlu0 %v1363_v12 }
 0x229   :  { %v1366_v16 = vsel %vm158_vm0, %v1176_v14, 0.0  ;;  %v1174_v17 = vmul.f32 %v7766_v38, %v1106_v13  ;;  %v7968_v38 = vsub.s32 0, %v7960_v22 }
 0x22a   :  { %1367 = vadd.xlane.f32.xlu1 %v1366_v16 }
 0x22b   :  { %v1360_v8 = vsel %vm158_vm0, %v1174_v17, 0.0 }
 0x22c   :  { %1358 = vadd.xlane.f32.xlu0 %v1357_v18 }
 0x22e   :  { %1361 = vadd.xlane.f32.xlu1 %v1360_v8 }
 0x237   :  { %v1185_v27 = vpop.xlane.xlu1 %1184 }
 0x238   :  { %v1373_v32 = vadd.f32 %v7965_v23, %v1185_v27 }
 0x239   :  { %v1179_v34 = vpop.xlane.xlu0 %1178 }
 0x23a   :  { %v1371_v36 = vadd.f32 %v7965_v23, %v1179_v34  ;;  %v1568_v37 = vrot.slane %v1373_v32, %v7968_v38  ;;  %v1572_v39 = vrot.slane %v1373_v32, %v7971_v25  ;;  %v1576_v40 = vrot.slane %v1373_v32, %v7974_v26 }
 0x23b   :  { %v1188_v41 = vpop.xlane.xlu1 %1187  ;;  %v1580_v42 = vrot.slane %v1373_v32, %v7977_v28  ;;  %v1584_v43 = vrot.slane %v1373_v32, %v7980_v29  ;;  %v1588_v44 = vrot.slane %v1373_v32, %v7983_v30  ;;  %v1592_v45 = vrot.slane %v1373_v32, %v7986_v31 }
 0x23c   :  { %v1596_v46 = vrot.slane %v1373_v32, %v7990_v33  ;;  %v3647_v47 = vcombine.low %v1568_v37, %v1572_v39  ;;  %v1504_v48 = vrot.slane %v1371_v36, %v7968_v38  ;;  %v1508_v51 = vrot.slane %v1371_v36, %v7971_v25 }
 0x23d   :  { %v3648_v49 = vcombine.low %v1576_v40, %v1580_v42  ;;  %v3649_v50 = vcombine.low %v1584_v43, %v1588_v44  ;;  %v1512_v52 = vrot.slane %v1371_v36, %v7974_v26  ;;  %v1374_v53 = vadd.f32 %v7965_v23, %v1188_v41  ;;  %v1182_v1 = vpop.xlane.xlu0 %1181 }
 0x23e   :  { %v3650_v54 = vcombine.low %v1592_v45, %v1596_v46  ;;  %v3657_v55 = vrot.slane %v3647_v47, %v7993_v35  ;;  %v1516_v56 = vrot.slane %v1371_v36, %v7977_v28  ;;  %v1520_v59 = vrot.slane %v1371_v36, %v7980_v29 }
 0x23f   :  { %v3664_v57 = vrot.slane %v3648_v49, %v7993_v35  ;;  %v3671_v58 = vrot.slane %v3649_v50, %v7993_v35  ;;  %v1524_v60 = vrot.slane %v1371_v36, %v7983_v30  ;;  %v1528_v62 = vrot.slane %v1371_v36, %v7986_v31 }
 0x240   :  { %v3678_v61 = vrot.slane %v3650_v54, %v7993_v35  ;;  %v1532_v63 = vrot.slane %v1371_v36, %v7990_v33  ;;  %v3549_v0 = vcombine.low %v1504_v48, %v1508_v51  ;;  %v3550_v3 = vcombine.low %v1512_v52, %v1516_v56 }
 0x241   :  { %v3679_v2 = vcombine.low %v3657_v55, %v3664_v57  ;;  %v3551_v4 = vcombine.low %v1520_v59, %v1524_v60  ;;  %v1600_v9 = vrot.slane %v1374_v53, %v7968_v38  ;;  %v1604_v13 = vrot.slane %v1374_v53, %v7971_v25  ;;  %v1197_v36 = vpop.xlane.xlu0 %1196 }
 0x242   :  { %v3680_v5 = vcombine.low %v3671_v58, %v3678_v61  ;;  %v3552_v6 = vcombine.low %v1528_v62, %v1532_v63  ;;  %v3559_v7 = vrot.slane %v3549_v0, %v7993_v35  ;;  %v3566_v11 = vrot.slane %v3550_v3, %v7993_v35 }
 0x243   :  { %v3687_v10 = vrot.slane %v3679_v2, %v7993_v35  ;;  %v3573_v12 = vrot.slane %v3551_v4, %v7993_v35  ;;  %v1372_v14 = vadd.f32 %v7965_v23, %v1182_v1  ;;  %v1608_v17 = vrot.slane %v1374_v53, %v7974_v26  ;;  %v8027_v18 = vpop.xlane.xlu1 %1199 }
 0x244   :  { %v3694_v15 = vrot.slane %v3680_v5, %v7993_v35  ;;  %v3580_v16 = vrot.slane %v3552_v6, %v7993_v35  ;;  %v3581_v8 = vcombine.low %v3559_v7, %v3566_v11  ;;  %v1612_v20 = vrot.slane %v1374_v53, %v7977_v28 }
 0x245   :  { %v1616_v21 = vrot.slane %v1374_v53, %v7980_v29  ;;  %v1620_v24 = vrot.slane %v1374_v53, %v7983_v30  ;;  %v1624_v34 = vrot.slane %v1374_v53, %v7986_v31  ;;  %v1628_v39 = vrot.slane %v1374_v53, %v7990_v33  ;;  %v1191_v61 = vpop.xlane.xlu0 %1190 }
 0x246   :  { %v3695_v27 = vcombine.low %v3687_v10, %v3694_v15  ;;  %v3582_v32 = vcombine.low %v3573_v12, %v3580_v16  ;;  %v3589_v37 = vrot.slane %v3581_v8, %v7993_v35  ;;  %v3696_v40 = vcombine.low %v1600_v9, %v1604_v13 }
 0x247   :  { %v3697_v41 = vcombine.low %v1608_v17, %v1612_v20  ;;  %v3698_v43 = vcombine.low %v1616_v21, %v1620_v24  ;;  %v1536_v44 = vrot.slane %v1372_v14, %v7968_v38  ;;  %v3699_v45 = vcombine.low %v1624_v34, %v1628_v39  ;;  %v8043_v53 = vpop.xlane.xlu1 %1193 }
 0x248   :  { %6692 = vperm.xlu1 %7541, %v3695_v27   ;;  %v3596_v42 = vrot.slane %v3582_v32, %v7993_v35  ;;  %v3706_v46 = vrot.slane %v3696_v40, %v7993_v35  ;;  %v1540_v48 = vrot.slane %v1372_v14, %v7971_v25  ;;  %v1377_v49 = vadd.f32 %v7965_v23, %v1197_v36 }
 0x249   :  { %v3713_v47 = vrot.slane %v3697_v41, %v7993_v35  ;;  %v3720_v51 = vrot.slane %v3698_v43, %v7993_v35  ;;  %v1544_v52 = vrot.slane %v1372_v14, %v7974_v26  ;;  %v3727_v54 = vrot.slane %v3699_v45, %v7993_v35 }
 0x24a   :  { %v3597_v50 = vcombine.low %v3589_v37, %v3596_v42  ;;  %v1548_v56 = vrot.slane %v1372_v14, %v7977_v28  ;;  %v1552_v57 = vrot.slane %v1372_v14, %v7980_v29  ;;  %v1556_v58 = vrot.slane %v1372_v14, %v7983_v30 }
 0x24b   :  { %v3728_v55 = vcombine.low %v3706_v46, %v3713_v47  ;;  %v1560_v59 = vrot.slane %v1372_v14, %v7986_v31  ;;  %v1564_v60 = vrot.slane %v1372_v14, %v7990_v33  ;;  %v3729_v62 = vcombine.low %v3720_v51, %v3727_v54  ;;  %v1212_v15 = vpop.xlane.xlu1 %1211 }
 0x24c   :  { %6686 = vperm.xlu0 %7542, %v3597_v50   ;;  %v3598_v0 = vcombine.low %v1536_v44, %v1540_v48  ;;  %v3599_v1 = vcombine.low %v1544_v52, %v1548_v56  ;;  %v3600_v2 = vcombine.low %v1552_v57, %v1556_v58  ;;  %v1696_v4 = vrot.slane %v1377_v49, %v7968_v38 }
 0x24d   :  { %v3736_v63 = vrot.slane %v3728_v55, %v7993_v35  ;;  %v3601_v3 = vcombine.low %v1560_v59, %v1564_v60  ;;  %v3743_v5 = vrot.slane %v3729_v62, %v7993_v35  ;;  %v1700_v9 = vrot.slane %v1377_v49, %v7971_v25 }
 0x24e   :  { %v3608_v6 = vrot.slane %v3598_v0, %v7993_v35  ;;  %v3615_v7 = vrot.slane %v3599_v1, %v7993_v35  ;;  %v1375_v10 = vadd.f32 %v7965_v23, %v1191_v61  ;;  %v3622_v11 = vrot.slane %v3600_v2, %v7993_v35 }
 0x24f   :  { %v3629_v12 = vrot.slane %v3601_v3, %v7993_v35  ;;  %v1704_v13 = vrot.slane %v1377_v49, %v7974_v26  ;;  %v3744_v14 = vcombine.low %v3736_v63, %v3743_v5  ;;  %v1708_v17 = vrot.slane %v1377_v49, %v7977_v28 }
 0x250   :  { %v3630_v16 = vcombine.low %v3608_v6, %v3615_v7  ;;  %v1712_v8 = vrot.slane %v1377_v49, %v7980_v29  ;;  %v1716_v21 = vrot.slane %v1377_v49, %v7983_v30  ;;  %v1720_v24 = vrot.slane %v1377_v49, %v7986_v31 }
 0x251   :  { %v3631_v20 = vcombine.low %v3622_v11, %v3629_v12  ;;  %6695 = vperm.xlu1 %7541, %v3744_v14   ;;  %v1724_v32 = vrot.slane %v1377_v49, %v7990_v33  ;;  %v3843_v34 = vcombine.low %v1696_v4, %v1700_v9  ;;  %v3844_v36 = vcombine.low %v1704_v13, %v1708_v17  ;;  %v1206_v49 = vpop.xlane.xlu1 %1205 }
 0x252   :  { %v3638_v27 = vrot.slane %v3630_v16, %v7993_v35  ;;  %v3845_v39 = vcombine.low %v1712_v8, %v1716_v21  ;;  %v1632_v40 = vrot.slane %v1375_v10, %v7968_v38  ;;  %v1636_v44 = vrot.slane %v1375_v10, %v7971_v25 }
 0x253   :  { %v3645_v37 = vrot.slane %v3631_v20, %v7993_v35  ;;  %v3846_v41 = vcombine.low %v1720_v24, %v1724_v32  ;;  %v3853_v42 = vrot.slane %v3843_v34, %v7993_v35  ;;  %v3860_v43 = vrot.slane %v3844_v36, %v7993_v35 }
 0x254   :  { %v1382_v45 = vadd.f32 %v7965_v23, %v1212_v15  ;;  %v3867_v47 = vrot.slane %v3845_v39, %v7993_v35  ;;  %v1640_v48 = vrot.slane %v1375_v10, %v7974_v26  ;;  %v1644_v52 = vrot.slane %v1375_v10, %v7977_v28 }
 0x255   :  { %v3646_v46 = vcombine.low %v3638_v27, %v3645_v37  ;;  %v3874_v50 = vrot.slane %v3846_v41, %v7993_v35  ;;  %v3875_v51 = vcombine.low %v3853_v42, %v3860_v43  ;;  %v1648_v54 = vrot.slane %v1375_v10, %v7980_v29  ;;  %v1224_v43 = vpop.xlane.xlu1 %1223 }
 0x256   :  { %v1652_v55 = vrot.slane %v1375_v10, %v7983_v30  ;;  %v1656_v56 = vrot.slane %v1375_v10, %v7986_v31  ;;  %v1660_v57 = vrot.slane %v1375_v10, %v7990_v33  ;;  %v3745_v58 = vcombine.low %v1632_v40, %v1636_v44 }
 0x257   :  { %6689 = vperm.xlu1 %7541, %v3646_v46   ;;  %v1378_v59 = vadd.f32 %v7965_v23, %v8027_v18  ;;  %v3876_v60 = vcombine.low %v3867_v47, %v3874_v50  ;;  %v3883_v61 = vrot.slane %v3875_v51, %v7993_v35  ;;  %v3746_v62 = vcombine.low %v1640_v48, %v1644_v52 }
 0x258   :  { %v8085_v63 = vadd.f32 %v7965_v23, %v1206_v49  ;;  %v3747_v0 = vcombine.low %v1648_v54, %v1652_v55  ;;  %v3748_v1 = vcombine.low %v1656_v56, %v1660_v57  ;;  %v3755_v2 = vrot.slane %v3745_v58, %v7993_v35 }
 0x259   :  { %v3890_v3 = vrot.slane %v3876_v60, %v7993_v35  ;;  %v3762_v4 = vrot.slane %v3746_v62, %v7993_v35  ;;  %v1856_v5 = vrot.slane %v1382_v45, %v7968_v38  ;;  %v1860_v6 = vrot.slane %v1382_v45, %v7971_v25 }
 0x25a   :  { %v3769_v18 = vrot.slane %v3747_v0, %v7993_v35  ;;  %v3776_v7 = vrot.slane %v3748_v1, %v7993_v35  ;;  %v1864_v9 = vrot.slane %v1382_v45, %v7974_v26  ;;  %v1868_v10 = vrot.slane %v1382_v45, %v7977_v28 }
 0x25b   :  { %v3891_v11 = vcombine.low %v3883_v61, %v3890_v3  ;;  %v3777_v12 = vcombine.low %v3755_v2, %v3762_v4  ;;  %v1872_v13 = vrot.slane %v1382_v45, %v7980_v29  ;;  %v1876_v14 = vrot.slane %v1382_v45, %v7983_v30 }
 0x25c   :  { %v3778_v15 = vcombine.low %v3769_v18, %v3776_v7  ;;  %v1880_v16 = vrot.slane %v1382_v45, %v7986_v31  ;;  %v1884_v17 = vrot.slane %v1382_v45, %v7990_v33  ;;  %v4088_v8 = vcombine.low %v1856_v5, %v1860_v6 }
 0x25d   :  { %6704 = vperm.xlu1 %7541, %v3891_v11   ;;  %v3785_v20 = vrot.slane %v3777_v12, %v7993_v35  ;;  %v4089_v21 = vcombine.low %v1864_v9, %v1868_v10  ;;  %v4090_v24 = vcombine.low %v1872_v13, %v1876_v14  ;;  %v1728_v27 = vrot.slane %v1378_v59, %v7968_v38 }
 0x25e   :  { %v3792_v32 = vrot.slane %v3778_v15, %v7993_v35  ;;  %v4091_v34 = vcombine.low %v1880_v16, %v1884_v17  ;;  %v4098_v36 = vrot.slane %v4088_v8, %v7993_v35  ;;  %v1732_v37 = vrot.slane %v1378_v59, %v7971_v25 }
 0x25f   :  { %v4105_v39 = vrot.slane %v4089_v21, %v7993_v35  ;;  %v4112_v40 = vrot.slane %v4090_v24, %v7993_v35  ;;  %v1736_v41 = vrot.slane %v1378_v59, %v7974_v26  ;;  %v1740_v42 = vrot.slane %v1378_v59, %v7977_v28  ;;  %v1209_v24 = vpop.xlane.xlu0 %1208 }
 0x260   :  { %v3793_v44 = vcombine.low %v3785_v20, %v3792_v32  ;;  %v4119_v45 = vrot.slane %v4091_v34, %v7993_v35  ;;  %v1744_v46 = vrot.slane %v1378_v59, %v7980_v29  ;;  %v1748_v47 = vrot.slane %v1378_v59, %v7983_v30 }
 0x261   :  { %v4120_v48 = vcombine.low %v4098_v36, %v4105_v39  ;;  %v1752_v49 = vrot.slane %v1378_v59, %v7986_v31  ;;  %v1756_v50 = vrot.slane %v1378_v59, %v7990_v33  ;;  %v3892_v51 = vcombine.low %v1728_v27, %v1732_v37  ;;  %v1218_v36 = vpop.xlane.xlu1 %1217 }
 0x262   :  { %v1376_v52 = vadd.f32 %v7965_v23, %v8043_v53  ;;  %6698 = vperm.xlu1 %7541, %v3793_v44   ;;  %v4121_v54 = vcombine.low %v4112_v40, %v4119_v45  ;;  %v3893_v55 = vcombine.low %v1736_v41, %v1740_v42  ;;  %v3894_v56 = vcombine.low %v1744_v46, %v1748_v47 }
 0x263   :  { %v8117_v57 = vadd.f32 %v7965_v23, %v1224_v43  ;;  %v4128_v58 = vrot.slane %v4120_v48, %v7993_v35  ;;  %v3895_v60 = vcombine.low %v1752_v49, %v1756_v50  ;;  %v3902_v61 = vrot.slane %v3892_v51, %v7993_v35 }
 0x264   :  { %v4135_v62 = vrot.slane %v4121_v54, %v7993_v35  ;;  %v3909_v59 = vrot.slane %v3893_v55, %v7993_v35  ;;  %v3916_v0 = vrot.slane %v3894_v56, %v7993_v35  ;;  %v1792_v53 = vrot.slane %v8085_v63, %v7968_v38 }
 0x265   :  { %v3923_v1 = vrot.slane %v3895_v60, %v7993_v35  ;;  %v1796_v2 = vrot.slane %v8085_v63, %v7971_v25  ;;  %v1800_v3 = vrot.slane %v8085_v63, %v7974_v26  ;;  %v1804_v4 = vrot.slane %v8085_v63, %v7977_v28 }
 0x266   :  { %v4136_v5 = vcombine.low %v4128_v58, %v4135_v62  ;;  %v3924_v6 = vcombine.low %v3902_v61, %v3909_v59  ;;  %v1808_v18 = vrot.slane %v8085_v63, %v7980_v29  ;;  %v1812_v7 = vrot.slane %v8085_v63, %v7983_v30 }
 0x267   :  { %v3925_v9 = vcombine.low %v3916_v0, %v3923_v1  ;;  %v1816_v10 = vrot.slane %v8085_v63, %v7986_v31  ;;  %v1820_v11 = vrot.slane %v8085_v63, %v7990_v33  ;;  %v3990_v12 = vcombine.low %v1792_v53, %v1796_v2 }
 0x268   :  { %6719 = vperm.xlu0 %7542, %v4136_v5   ;;  %v3932_v13 = vrot.slane %v3924_v6, %v7993_v35  ;;  %v3991_v14 = vcombine.low %v1800_v3, %v1804_v4  ;;  %v3992_v15 = vcombine.low %v1808_v18, %v1812_v7  ;;  %v1664_v16 = vrot.slane %v1376_v52, %v7968_v38 }
 0x269   :  { %v3939_v17 = vrot.slane %v3925_v9, %v7993_v35  ;;  %v3993_v8 = vcombine.low %v1816_v10, %v1820_v11  ;;  %v4000_v20 = vrot.slane %v3990_v12, %v7993_v35  ;;  %v1668_v21 = vrot.slane %v1376_v52, %v7971_v25 }
 0x26a   :  { %v4007_v27 = vrot.slane %v3991_v14, %v7993_v35  ;;  %v4014_v63 = vrot.slane %v3992_v15, %v7993_v35  ;;  %v1672_v32 = vrot.slane %v1376_v52, %v7974_v26  ;;  %v1676_v34 = vrot.slane %v1376_v52, %v7977_v28 }
 0x26b   :  { %v3940_v37 = vcombine.low %v3932_v13, %v3939_v17  ;;  %v4021_v39 = vrot.slane %v3993_v8, %v7993_v35  ;;  %v1680_v40 = vrot.slane %v1376_v52, %v7980_v29  ;;  %v1684_v41 = vrot.slane %v1376_v52, %v7983_v30 }
 0x26c   :  { %v4022_v42 = vcombine.low %v4000_v20, %v4007_v27  ;;  %v1688_v43 = vrot.slane %v1376_v52, %v7986_v31  ;;  %v1692_v44 = vrot.slane %v1376_v52, %v7990_v33  ;;  %v3794_v45 = vcombine.low %v1664_v16, %v1668_v21  ;;  %v1203_v16 = vpop.xlane.xlu0 %1202  ;;  %v1236_v21 = vpop.xlane.xlu1 %1235 }
 0x26d   :  { %v1381_v46 = vadd.f32 %v7965_v23, %v1209_v24  ;;  %6707 = vperm.xlu1 %7541, %v3940_v37   ;;  %v4023_v47 = vcombine.low %v4014_v63, %v4021_v39  ;;  %v3795_v48 = vcombine.low %v1672_v32, %v1676_v34  ;;  %v3796_v49 = vcombine.low %v1680_v40, %v1684_v41 }
 0x26e   :  { %v8157_v50 = vadd.f32 %v7965_v23, %v1218_v36  ;;  %v4030_v51 = vrot.slane %v4022_v42, %v7993_v35  ;;  %v3797_v54 = vcombine.low %v1688_v43, %v1692_v44  ;;  %v3804_v55 = vrot.slane %v3794_v45, %v7993_v35 }
 0x26f   :  { %v4037_v56 = vrot.slane %v4023_v47, %v7993_v35  ;;  %v3811_v58 = vrot.slane %v3795_v48, %v7993_v35  ;;  %v3818_v52 = vrot.slane %v3796_v49, %v7993_v35  ;;  %v1984_v60 = vrot.slane %v8117_v57, %v7968_v38 }
 0x270   :  { %v3825_v61 = vrot.slane %v3797_v54, %v7993_v35  ;;  %v1988_v62 = vrot.slane %v8117_v57, %v7971_v25  ;;  %v1992_v59 = vrot.slane %v8117_v57, %v7974_v26  ;;  %v1996_v0 = vrot.slane %v8117_v57, %v7977_v28 }
 0x271   :  { %v4038_v53 = vcombine.low %v4030_v51, %v4037_v56  ;;  %v3826_v1 = vcombine.low %v3804_v55, %v3811_v58  ;;  %v2000_v2 = vrot.slane %v8117_v57, %v7980_v29  ;;  %v2004_v3 = vrot.slane %v8117_v57, %v7983_v30 }
 0x272   :  { %v3827_v4 = vcombine.low %v3818_v52, %v3825_v61  ;;  %v2008_v5 = vrot.slane %v8117_v57, %v7986_v31  ;;  %v2012_v6 = vrot.slane %v8117_v57, %v7990_v33  ;;  %v4284_v18 = vcombine.low %v1984_v60, %v1988_v62 }
 0x273   :  { %6713 = vperm.xlu0 %7542, %v4038_v53   ;;  %v3834_v7 = vrot.slane %v3826_v1, %v7993_v35  ;;  %v4285_v9 = vcombine.low %v1992_v59, %v1996_v0  ;;  %v4286_v10 = vcombine.low %v2000_v2, %v2004_v3  ;;  %v1824_v11 = vrot.slane %v1381_v46, %v7968_v38 }
 0x274   :  { %v3841_v12 = vrot.slane %v3827_v4, %v7993_v35  ;;  %v4287_v13 = vcombine.low %v2008_v5, %v2012_v6  ;;  %v4294_v14 = vrot.slane %v4284_v18, %v7993_v35  ;;  %v1828_v15 = vrot.slane %v1381_v46, %v7971_v25 }
 0x275   :  { %v4301_v17 = vrot.slane %v4285_v9, %v7993_v35  ;;  %v4308_v57 = vrot.slane %v4286_v10, %v7993_v35  ;;  %v1832_v8 = vrot.slane %v1381_v46, %v7974_v26  ;;  %v1836_v20 = vrot.slane %v1381_v46, %v7977_v28 }
 0x276   :  { %v3842_v24 = vcombine.low %v3834_v7, %v3841_v12  ;;  %v4315_v27 = vrot.slane %v4287_v13, %v7993_v35  ;;  %v1840_v63 = vrot.slane %v1381_v46, %v7980_v29  ;;  %v1844_v32 = vrot.slane %v1381_v46, %v7983_v30 }
 0x277   :  { %v4316_v34 = vcombine.low %v4294_v14, %v4301_v17  ;;  %v1848_v36 = vrot.slane %v1381_v46, %v7986_v31  ;;  %v1852_v37 = vrot.slane %v1381_v46, %v7990_v33  ;;  %v4039_v39 = vcombine.low %v1824_v11, %v1828_v15  ;;  %v1221_v11 = vpop.xlane.xlu0 %1220  ;;  %v1230_v15 = vpop.xlane.xlu1 %1229 }
 0x278   :  { %v1379_v40 = vadd.f32 %v7965_v23, %v1203_v16  ;;  %6701 = vperm.xlu1 %7541, %v3842_v24   ;;  %v4317_v41 = vcombine.low %v4308_v57, %v4315_v27  ;;  %v4040_v42 = vcombine.low %v1832_v8, %v1836_v20  ;;  %v4041_v43 = vcombine.low %v1840_v63, %v1844_v32 }
 0x279   :  { %v8197_v44 = vadd.f32 %v7965_v23, %v1236_v21  ;;  %v4324_v45 = vrot.slane %v4316_v34, %v7993_v35  ;;  %v4042_v47 = vcombine.low %v1848_v36, %v1852_v37  ;;  %v4049_v48 = vrot.slane %v4039_v39, %v7993_v35 }
 0x27a   :  { %v4331_v49 = vrot.slane %v4317_v41, %v7993_v35  ;;  %v4056_v51 = vrot.slane %v4040_v42, %v7993_v35  ;;  %v4063_v46 = vrot.slane %v4041_v43, %v7993_v35  ;;  %v1920_v54 = vrot.slane %v8157_v50, %v7968_v38 }
 0x27b   :  { %v4070_v55 = vrot.slane %v4042_v47, %v7993_v35  ;;  %v1924_v56 = vrot.slane %v8157_v50, %v7971_v25  ;;  %v1928_v58 = vrot.slane %v8157_v50, %v7974_v26  ;;  %v1932_v52 = vrot.slane %v8157_v50, %v7977_v28 }
 0x27c   :  { %v4332_v60 = vcombine.low %v4324_v45, %v4331_v49  ;;  %v4071_v61 = vcombine.low %v4049_v48, %v4056_v51  ;;  %v1936_v62 = vrot.slane %v8157_v50, %v7980_v29  ;;  %v1940_v59 = vrot.slane %v8157_v50, %v7983_v30 }
 0x27d   :  { %v4072_v0 = vcombine.low %v4063_v46, %v4070_v55  ;;  %v1944_v53 = vrot.slane %v8157_v50, %v7986_v31  ;;  %v1948_v1 = vrot.slane %v8157_v50, %v7990_v33  ;;  %v4186_v2 = vcombine.low %v1920_v54, %v1924_v56 }
 0x27e   :  { %6731 = vperm.xlu0 %7542, %v4332_v60   ;;  %v4079_v3 = vrot.slane %v4071_v61, %v7993_v35  ;;  %v4187_v4 = vcombine.low %v1928_v58, %v1932_v52  ;;  %v4188_v5 = vcombine.low %v1936_v62, %v1940_v59  ;;  %v1760_v6 = vrot.slane %v1379_v40, %v7968_v38 }
 0x27f   :  { %v4086_v18 = vrot.slane %v4072_v0, %v7993_v35  ;;  %v4189_v7 = vcombine.low %v1944_v53, %v1948_v1  ;;  %v4196_v9 = vrot.slane %v4186_v2, %v7993_v35  ;;  %v1764_v10 = vrot.slane %v1379_v40, %v7971_v25 }
 0x280   :  { %v4203_v12 = vrot.slane %v4187_v4, %v7993_v35  ;;  %v4210_v50 = vrot.slane %v4188_v5, %v7993_v35  ;;  %v1768_v13 = vrot.slane %v1379_v40, %v7974_v26  ;;  %v1772_v14 = vrot.slane %v1379_v40, %v7977_v28 }
 0x281   :  { %v4087_v16 = vcombine.low %v4079_v3, %v4086_v18  ;;  %v4217_v17 = vrot.slane %v4189_v7, %v7993_v35  ;;  %v1776_v57 = vrot.slane %v1379_v40, %v7980_v29  ;;  %v1780_v8 = vrot.slane %v1379_v40, %v7983_v30 }
 0x282   :  { %v4218_v20 = vcombine.low %v4196_v9, %v4203_v12  ;;  %v1784_v21 = vrot.slane %v1379_v40, %v7986_v31  ;;  %v1788_v24 = vrot.slane %v1379_v40, %v7990_v33  ;;  %v3941_v27 = vcombine.low %v1760_v6, %v1764_v10  ;;  %v1215_v6 = vpop.xlane.xlu0 %1214  ;;  %v1248_v10 = vpop.xlane.xlu1 %1247 }
 0x283   :  { %v1385_v63 = vadd.f32 %v7965_v23, %v1221_v11  ;;  %6716 = vperm.xlu1 %7541, %v4087_v16   ;;  %v4219_v32 = vcombine.low %v4210_v50, %v4217_v17  ;;  %v3942_v34 = vcombine.low %v1768_v13, %v1772_v14  ;;  %v3943_v36 = vcombine.low %v1776_v57, %v1780_v8 }
 0x284   :  { %v8237_v37 = vadd.f32 %v7965_v23, %v1230_v15  ;;  %v4226_v39 = vrot.slane %v4218_v20, %v7993_v35  ;;  %v3944_v41 = vcombine.low %v1784_v21, %v1788_v24  ;;  %v3951_v42 = vrot.slane %v3941_v27, %v7993_v35 }
 0x285   :  { %v4233_v43 = vrot.slane %v4219_v32, %v7993_v35  ;;  %v3958_v45 = vrot.slane %v3942_v34, %v7993_v35  ;;  %v3965_v40 = vrot.slane %v3943_v36, %v7993_v35  ;;  %v2112_v47 = vrot.slane %v8197_v44, %v7968_v38 }
 0x286   :  { %v3972_v48 = vrot.slane %v3944_v41, %v7993_v35  ;;  %v2116_v49 = vrot.slane %v8197_v44, %v7971_v25  ;;  %v2120_v51 = vrot.slane %v8197_v44, %v7974_v26  ;;  %v2124_v46 = vrot.slane %v8197_v44, %v7977_v28 }
 0x287   :  { %v4234_v54 = vcombine.low %v4226_v39, %v4233_v43  ;;  %v3973_v55 = vcombine.low %v3951_v42, %v3958_v45  ;;  %v2128_v56 = vrot.slane %v8197_v44, %v7980_v29  ;;  %v2132_v58 = vrot.slane %v8197_v44, %v7983_v30 }
 0x288   :  { %v3974_v52 = vcombine.low %v3965_v40, %v3972_v48  ;;  %v2136_v60 = vrot.slane %v8197_v44, %v7986_v31  ;;  %v2140_v61 = vrot.slane %v8197_v44, %v7990_v33  ;;  %v4480_v62 = vcombine.low %v2112_v47, %v2116_v49 }
 0x289   :  { %6725 = vperm.xlu0 %7542, %v4234_v54   ;;  %v3981_v59 = vrot.slane %v3973_v55, %v7993_v35  ;;  %v4481_v0 = vcombine.low %v2120_v51, %v2124_v46  ;;  %v4482_v53 = vcombine.low %v2128_v56, %v2132_v58  ;;  %v1952_v1 = vrot.slane %v1385_v63, %v7968_v38 }
 0x28a   :  { %v3988_v2 = vrot.slane %v3974_v52, %v7993_v35  ;;  %v4483_v3 = vcombine.low %v2136_v60, %v2140_v61  ;;  %v4490_v4 = vrot.slane %v4480_v62, %v7993_v35  ;;  %v1956_v5 = vrot.slane %v1385_v63, %v7971_v25 }
 0x28b   :  { %v4497_v18 = vrot.slane %v4481_v0, %v7993_v35  ;;  %v4504_v44 = vrot.slane %v4482_v53, %v7993_v35  ;;  %v1960_v7 = vrot.slane %v1385_v63, %v7974_v26  ;;  %v1964_v9 = vrot.slane %v1385_v63, %v7977_v28 }
 0x28c   :  { %v3989_v11 = vcombine.low %v3981_v59, %v3988_v2  ;;  %v4511_v12 = vrot.slane %v4483_v3, %v7993_v35  ;;  %v1968_v50 = vrot.slane %v1385_v63, %v7980_v29  ;;  %v1972_v13 = vrot.slane %v1385_v63, %v7983_v30 }
 0x28d   :  { %v4512_v14 = vcombine.low %v4490_v4, %v4497_v18  ;;  %v1976_v15 = vrot.slane %v1385_v63, %v7986_v31  ;;  %v1980_v16 = vrot.slane %v1385_v63, %v7990_v33  ;;  %v4235_v17 = vcombine.low %v1952_v1, %v1956_v5  ;;  %v1233_v1 = vpop.xlane.xlu0 %1232  ;;  %v1242_v5 = vpop.xlane.xlu1 %1241 }
 0x28e   :  { %v1383_v57 = vadd.f32 %v7965_v23, %v1215_v6  ;;  %6710 = vperm.xlu1 %7541, %v3989_v11   ;;  %v4513_v8 = vcombine.low %v4504_v44, %v4511_v12  ;;  %v4236_v20 = vcombine.low %v1960_v7, %v1964_v9  ;;  %v4237_v21 = vcombine.low %v1968_v50, %v1972_v13 }
 0x28f   :  { %v8277_v24 = vadd.f32 %v7965_v23, %v1248_v10  ;;  %v4520_v27 = vrot.slane %v4512_v14, %v7993_v35  ;;  %v4238_v32 = vcombine.low %v1976_v15, %v1980_v16  ;;  %v4245_v34 = vrot.slane %v4235_v17, %v7993_v35 }
 0x290   :  { %v4527_v36 = vrot.slane %v4513_v8, %v7993_v35  ;;  %v4252_v39 = vrot.slane %v4236_v20, %v7993_v35  ;;  %v4259_v63 = vrot.slane %v4237_v21, %v7993_v35  ;;  %v2048_v41 = vrot.slane %v8237_v37, %v7968_v38 }
 0x291   :  { %v4266_v42 = vrot.slane %v4238_v32, %v7993_v35  ;;  %v2052_v43 = vrot.slane %v8237_v37, %v7971_v25  ;;  %v2056_v45 = vrot.slane %v8237_v37, %v7974_v26  ;;  %v2060_v40 = vrot.slane %v8237_v37, %v7977_v28 }
 0x292   :  { %v4528_v47 = vcombine.low %v4520_v27, %v4527_v36  ;;  %v4267_v48 = vcombine.low %v4245_v34, %v4252_v39  ;;  %v2064_v49 = vrot.slane %v8237_v37, %v7980_v29  ;;  %v2068_v51 = vrot.slane %v8237_v37, %v7983_v30 }
 0x293   :  { %v4268_v46 = vcombine.low %v4259_v63, %v4266_v42  ;;  %v2072_v54 = vrot.slane %v8237_v37, %v7986_v31  ;;  %v2076_v55 = vrot.slane %v8237_v37, %v7990_v33  ;;  %v4382_v56 = vcombine.low %v2048_v41, %v2052_v43 }
 0x294   :  { %6743 = vperm.xlu0 %7542, %v4528_v47   ;;  %v4275_v58 = vrot.slane %v4267_v48, %v7993_v35  ;;  %v4383_v52 = vcombine.low %v2056_v45, %v2060_v40  ;;  %v4384_v60 = vcombine.low %v2064_v49, %v2068_v51  ;;  %v1888_v61 = vrot.slane %v1383_v57, %v7968_v38 }
 0x295   :  { %v4282_v62 = vrot.slane %v4268_v46, %v7993_v35  ;;  %v4385_v59 = vcombine.low %v2072_v54, %v2076_v55  ;;  %v4392_v0 = vrot.slane %v4382_v56, %v7993_v35  ;;  %v1892_v53 = vrot.slane %v1383_v57, %v7971_v25 }
 0x296   :  { %v4399_v2 = vrot.slane %v4383_v52, %v7993_v35  ;;  %v4406_v37 = vrot.slane %v4384_v60, %v7993_v35  ;;  %v1896_v3 = vrot.slane %v1383_v57, %v7974_v26  ;;  %v1900_v4 = vrot.slane %v1383_v57, %v7977_v28 }
 0x297   :  { %v4283_v6 = vcombine.low %v4275_v58, %v4282_v62  ;;  %v4413_v18 = vrot.slane %v4385_v59, %v7993_v35  ;;  %v1904_v44 = vrot.slane %v1383_v57, %v7980_v29  ;;  %v1908_v7 = vrot.slane %v1383_v57, %v7983_v30 }
 0x298   :  { %v4414_v9 = vcombine.low %v4392_v0, %v4399_v2  ;;  %v1912_v10 = vrot.slane %v1383_v57, %v7986_v31  ;;  %v1916_v11 = vrot.slane %v1383_v57, %v7990_v33  ;;  %v4137_v12 = vcombine.low %v1888_v61, %v1892_v53  ;;  %v1227_v61 = vpop.xlane.xlu0 %1226  ;;  %v1260_v53 = vpop.xlane.xlu1 %1259 }
 0x299   :  { %v1389_v50 = vadd.f32 %v7965_v23, %v1233_v1  ;;  %6728 = vperm.xlu1 %7541, %v4283_v6   ;;  %v4415_v13 = vcombine.low %v4406_v37, %v4413_v18  ;;  %v4138_v14 = vcombine.low %v1896_v3, %v1900_v4  ;;  %v4139_v15 = vcombine.low %v1904_v44, %v1908_v7 }
 0x29a   :  { %v8317_v16 = vadd.f32 %v7965_v23, %v1242_v5  ;;  %v4422_v17 = vrot.slane %v4414_v9, %v7993_v35  ;;  %v4140_v8 = vcombine.low %v1912_v10, %v1916_v11  ;;  %v4147_v20 = vrot.slane %v4137_v12, %v7993_v35 }
 0x29b   :  { %v4429_v21 = vrot.slane %v4415_v13, %v7993_v35  ;;  %v4154_v27 = vrot.slane %v4138_v14, %v7993_v35  ;;  %v4161_v57 = vrot.slane %v4139_v15, %v7993_v35  ;;  %v2240_v32 = vrot.slane %v8277_v24, %v7968_v38 }
 0x29c   :  { %v4168_v34 = vrot.slane %v4140_v8, %v7993_v35  ;;  %v2244_v36 = vrot.slane %v8277_v24, %v7971_v25  ;;  %v2248_v39 = vrot.slane %v8277_v24, %v7974_v26  ;;  %v2252_v63 = vrot.slane %v8277_v24, %v7977_v28 }
 0x29d   :  { %v4430_v41 = vcombine.low %v4422_v17, %v4429_v21  ;;  %v4169_v42 = vcombine.low %v4147_v20, %v4154_v27  ;;  %v2256_v43 = vrot.slane %v8277_v24, %v7980_v29  ;;  %v2260_v45 = vrot.slane %v8277_v24, %v7983_v30 }
 0x29e   :  { %v4170_v40 = vcombine.low %v4161_v57, %v4168_v34  ;;  %v2264_v47 = vrot.slane %v8277_v24, %v7986_v31  ;;  %v2268_v48 = vrot.slane %v8277_v24, %v7990_v33  ;;  %v4676_v49 = vcombine.low %v2240_v32, %v2244_v36 }
 0x29f   :  { %6737 = vperm.xlu0 %7542, %v4430_v41   ;;  %v4177_v51 = vrot.slane %v4169_v42, %v7993_v35  ;;  %v4677_v46 = vcombine.low %v2248_v39, %v2252_v63  ;;  %v4678_v54 = vcombine.low %v2256_v43, %v2260_v45  ;;  %v2080_v55 = vrot.slane %v1389_v50, %v7968_v38 }
 0x2a0   :  { %v4184_v56 = vrot.slane %v4170_v40, %v7993_v35  ;;  %v4679_v58 = vcombine.low %v2264_v47, %v2268_v48  ;;  %v4686_v52 = vrot.slane %v4676_v49, %v7993_v35  ;;  %v2084_v60 = vrot.slane %v1389_v50, %v7971_v25 }
 0x2a1   :  { %v4693_v62 = vrot.slane %v4677_v46, %v7993_v35  ;;  %v4700_v24 = vrot.slane %v4678_v54, %v7993_v35  ;;  %v2088_v59 = vrot.slane %v1389_v50, %v7974_v26  ;;  %v2092_v0 = vrot.slane %v1389_v50, %v7977_v28 }
 0x2a2   :  { %v4185_v1 = vcombine.low %v4177_v51, %v4184_v56  ;;  %v4707_v2 = vrot.slane %v4679_v58, %v7993_v35  ;;  %v2096_v37 = vrot.slane %v1389_v50, %v7980_v29  ;;  %v2100_v3 = vrot.slane %v1389_v50, %v7983_v30 }
 0x2a3   :  { %v4708_v4 = vcombine.low %v4686_v52, %v4693_v62  ;;  %v2104_v5 = vrot.slane %v1389_v50, %v7986_v31  ;;  %v2108_v6 = vrot.slane %v1389_v50, %v7990_v33  ;;  %v4431_v18 = vcombine.low %v2080_v55, %v2084_v60  ;;  %v1245_v55 = vpop.xlane.xlu0 %1244  ;;  %v1254_v60 = vpop.xlane.xlu1 %1253 }
 0x2a4   :  { %v1387_v44 = vadd.f32 %v7965_v23, %v1227_v61  ;;  %6722 = vperm.xlu1 %7541, %v4185_v1   ;;  %v4709_v7 = vcombine.low %v4700_v24, %v4707_v2  ;;  %v4432_v9 = vcombine.low %v2088_v59, %v2092_v0  ;;  %v4433_v10 = vcombine.low %v2096_v37, %v2100_v3 }
 0x2a5   :  { %v8357_v11 = vadd.f32 %v7965_v23, %v1260_v53  ;;  %v4716_v12 = vrot.slane %v4708_v4, %v7993_v35  ;;  %v4434_v13 = vcombine.low %v2104_v5, %v2108_v6  ;;  %v4441_v14 = vrot.slane %v4431_v18, %v7993_v35 }
 0x2a6   :  { %v4723_v15 = vrot.slane %v4709_v7, %v7993_v35  ;;  %v4448_v17 = vrot.slane %v4432_v9, %v7993_v35  ;;  %v4455_v50 = vrot.slane %v4433_v10, %v7993_v35  ;;  %v2176_v8 = vrot.slane %v8317_v16, %v7968_v38 }
 0x2a7   :  { %v4462_v20 = vrot.slane %v4434_v13, %v7993_v35  ;;  %v2180_v21 = vrot.slane %v8317_v16, %v7971_v25  ;;  %v2184_v27 = vrot.slane %v8317_v16, %v7974_v26  ;;  %v2188_v57 = vrot.slane %v8317_v16, %v7977_v28 }
 0x2a8   :  { %v4724_v32 = vcombine.low %v4716_v12, %v4723_v15  ;;  %v4463_v34 = vcombine.low %v4441_v14, %v4448_v17  ;;  %v2192_v36 = vrot.slane %v8317_v16, %v7980_v29  ;;  %v2196_v39 = vrot.slane %v8317_v16, %v7983_v30 }
 0x2a9   :  { %v4464_v63 = vcombine.low %v4455_v50, %v4462_v20  ;;  %v2200_v41 = vrot.slane %v8317_v16, %v7986_v31  ;;  %v2204_v42 = vrot.slane %v8317_v16, %v7990_v33  ;;  %v4578_v43 = vcombine.low %v2176_v8, %v2180_v21 }
 0x2aa   :  { %6755 = vperm.xlu0 %7542, %v4724_v32   ;;  %v4471_v45 = vrot.slane %v4463_v34, %v7993_v35  ;;  %v4579_v40 = vcombine.low %v2184_v27, %v2188_v57  ;;  %v4580_v47 = vcombine.low %v2192_v36, %v2196_v39  ;;  %v2016_v48 = vrot.slane %v1387_v44, %v7968_v38 }
 0x2ab   :  { %v4478_v49 = vrot.slane %v4464_v63, %v7993_v35  ;;  %v4581_v51 = vcombine.low %v2200_v41, %v2204_v42  ;;  %v4588_v46 = vrot.slane %v4578_v43, %v7993_v35  ;;  %v2020_v54 = vrot.slane %v1387_v44, %v7971_v25 }
 0x2ac   :  { %v4595_v56 = vrot.slane %v4579_v40, %v7993_v35  ;;  %v4602_v16 = vrot.slane %v4580_v47, %v7993_v35  ;;  %v2024_v58 = vrot.slane %v1387_v44, %v7974_v26  ;;  %v2028_v52 = vrot.slane %v1387_v44, %v7977_v28 }
 0x2ad   :  { %v4479_v61 = vcombine.low %v4471_v45, %v4478_v49  ;;  %v4609_v62 = vrot.slane %v4581_v51, %v7993_v35  ;;  %v2032_v24 = vrot.slane %v1387_v44, %v7980_v29  ;;  %v2036_v59 = vrot.slane %v1387_v44, %v7983_v30 }
 0x2ae   :  { %v4610_v0 = vcombine.low %v4588_v46, %v4595_v56  ;;  %v2040_v53 = vrot.slane %v1387_v44, %v7986_v31  ;;  %v2044_v1 = vrot.slane %v1387_v44, %v7990_v33  ;;  %v4333_v2 = vcombine.low %v2016_v48, %v2020_v54  ;;  %v1239_v48 = vpop.xlane.xlu0 %1238  ;;  %v1272_v54 = vpop.xlane.xlu1 %1271 }
 0x2af   :  { %v1393_v37 = vadd.f32 %v7965_v23, %v1245_v55  ;;  %6740 = vperm.xlu1 %7541, %v4479_v61   ;;  %v4611_v3 = vcombine.low %v4602_v16, %v4609_v62  ;;  %v4334_v4 = vcombine.low %v2024_v58, %v2028_v52  ;;  %v4335_v5 = vcombine.low %v2032_v24, %v2036_v59 }
 0x2b0   :  { %v8397_v6 = vadd.f32 %v7965_v23, %v1254_v60  ;;  %v4618_v18 = vrot.slane %v4610_v0, %v7993_v35  ;;  %v4336_v7 = vcombine.low %v2040_v53, %v2044_v1  ;;  %v4343_v9 = vrot.slane %v4333_v2, %v7993_v35 }
 0x2b1   :  { %v4625_v10 = vrot.slane %v4611_v3, %v7993_v35  ;;  %v4350_v12 = vrot.slane %v4334_v4, %v7993_v35  ;;  %v4357_v44 = vrot.slane %v4335_v5, %v7993_v35  ;;  %v2368_v13 = vrot.slane %v8357_v11, %v7968_v38 }
 0x2b2   :  { %v4364_v14 = vrot.slane %v4336_v7, %v7993_v35  ;;  %v2372_v15 = vrot.slane %v8357_v11, %v7971_v25  ;;  %v2376_v17 = vrot.slane %v8357_v11, %v7974_v26  ;;  %v2380_v50 = vrot.slane %v8357_v11, %v7977_v28 }
 0x2b3   :  { %v4626_v8 = vcombine.low %v4618_v18, %v4625_v10  ;;  %v4365_v20 = vcombine.low %v4343_v9, %v4350_v12  ;;  %v2384_v21 = vrot.slane %v8357_v11, %v7980_v29  ;;  %v2388_v27 = vrot.slane %v8357_v11, %v7983_v30 }
 0x2b4   :  { %v4366_v57 = vcombine.low %v4357_v44, %v4364_v14  ;;  %v2392_v32 = vrot.slane %v8357_v11, %v7986_v31  ;;  %v2396_v34 = vrot.slane %v8357_v11, %v7990_v33  ;;  %v4872_v36 = vcombine.low %v2368_v13, %v2372_v15 }
 0x2b5   :  { %6749 = vperm.xlu0 %7542, %v4626_v8   ;;  %v4373_v39 = vrot.slane %v4365_v20, %v7993_v35  ;;  %v4873_v63 = vcombine.low %v2376_v17, %v2380_v50  ;;  %v4874_v41 = vcombine.low %v2384_v21, %v2388_v27  ;;  %v2208_v42 = vrot.slane %v1393_v37, %v7968_v38 }
 0x2b6   :  { %v4380_v43 = vrot.slane %v4366_v57, %v7993_v35  ;;  %v4875_v45 = vcombine.low %v2392_v32, %v2396_v34  ;;  %v4882_v40 = vrot.slane %v4872_v36, %v7993_v35  ;;  %v2212_v47 = vrot.slane %v1393_v37, %v7971_v25 }
 0x2b7   :  { %v4889_v49 = vrot.slane %v4873_v63, %v7993_v35  ;;  %v4896_v11 = vrot.slane %v4874_v41, %v7993_v35  ;;  %v2216_v51 = vrot.slane %v1393_v37, %v7974_v26  ;;  %v2220_v46 = vrot.slane %v1393_v37, %v7977_v28 }
 0x2b8   :  { %v4381_v55 = vcombine.low %v4373_v39, %v4380_v43  ;;  %v4903_v56 = vrot.slane %v4875_v45, %v7993_v35  ;;  %v2224_v16 = vrot.slane %v1393_v37, %v7980_v29  ;;  %v2228_v58 = vrot.slane %v1393_v37, %v7983_v30 }
 0x2b9   :  { %v4904_v52 = vcombine.low %v4882_v40, %v4889_v49  ;;  %v2232_v60 = vrot.slane %v1393_v37, %v7986_v31  ;;  %v2236_v61 = vrot.slane %v1393_v37, %v7990_v33  ;;  %v4627_v62 = vcombine.low %v2208_v42, %v2212_v47  ;;  %v1257_v42 = vpop.xlane.xlu0 %1256  ;;  %v1266_v47 = vpop.xlane.xlu1 %1265 }
 0x2ba   :  { %v1391_v24 = vadd.f32 %v7965_v23, %v1239_v48  ;;  %6734 = vperm.xlu1 %7541, %v4381_v55   ;;  %v4905_v59 = vcombine.low %v4896_v11, %v4903_v56  ;;  %v4628_v0 = vcombine.low %v2216_v51, %v2220_v46  ;;  %v4629_v53 = vcombine.low %v2224_v16, %v2228_v58 }
 0x2bb   :  { %v8437_v1 = vadd.f32 %v7965_v23, %v1272_v54  ;;  %v4912_v2 = vrot.slane %v4904_v52, %v7993_v35  ;;  %v4630_v3 = vcombine.low %v2232_v60, %v2236_v61  ;;  %v4637_v4 = vrot.slane %v4627_v62, %v7993_v35 }
 0x2bc   :  { %v4919_v5 = vrot.slane %v4905_v59, %v7993_v35  ;;  %v4644_v18 = vrot.slane %v4628_v0, %v7993_v35  ;;  %v4651_v37 = vrot.slane %v4629_v53, %v7993_v35  ;;  %v2304_v7 = vrot.slane %v8397_v6, %v7968_v38 }
 0x2bd   :  { %v4658_v9 = vrot.slane %v4630_v3, %v7993_v35  ;;  %v2308_v10 = vrot.slane %v8397_v6, %v7971_v25  ;;  %v2312_v12 = vrot.slane %v8397_v6, %v7974_v26  ;;  %v2316_v44 = vrot.slane %v8397_v6, %v7977_v28 }
 0x2be   :  { %v4920_v13 = vcombine.low %v4912_v2, %v4919_v5  ;;  %v4659_v14 = vcombine.low %v4637_v4, %v4644_v18  ;;  %v2320_v15 = vrot.slane %v8397_v6, %v7980_v29  ;;  %v2324_v17 = vrot.slane %v8397_v6, %v7983_v30 }
 0x2bf   :  { %v4660_v50 = vcombine.low %v4651_v37, %v4658_v9  ;;  %v2328_v8 = vrot.slane %v8397_v6, %v7986_v31  ;;  %v2332_v20 = vrot.slane %v8397_v6, %v7990_v33  ;;  %v4774_v21 = vcombine.low %v2304_v7, %v2308_v10 }
 0x2c0   :  { %6767 = vperm.xlu0 %7542, %v4920_v13   ;;  %v4667_v27 = vrot.slane %v4659_v14, %v7993_v35  ;;  %v4775_v57 = vcombine.low %v2312_v12, %v2316_v44  ;;  %v4776_v32 = vcombine.low %v2320_v15, %v2324_v17  ;;  %v2144_v34 = vrot.slane %v1391_v24, %v7968_v38 }
 0x2c1   :  { %v4674_v36 = vrot.slane %v4660_v50, %v7993_v35  ;;  %v4777_v39 = vcombine.low %v2328_v8, %v2332_v20  ;;  %v4784_v63 = vrot.slane %v4774_v21, %v7993_v35  ;;  %v2148_v41 = vrot.slane %v1391_v24, %v7971_v25 }
 0x2c2   :  { %v4791_v43 = vrot.slane %v4775_v57, %v7993_v35  ;;  %v4798_v6 = vrot.slane %v4776_v32, %v7993_v35  ;;  %v2152_v45 = vrot.slane %v1391_v24, %v7974_v26  ;;  %v2156_v40 = vrot.slane %v1391_v24, %v7977_v28 }
 0x2c3   :  { %v4675_v48 = vcombine.low %v4667_v27, %v4674_v36  ;;  %v4805_v49 = vrot.slane %v4777_v39, %v7993_v35  ;;  %v2160_v11 = vrot.slane %v1391_v24, %v7980_v29  ;;  %v2164_v51 = vrot.slane %v1391_v24, %v7983_v30 }
 0x2c4   :  { %v4806_v46 = vcombine.low %v4784_v63, %v4791_v43  ;;  %v2168_v54 = vrot.slane %v1391_v24, %v7986_v31  ;;  %v2172_v55 = vrot.slane %v1391_v24, %v7990_v33  ;;  %v4529_v56 = vcombine.low %v2144_v34, %v2148_v41  ;;  %v1251_v34 = vpop.xlane.xlu0 %1250  ;;  %v1284_v41 = vpop.xlane.xlu1 %1283 }
 0x2c5   :  { %v1397_v16 = vadd.f32 %v7965_v23, %v1257_v42  ;;  %6752 = vperm.xlu1 %7541, %v4675_v48   ;;  %v4807_v58 = vcombine.low %v4798_v6, %v4805_v49  ;;  %v4530_v52 = vcombine.low %v2152_v45, %v2156_v40  ;;  %v4531_v60 = vcombine.low %v2160_v11, %v2164_v51 }
 0x2c6   :  { %v8477_v61 = vadd.f32 %v7965_v23, %v1266_v47  ;;  %v4814_v62 = vrot.slane %v4806_v46, %v7993_v35  ;;  %v4532_v59 = vcombine.low %v2168_v54, %v2172_v55  ;;  %v4539_v0 = vrot.slane %v4529_v56, %v7993_v35 }
 0x2c7   :  { %v4821_v53 = vrot.slane %v4807_v58, %v7993_v35  ;;  %v4546_v2 = vrot.slane %v4530_v52, %v7993_v35  ;;  %v4553_v24 = vrot.slane %v4531_v60, %v7993_v35  ;;  %v2496_v3 = vrot.slane %v8437_v1, %v7968_v38 }
 0x2c8   :  { %v4560_v4 = vrot.slane %v4532_v59, %v7993_v35  ;;  %v2500_v5 = vrot.slane %v8437_v1, %v7971_v25  ;;  %v2504_v18 = vrot.slane %v8437_v1, %v7974_v26  ;;  %v2508_v37 = vrot.slane %v8437_v1, %v7977_v28 }
 0x2c9   :  { %v4822_v7 = vcombine.low %v4814_v62, %v4821_v53  ;;  %v4561_v9 = vcombine.low %v4539_v0, %v4546_v2  ;;  %v2512_v10 = vrot.slane %v8437_v1, %v7980_v29  ;;  %v2516_v12 = vrot.slane %v8437_v1, %v7983_v30 }
 0x2ca   :  { %v4562_v44 = vcombine.low %v4553_v24, %v4560_v4  ;;  %v2520_v13 = vrot.slane %v8437_v1, %v7986_v31  ;;  %v2524_v14 = vrot.slane %v8437_v1, %v7990_v33  ;;  %v5068_v15 = vcombine.low %v2496_v3, %v2500_v5 }
 0x2cb   :  { %6761 = vperm.xlu0 %7542, %v4822_v7   ;;  %v4569_v17 = vrot.slane %v4561_v9, %v7993_v35  ;;  %v5069_v50 = vcombine.low %v2504_v18, %v2508_v37  ;;  %v5070_v8 = vcombine.low %v2512_v10, %v2516_v12  ;;  %v2336_v20 = vrot.slane %v1397_v16, %v7968_v38 }
 0x2cc   :  { %v4576_v21 = vrot.slane %v4562_v44, %v7993_v35  ;;  %v5071_v27 = vcombine.low %v2520_v13, %v2524_v14  ;;  %v5078_v57 = vrot.slane %v5068_v15, %v7993_v35  ;;  %v2340_v32 = vrot.slane %v1397_v16, %v7971_v25 }
 0x2cd   :  { %v5085_v36 = vrot.slane %v5069_v50, %v7993_v35  ;;  %v5092_v1 = vrot.slane %v5070_v8, %v7993_v35  ;;  %v2344_v39 = vrot.slane %v1397_v16, %v7974_v26  ;;  %v2348_v63 = vrot.slane %v1397_v16, %v7977_v28 }
 0x2ce   :  { %v4577_v42 = vcombine.low %v4569_v17, %v4576_v21  ;;  %v5099_v43 = vrot.slane %v5071_v27, %v7993_v35  ;;  %v2352_v6 = vrot.slane %v1397_v16, %v7980_v29  ;;  %v2356_v45 = vrot.slane %v1397_v16, %v7983_v30 }
 0x2cf   :  { %v5100_v40 = vcombine.low %v5078_v57, %v5085_v36  ;;  %v2360_v47 = vrot.slane %v1397_v16, %v7986_v31  ;;  %v2364_v48 = vrot.slane %v1397_v16, %v7990_v33  ;;  %v4823_v49 = vcombine.low %v2336_v20, %v2340_v32  ;;  %v1269_v20 = vpop.xlane.xlu0 %1268  ;;  %v1278_v32 = vpop.xlane.xlu1 %1277 }
 0x2d0   :  { %v1395_v11 = vadd.f32 %v7965_v23, %v1251_v34  ;;  %6746 = vperm.xlu1 %7541, %v4577_v42   ;;  %v5101_v51 = vcombine.low %v5092_v1, %v5099_v43  ;;  %v4824_v46 = vcombine.low %v2344_v39, %v2348_v63  ;;  %v4825_v54 = vcombine.low %v2352_v6, %v2356_v45 }
 0x2d1   :  { %v8517_v55 = vadd.f32 %v7965_v23, %v1284_v41  ;;  %v5108_v56 = vrot.slane %v5100_v40, %v7993_v35  ;;  %v4826_v58 = vcombine.low %v2360_v47, %v2364_v48  ;;  %v4833_v52 = vrot.slane %v4823_v49, %v7993_v35 }
 0x2d2   :  { %v5115_v60 = vrot.slane %v5101_v51, %v7993_v35  ;;  %v4840_v62 = vrot.slane %v4824_v46, %v7993_v35  ;;  %v4847_v16 = vrot.slane %v4825_v54, %v7993_v35  ;;  %v2432_v59 = vrot.slane %v8477_v61, %v7968_v38 }
 0x2d3   :  { %v4854_v0 = vrot.slane %v4826_v58, %v7993_v35  ;;  %v2436_v53 = vrot.slane %v8477_v61, %v7971_v25  ;;  %v2440_v2 = vrot.slane %v8477_v61, %v7974_v26  ;;  %v2444_v24 = vrot.slane %v8477_v61, %v7977_v28 }
 0x2d4   :  { %v5116_v3 = vcombine.low %v5108_v56, %v5115_v60  ;;  %v4855_v4 = vcombine.low %v4833_v52, %v4840_v62  ;;  %v2448_v5 = vrot.slane %v8477_v61, %v7980_v29  ;;  %v2452_v18 = vrot.slane %v8477_v61, %v7983_v30 }
 0x2d5   :  { %v4856_v37 = vcombine.low %v4847_v16, %v4854_v0  ;;  %v2456_v7 = vrot.slane %v8477_v61, %v7986_v31  ;;  %v2460_v9 = vrot.slane %v8477_v61, %v7990_v33  ;;  %v4970_v10 = vcombine.low %v2432_v59, %v2436_v53 }
 0x2d6   :  { %6779 = vperm.xlu0 %7542, %v5116_v3   ;;  %v4863_v12 = vrot.slane %v4855_v4, %v7993_v35  ;;  %v4971_v44 = vcombine.low %v2440_v2, %v2444_v24  ;;  %v4972_v13 = vcombine.low %v2448_v5, %v2452_v18  ;;  %v2272_v14 = vrot.slane %v1395_v11, %v7968_v38 }
 0x2d7   :  { %v4870_v15 = vrot.slane %v4856_v37, %v7993_v35  ;;  %v4973_v17 = vcombine.low %v2456_v7, %v2460_v9  ;;  %v4980_v50 = vrot.slane %v4970_v10, %v7993_v35  ;;  %v2276_v8 = vrot.slane %v1395_v11, %v7971_v25 }
 0x2d8   :  { %v4987_v21 = vrot.slane %v4971_v44, %v7993_v35  ;;  %v4994_v61 = vrot.slane %v4972_v13, %v7993_v35  ;;  %v2280_v27 = vrot.slane %v1395_v11, %v7974_v26  ;;  %v2284_v57 = vrot.slane %v1395_v11, %v7977_v28 }
 0x2d9   :  { %v4871_v34 = vcombine.low %v4863_v12, %v4870_v15  ;;  %v5001_v36 = vrot.slane %v4973_v17, %v7993_v35  ;;  %v2288_v1 = vrot.slane %v1395_v11, %v7980_v29  ;;  %v2292_v39 = vrot.slane %v1395_v11, %v7983_v30 }
 0x2da   :  { %v5002_v63 = vcombine.low %v4980_v50, %v4987_v21  ;;  %v2296_v41 = vrot.slane %v1395_v11, %v7986_v31  ;;  %v2300_v42 = vrot.slane %v1395_v11, %v7990_v33  ;;  %v4725_v43 = vcombine.low %v2272_v14, %v2276_v8  ;;  %v1263_v14 = vpop.xlane.xlu0 %1262  ;;  %v1296_v8 = vpop.xlane.xlu1 %1295 }
 0x2db   :  { %v1401_v6 = vadd.f32 %v7965_v23, %v1269_v20  ;;  %6764 = vperm.xlu1 %7541, %v4871_v34   ;;  %v5003_v45 = vcombine.low %v4994_v61, %v5001_v36  ;;  %v4726_v40 = vcombine.low %v2280_v27, %v2284_v57  ;;  %v4727_v47 = vcombine.low %v2288_v1, %v2292_v39 }
 0x2dc   :  { %v8557_v48 = vadd.f32 %v7965_v23, %v1278_v32  ;;  %v5010_v49 = vrot.slane %v5002_v63, %v7993_v35  ;;  %v4728_v51 = vcombine.low %v2296_v41, %v2300_v42  ;;  %v4735_v46 = vrot.slane %v4725_v43, %v7993_v35 }
 0x2dd   :  { %v5017_v54 = vrot.slane %v5003_v45, %v7993_v35  ;;  %v4742_v56 = vrot.slane %v4726_v40, %v7993_v35  ;;  %v4749_v11 = vrot.slane %v4727_v47, %v7993_v35  ;;  %v2624_v58 = vrot.slane %v8517_v55, %v7968_v38 }
 0x2de   :  { %v4756_v52 = vrot.slane %v4728_v51, %v7993_v35  ;;  %v2628_v60 = vrot.slane %v8517_v55, %v7971_v25  ;;  %v2632_v62 = vrot.slane %v8517_v55, %v7974_v26  ;;  %v2636_v16 = vrot.slane %v8517_v55, %v7977_v28 }
 0x2df   :  { %v5018_v59 = vcombine.low %v5010_v49, %v5017_v54  ;;  %v4757_v0 = vcombine.low %v4735_v46, %v4742_v56  ;;  %v2640_v53 = vrot.slane %v8517_v55, %v7980_v29  ;;  %v2644_v2 = vrot.slane %v8517_v55, %v7983_v30 }
 0x2e0   :  { %v4758_v24 = vcombine.low %v4749_v11, %v4756_v52  ;;  %v2648_v3 = vrot.slane %v8517_v55, %v7986_v31  ;;  %v2652_v4 = vrot.slane %v8517_v55, %v7990_v33  ;;  %v5264_v5 = vcombine.low %v2624_v58, %v2628_v60 }
 0x2e1   :  { %6773 = vperm.xlu0 %7542, %v5018_v59   ;;  %v4765_v18 = vrot.slane %v4757_v0, %v7993_v35  ;;  %v5265_v37 = vcombine.low %v2632_v62, %v2636_v16  ;;  %v5266_v7 = vcombine.low %v2640_v53, %v2644_v2  ;;  %v2464_v9 = vrot.slane %v1401_v6, %v7968_v38  ;;  %v1281_v2 = vpop.xlane.xlu0 %1280 }
 0x2e2   :  { %v4772_v10 = vrot.slane %v4758_v24, %v7993_v35  ;;  %v5267_v12 = vcombine.low %v2648_v3, %v2652_v4  ;;  %v5274_v44 = vrot.slane %v5264_v5, %v7993_v35  ;;  %v2468_v13 = vrot.slane %v1401_v6, %v7971_v25 }
 0x2e3   :  { %v5281_v15 = vrot.slane %v5265_v37, %v7993_v35  ;;  %v5288_v55 = vrot.slane %v5266_v7, %v7993_v35  ;;  %v2472_v17 = vrot.slane %v1401_v6, %v7974_v26  ;;  %v2476_v50 = vrot.slane %v1401_v6, %v7977_v28 }
 0x2e4   :  { %v4773_v20 = vcombine.low %v4765_v18, %v4772_v10  ;;  %v5295_v21 = vrot.slane %v5267_v12, %v7993_v35  ;;  %v2480_v61 = vrot.slane %v1401_v6, %v7980_v29  ;;  %v2484_v27 = vrot.slane %v1401_v6, %v7983_v30 }
 0x2e5   :  { %v5296_v57 = vcombine.low %v5274_v44, %v5281_v15  ;;  %v2488_v32 = vrot.slane %v1401_v6, %v7986_v31  ;;  %v2492_v34 = vrot.slane %v1401_v6, %v7990_v33  ;;  %v5019_v36 = vcombine.low %v2464_v9, %v2468_v13  ;;  %v1290_v13 = vpop.xlane.xlu1 %1289 }
 0x2e6   :  { %v1399_v1 = vadd.f32 %v7965_v23, %v1263_v14  ;;  %6758 = vperm.xlu1 %7541, %v4773_v20   ;;  %v5297_v39 = vcombine.low %v5288_v55, %v5295_v21  ;;  %v5020_v63 = vcombine.low %v2472_v17, %v2476_v50  ;;  %v5021_v41 = vcombine.low %v2480_v61, %v2484_v27 }
 0x2e7   :  { %v8597_v42 = vadd.f32 %v7965_v23, %v1296_v8  ;;  %v5304_v43 = vrot.slane %v5296_v57, %v7993_v35  ;;  %v5022_v45 = vcombine.low %v2488_v32, %v2492_v34  ;;  %v5029_v40 = vrot.slane %v5019_v36, %v7993_v35  ;;  %v1275_v34 = vpop.xlane.xlu0 %1274 }
 0x2e8   :  { %v5311_v47 = vrot.slane %v5297_v39, %v7993_v35  ;;  %v5036_v49 = vrot.slane %v5020_v63, %v7993_v35  ;;  %v5043_v6 = vrot.slane %v5021_v41, %v7993_v35  ;;  %v2560_v51 = vrot.slane %v8557_v48, %v7968_v38 }
 0x2e9   :  { %v5050_v46 = vrot.slane %v5022_v45, %v7993_v35  ;;  %v2564_v54 = vrot.slane %v8557_v48, %v7971_v25  ;;  %v2568_v56 = vrot.slane %v8557_v48, %v7974_v26  ;;  %v2572_v11 = vrot.slane %v8557_v48, %v7977_v28 }
 0x2ea   :  { %v5312_v58 = vcombine.low %v5304_v43, %v5311_v47  ;;  %v5051_v52 = vcombine.low %v5029_v40, %v5036_v49  ;;  %v2576_v60 = vrot.slane %v8557_v48, %v7980_v29  ;;  %v2580_v62 = vrot.slane %v8557_v48, %v7983_v30 }
 0x2eb   :  { %v5052_v16 = vcombine.low %v5043_v6, %v5050_v46  ;;  %v2584_v59 = vrot.slane %v8557_v48, %v7986_v31  ;;  %v2588_v0 = vrot.slane %v8557_v48, %v7990_v33  ;;  %v5166_v53 = vcombine.low %v2560_v51, %v2564_v54 }
 0x2ec   :  { %6791 = vperm.xlu0 %7542, %v5312_v58   ;;  %v5059_v24 = vrot.slane %v5051_v52, %v7993_v35  ;;  %v5167_v3 = vcombine.low %v2568_v56, %v2572_v11  ;;  %v5168_v4 = vcombine.low %v2576_v60, %v2580_v62  ;;  %v2400_v5 = vrot.slane %v1399_v1, %v7968_v38 }
 0x2ed   :  { %v5066_v18 = vrot.slane %v5052_v16, %v7993_v35  ;;  %v5169_v37 = vcombine.low %v2584_v59, %v2588_v0  ;;  %v5176_v7 = vrot.slane %v5166_v53, %v7993_v35  ;;  %v2404_v9 = vrot.slane %v1399_v1, %v7971_v25 }
 0x2ee   :  { %v5183_v10 = vrot.slane %v5167_v3, %v7993_v35  ;;  %v5190_v48 = vrot.slane %v5168_v4, %v7993_v35  ;;  %v2408_v12 = vrot.slane %v1399_v1, %v7974_v26  ;;  %v2412_v44 = vrot.slane %v1399_v1, %v7977_v28 }
 0x2ef   :  { %v5067_v14 = vcombine.low %v5059_v24, %v5066_v18  ;;  %v5197_v15 = vrot.slane %v5169_v37, %v7993_v35  ;;  %v2416_v55 = vrot.slane %v1399_v1, %v7980_v29  ;;  %v2420_v17 = vrot.slane %v1399_v1, %v7983_v30 }
 0x2f0   :  { %v5198_v50 = vcombine.low %v5176_v7, %v5183_v10  ;;  %v2424_v8 = vrot.slane %v1399_v1, %v7986_v31  ;;  %v2428_v20 = vrot.slane %v1399_v1, %v7990_v33  ;;  %v4921_v21 = vcombine.low %v2400_v5, %v2404_v9 }
 0x2f1   :  { %v1405_v61 = vadd.f32 %v7965_v23, %v1281_v2  ;;  %6776 = vperm.xlu1 %7541, %v5067_v14   ;;  %v5199_v27 = vcombine.low %v5190_v48, %v5197_v15  ;;  %v4922_v57 = vcombine.low %v2408_v12, %v2412_v44  ;;  %v4923_v32 = vcombine.low %v2416_v55, %v2420_v17  ;;  %v1293_v2 = vpop.xlane.xlu0 %1292 }
 0x2f2   :  { %v8637_v36 = vadd.f32 %v7965_v23, %v1290_v13  ;;  %v5206_v39 = vrot.slane %v5198_v50, %v7993_v35  ;;  %v4924_v63 = vcombine.low %v2424_v8, %v2428_v20  ;;  %v4931_v41 = vrot.slane %v4921_v21, %v7993_v35 }
 0x2f3   :  { %v5213_v43 = vrot.slane %v5199_v27, %v7993_v35  ;;  %v4938_v1 = vrot.slane %v4922_v57, %v7993_v35  ;;  %v4945_v45 = vrot.slane %v4923_v32, %v7993_v35  ;;  %v2752_v40 = vrot.slane %v8597_v42, %v7968_v38 }
 0x2f4   :  { %v4952_v47 = vrot.slane %v4924_v63, %v7993_v35  ;;  %v2756_v49 = vrot.slane %v8597_v42, %v7971_v25  ;;  %v2760_v6 = vrot.slane %v8597_v42, %v7974_v26  ;;  %v2764_v51 = vrot.slane %v8597_v42, %v7977_v28 }
 0x2f5   :  { %v5214_v46 = vcombine.low %v5206_v39, %v5213_v43  ;;  %v4953_v54 = vcombine.low %v4931_v41, %v4938_v1  ;;  %v2768_v56 = vrot.slane %v8597_v42, %v7980_v29  ;;  %v2772_v11 = vrot.slane %v8597_v42, %v7983_v30  ;;  %v1287_v32 = vpop.xlane.xlu0 %1286  ;;  %v8681_v39 = vpop.xlane.xlu1 %1307 }
 0x2f6   :  { %v4954_v58 = vcombine.low %v4945_v45, %v4952_v47  ;;  %v2776_v52 = vrot.slane %v8597_v42, %v7986_v31  ;;  %v2780_v60 = vrot.slane %v8597_v42, %v7990_v33  ;;  %v5460_v62 = vcombine.low %v2752_v40, %v2756_v49 }
 0x2f7   :  { %6785 = vperm.xlu0 %7542, %v5214_v46   ;;  %v4961_v16 = vrot.slane %v4953_v54, %v7993_v35  ;;  %v5461_v59 = vcombine.low %v2760_v6, %v2764_v51  ;;  %v5462_v0 = vcombine.low %v2768_v56, %v2772_v11  ;;  %v2592_v53 = vrot.slane %v1405_v61, %v7968_v38 }
 0x2f8   :  { %v4968_v24 = vrot.slane %v4954_v58, %v7993_v35  ;;  %v5463_v3 = vcombine.low %v2776_v52, %v2780_v60  ;;  %v5470_v4 = vrot.slane %v5460_v62, %v7993_v35  ;;  %v2596_v5 = vrot.slane %v1405_v61, %v7971_v25 }
 0x2f9   :  { %v5477_v18 = vrot.slane %v5461_v59, %v7993_v35  ;;  %v5484_v42 = vrot.slane %v5462_v0, %v7993_v35  ;;  %v2600_v37 = vrot.slane %v1405_v61, %v7974_v26  ;;  %v2604_v7 = vrot.slane %v1405_v61, %v7977_v28 }
 0x2fa   :  { %v4969_v9 = vcombine.low %v4961_v16, %v4968_v24  ;;  %v5491_v10 = vrot.slane %v5463_v3, %v7993_v35  ;;  %v2608_v48 = vrot.slane %v1405_v61, %v7980_v29  ;;  %v2612_v12 = vrot.slane %v1405_v61, %v7983_v30  ;;  %v1302_v24 = vpop.xlane.xlu1 %1301 }
 0x2fb   :  { %v5492_v44 = vcombine.low %v5470_v4, %v5477_v18  ;;  %v2616_v13 = vrot.slane %v1405_v61, %v7986_v31  ;;  %v2620_v14 = vrot.slane %v1405_v61, %v7990_v33  ;;  %v5215_v15 = vcombine.low %v2592_v53, %v2596_v5 }
 0x2fc   :  { %v1403_v55 = vadd.f32 %v7965_v23, %v1275_v34  ;;  %6770 = vperm.xlu1 %7541, %v4969_v9   ;;  %v5493_v17 = vcombine.low %v5484_v42, %v5491_v10  ;;  %v5216_v50 = vcombine.low %v2600_v37, %v2604_v7  ;;  %v5217_v8 = vcombine.low %v2608_v48, %v2612_v12 }
 0x2fd   :  { %v8677_v20 = vadd.f32 %v7965_v23, %v1293_v2  ;;  %v5500_v21 = vrot.slane %v5492_v44, %v7993_v35  ;;  %v5218_v27 = vcombine.low %v2616_v13, %v2620_v14  ;;  %v5225_v57 = vrot.slane %v5215_v15, %v7993_v35  ;;  %v1305_v2 = vpop.xlane.xlu0 %1304 }
 0x2fe   :  { %v5507_v61 = vrot.slane %v5493_v17, %v7993_v35  ;;  %v5232_v63 = vrot.slane %v5216_v50, %v7993_v35  ;;  %v5239_v34 = vrot.slane %v5217_v8, %v7993_v35  ;;  %v2688_v41 = vrot.slane %v8637_v36, %v7968_v38 }
 0x2ff   :  { %v5246_v43 = vrot.slane %v5218_v27, %v7993_v35  ;;  %v2692_v1 = vrot.slane %v8637_v36, %v7971_v25  ;;  %v2696_v45 = vrot.slane %v8637_v36, %v7974_v26  ;;  %v2700_v40 = vrot.slane %v8637_v36, %v7977_v28 }
 0x300   :  { %v5508_v47 = vcombine.low %v5500_v21, %v5507_v61  ;;  %v5247_v49 = vcombine.low %v5225_v57, %v5232_v63  ;;  %v2704_v6 = vrot.slane %v8637_v36, %v7980_v29  ;;  %v2708_v51 = vrot.slane %v8637_v36, %v7983_v30  ;;  %v8730_v63 = vpop.xlane.xlu1 %1319 }
 0x301   :  { %v5248_v46 = vcombine.low %v5239_v34, %v5246_v43  ;;  %v2712_v54 = vrot.slane %v8637_v36, %v7986_v31  ;;  %v2716_v56 = vrot.slane %v8637_v36, %v7990_v33  ;;  %v5362_v11 = vcombine.low %v2688_v41, %v2692_v1  ;;  %v8728_v61 = vpop.xlane.xlu0 %1298 }
 0x302   :  { %6803 = vperm.xlu0 %7542, %v5508_v47   ;;  %v5255_v58 = vrot.slane %v5247_v49, %v7993_v35  ;;  %v5363_v52 = vcombine.low %v2696_v45, %v2700_v40  ;;  %v5364_v60 = vcombine.low %v2704_v6, %v2708_v51  ;;  %v2528_v62 = vrot.slane %v1403_v55, %v7968_v38 }
 0x303   :  { %v5262_v16 = vrot.slane %v5248_v46, %v7993_v35  ;;  %v5365_v59 = vcombine.low %v2712_v54, %v2716_v56  ;;  %v5372_v0 = vrot.slane %v5362_v11, %v7993_v35  ;;  %v2532_v53 = vrot.slane %v1403_v55, %v7971_v25 }
 0x304   :  { %v5379_v3 = vrot.slane %v5363_v52, %v7993_v35  ;;  %v5386_v36 = vrot.slane %v5364_v60, %v7993_v35  ;;  %v2536_v4 = vrot.slane %v1403_v55, %v7974_v26  ;;  %v2540_v5 = vrot.slane %v1403_v55, %v7977_v28 }
 0x305   :  { %v5263_v18 = vcombine.low %v5255_v58, %v5262_v16  ;;  %v5393_v42 = vrot.slane %v5365_v59, %v7993_v35  ;;  %v2544_v37 = vrot.slane %v1403_v55, %v7980_v29  ;;  %v2548_v7 = vrot.slane %v1403_v55, %v7983_v30 }
 0x306   :  { %v5394_v9 = vcombine.low %v5372_v0, %v5379_v3  ;;  %v2552_v10 = vrot.slane %v1403_v55, %v7986_v31  ;;  %v2556_v48 = vrot.slane %v1403_v55, %v7990_v33  ;;  %v5117_v12 = vcombine.low %v2528_v62, %v2532_v53 }
 0x307   :  { %v8718_v44 = vadd.f32 %v7965_v23, %v1287_v32  ;;  %6788 = vperm.xlu1 %7541, %v5263_v18   ;;  %v5395_v13 = vcombine.low %v5386_v36, %v5393_v42  ;;  %v5118_v14 = vcombine.low %v2536_v4, %v2540_v5  ;;  %v5119_v15 = vcombine.low %v2544_v37, %v2548_v7  ;;  %v1314_v36 = vpop.xlane.xlu1 %1313 }
 0x308   :  { %v1412_v17 = vadd.f32 %v7965_v23, %v1302_v24  ;;  %v5402_v50 = vrot.slane %v5394_v9, %v7993_v35  ;;  %v5120_v8 = vcombine.low %v2552_v10, %v2556_v48  ;;  %v5127_v21 = vrot.slane %v5117_v12, %v7993_v35  ;;  %v8761_v24 = vpop.xlane.xlu0 %1316 }
 0x309   :  { %v5409_v27 = vrot.slane %v5395_v13, %v7993_v35  ;;  %v5134_v57 = vrot.slane %v5118_v14, %v7993_v35  ;;  %v5141_v55 = vrot.slane %v5119_v15, %v7993_v35  ;;  %v2720_v32 = vrot.slane %v8677_v20, %v7968_v38 }
 0x30a   :  { %v5148_v34 = vrot.slane %v5120_v8, %v7993_v35  ;;  %v2724_v41 = vrot.slane %v8677_v20, %v7971_v25  ;;  %v2728_v43 = vrot.slane %v8677_v20, %v7974_v26  ;;  %v2732_v1 = vrot.slane %v8677_v20, %v7977_v28 }
 0x30b   :  { %v5410_v45 = vcombine.low %v5402_v50, %v5409_v27  ;;  %v5149_v40 = vcombine.low %v5127_v21, %v5134_v57  ;;  %v2736_v47 = vrot.slane %v8677_v20, %v7980_v29  ;;  %v2740_v49 = vrot.slane %v8677_v20, %v7983_v30 }
 0x30c   :  { %v5150_v6 = vcombine.low %v5141_v55, %v5148_v34  ;;  %v2744_v51 = vrot.slane %v8677_v20, %v7986_v31  ;;  %v2748_v46 = vrot.slane %v8677_v20, %v7990_v33  ;;  %v5411_v54 = vcombine.low %v2720_v32, %v2724_v41  ;;  %v1311_v41 = vpop.xlane.xlu0 %1310 }
 0x30d   :  { %v8748_v56 = vadd.f32 %v7965_v23, %v1305_v2  ;;  %6797 = vperm.xlu0 %7542, %v5410_v45   ;;  %v5157_v11 = vrot.slane %v5149_v40, %v7993_v35  ;;  %v5412_v58 = vcombine.low %v2728_v43, %v2732_v1  ;;  %v5413_v52 = vcombine.low %v2736_v47, %v2740_v49  ;;  %v1332_v1 = vpop.xlane.xlu1 %1331 }
 0x30e   :  { %v8753_v60 = vadd.f32 %v7965_v23, %v8681_v39  ;;  %v5164_v62 = vrot.slane %v5150_v6, %v7993_v35  ;;  %v5414_v16 = vcombine.low %v2744_v51, %v2748_v46  ;;  %v5421_v59 = vrot.slane %v5411_v54, %v7993_v35 }
 0x30f   :  { %v5428_v20 = vrot.slane %v5412_v58, %v7993_v35  ;;  %v5435_v0 = vrot.slane %v5413_v52, %v7993_v35  ;;  %v2816_v53 = vrot.slane %v1412_v17, %v7968_v38  ;;  %v2820_v2 = vrot.slane %v1412_v17, %v7971_v25 }
 0x310   :  { %v5165_v3 = vcombine.low %v5157_v11, %v5164_v62  ;;  %v5442_v39 = vrot.slane %v5414_v16, %v7993_v35  ;;  %v2824_v4 = vrot.slane %v1412_v17, %v7974_v26  ;;  %v2828_v5 = vrot.slane %v1412_v17, %v7977_v28 }
 0x311   :  { %v5443_v18 = vcombine.low %v5421_v59, %v5428_v20  ;;  %v2832_v42 = vrot.slane %v1412_v17, %v7980_v29  ;;  %v2836_v37 = vrot.slane %v1412_v17, %v7983_v30  ;;  %v2840_v7 = vrot.slane %v1412_v17, %v7986_v31 }
 0x312   :  { %6782 = vperm.xlu1 %7541, %v5165_v3   ;;  %v5444_v9 = vcombine.low %v5435_v0, %v5442_v39  ;;  %v2844_v10 = vrot.slane %v1412_v17, %v7990_v33  ;;  %v5558_v48 = vcombine.low %v2816_v53, %v2820_v2  ;;  %v5559_v12 = vcombine.low %v2824_v4, %v2828_v5 }
 0x313   :  { %v5451_v13 = vrot.slane %v5443_v18, %v7993_v35  ;;  %v5560_v14 = vcombine.low %v2832_v42, %v2836_v37  ;;  %v2656_v15 = vrot.slane %v8718_v44, %v7968_v38  ;;  %v2660_v50 = vrot.slane %v8718_v44, %v7971_v25  ;;  %v1326_v18 = vpop.xlane.xlu1 %1325 }
 0x314   :  { %v5458_v8 = vrot.slane %v5444_v9, %v7993_v35  ;;  %v5561_v21 = vcombine.low %v2840_v7, %v2844_v10  ;;  %v5568_v27 = vrot.slane %v5558_v48, %v7993_v35  ;;  %v5575_v57 = vrot.slane %v5559_v12, %v7993_v35 }
 0x315   :  { %v5582_v17 = vrot.slane %v5560_v14, %v7993_v35  ;;  %v2664_v55 = vrot.slane %v8718_v44, %v7974_v26  ;;  %v2668_v32 = vrot.slane %v8718_v44, %v7977_v28  ;;  %v2672_v34 = vrot.slane %v8718_v44, %v7980_v29 }
 0x316   :  { %v5459_v43 = vcombine.low %v5451_v13, %v5458_v8  ;;  %v5589_v45 = vrot.slane %v5561_v21, %v7993_v35  ;;  %v5590_v40 = vcombine.low %v5568_v27, %v5575_v57  ;;  %v2676_v47 = vrot.slane %v8718_v44, %v7983_v30 }
 0x317   :  { %v2680_v49 = vrot.slane %v8718_v44, %v7986_v31  ;;  %v2684_v6 = vrot.slane %v8718_v44, %v7990_v33  ;;  %v5313_v51 = vcombine.low %v2656_v15, %v2660_v50  ;;  %v5314_v46 = vcombine.low %v2664_v55, %v2668_v32 }
 0x318   :  { %v1411_v54 = vadd.f32 %v7965_v23, %v8728_v61  ;;  %6800 = vperm.xlu1 %7541, %v5459_v43   ;;  %v5591_v11 = vcombine.low %v5582_v17, %v5589_v45  ;;  %v5598_v58 = vrot.slane %v5590_v40, %v7993_v35  ;;  %v5315_v52 = vcombine.low %v2672_v34, %v2676_v47  ;;  %v1329_v17 = vpop.xlane.xlu0 %1328  ;;  %v1344_v40 = vpop.xlane.xlu1 %1343 }
 0x319   :  { %v8796_v62 = vadd.f32 %v7965_v23, %v1311_v41  ;;  %v5316_v16 = vcombine.low %v2680_v49, %v2684_v6  ;;  %v5323_v59 = vrot.slane %v5313_v51, %v7993_v35  ;;  %v5330_v20 = vrot.slane %v5314_v46, %v7993_v35 }
 0x31a   :  { %v5605_v44 = vrot.slane %v5591_v11, %v7993_v35  ;;  %v5337_v0 = vrot.slane %v5315_v52, %v7993_v35  ;;  %v2848_v61 = vrot.slane %v8748_v56, %v7968_v38  ;;  %v2852_v53 = vrot.slane %v8748_v56, %v7971_v25 }
 0x31b   :  { %v5344_v2 = vrot.slane %v5316_v16, %v7993_v35  ;;  %v5345_v3 = vcombine.low %v5323_v59, %v5330_v20  ;;  %v2856_v39 = vrot.slane %v8748_v56, %v7974_v26  ;;  %v2860_v4 = vrot.slane %v8748_v56, %v7977_v28 }
 0x31c   :  { %v5606_v5 = vcombine.low %v5598_v58, %v5605_v44  ;;  %v2864_v42 = vrot.slane %v8748_v56, %v7980_v29  ;;  %v2868_v37 = vrot.slane %v8748_v56, %v7983_v30  ;;  %v2872_v7 = vrot.slane %v8748_v56, %v7986_v31 }
 0x31d   :  { %v5346_v9 = vcombine.low %v5337_v0, %v5344_v2  ;;  %v5353_v10 = vrot.slane %v5345_v3, %v7993_v35  ;;  %v2876_v48 = vrot.slane %v8748_v56, %v7990_v33  ;;  %v5607_v12 = vcombine.low %v2848_v61, %v2852_v53 }
 0x31e   :  { %v8821_v13 = vadd.f32 %v7965_v23, %v1314_v36  ;;  %v1422_v14 = vadd.f32 %v7965_v23, %v1332_v1  ;;  %6809 = vperm.xlu0 %7542, %v5606_v5   ;;  %v5608_v15 = vcombine.low %v2856_v39, %v2860_v4  ;;  %v5609_v50 = vcombine.low %v2864_v42, %v2868_v37 }
 0x31f   :  { %v5360_v8 = vrot.slane %v5346_v9, %v7993_v35  ;;  %v5610_v21 = vcombine.low %v2872_v7, %v2876_v48  ;;  %v5617_v27 = vrot.slane %v5607_v12, %v7993_v35  ;;  %v2784_v57 = vrot.slane %v1411_v54, %v7968_v38  ;;  %v8854_v7 = vpop.xlane.xlu1 %1337 }
 0x320   :  { %v5624_v55 = vrot.slane %v5608_v15, %v7993_v35  ;;  %v5631_v56 = vrot.slane %v5609_v50, %v7993_v35  ;;  %v2788_v36 = vrot.slane %v1411_v54, %v7971_v25  ;;  %v2792_v32 = vrot.slane %v1411_v54, %v7974_v26 }
 0x321   :  { %v5361_v34 = vcombine.low %v5353_v10, %v5360_v8  ;;  %v5638_v41 = vrot.slane %v5610_v21, %v7993_v35  ;;  %v2796_v43 = vrot.slane %v1411_v54, %v7977_v28  ;;  %v2800_v1 = vrot.slane %v1411_v54, %v7980_v29 }
 0x322   :  { %v5639_v45 = vcombine.low %v5617_v27, %v5624_v55  ;;  %v2804_v47 = vrot.slane %v1411_v54, %v7983_v30  ;;  %v2808_v49 = vrot.slane %v1411_v54, %v7986_v31  ;;  %v2812_v6 = vrot.slane %v1411_v54, %v7990_v33  ;;  %v1323_v55 = vpop.xlane.xlu0 %1322 }
 0x323   :  { %v8838_v51 = vadd.f32 %v7965_v23, %v1329_v17  ;;  %6794 = vperm.xlu1 %7541, %v5361_v34   ;;  %v5640_v46 = vcombine.low %v5631_v56, %v5638_v41  ;;  %v5509_v11 = vcombine.low %v2784_v57, %v2788_v36  ;;  %v5510_v58 = vcombine.low %v2792_v32, %v2796_v43 }
 0x324   :  { %v8841_v52 = vadd.f32 %v7965_v23, %v1326_v18  ;;  %v5647_v16 = vrot.slane %v5639_v45, %v7993_v35  ;;  %v5511_v59 = vcombine.low %v2800_v1, %v2804_v47  ;;  %v5512_v20 = vcombine.low %v2808_v49, %v2812_v6 }
 0x325   :  { %v5654_v44 = vrot.slane %v5640_v46, %v7993_v35  ;;  %v5519_v0 = vrot.slane %v5509_v11, %v7993_v35  ;;  %v5526_v54 = vrot.slane %v5510_v58, %v7993_v35  ;;  %v3136_v61 = vrot.slane %v1422_v14, %v7968_v38 }
 0x326   :  { %v5533_v53 = vrot.slane %v5511_v59, %v7993_v35  ;;  %v5540_v2 = vrot.slane %v5512_v20, %v7993_v35  ;;  %v3140_v3 = vrot.slane %v1422_v14, %v7971_v25  ;;  %v3144_v39 = vrot.slane %v1422_v14, %v7974_v26  ;;  %v8884_v59 = vpop.xlane.xlu1 %1355 }
 0x327   :  { %v5655_v4 = vcombine.low %v5647_v16, %v5654_v44  ;;  %v5541_v5 = vcombine.low %v5519_v0, %v5526_v54  ;;  %v3148_v18 = vrot.slane %v1422_v14, %v7977_v28  ;;  %v3152_v42 = vrot.slane %v1422_v14, %v7980_v29 }
 0x328   :  { %v5542_v37 = vcombine.low %v5533_v53, %v5540_v2  ;;  %v3156_v9 = vrot.slane %v1422_v14, %v7983_v30  ;;  %v3160_v10 = vrot.slane %v1422_v14, %v7986_v31  ;;  %v3164_v48 = vrot.slane %v1422_v14, %v7990_v33 }
 0x329   :  { %6812 = vperm.xlu1 %7541, %v5655_v4   ;;  %v5549_v12 = vrot.slane %v5541_v5, %v7993_v35  ;;  %v6048_v15 = vcombine.low %v3136_v61, %v3140_v3  ;;  %v6049_v50 = vcombine.low %v3144_v39, %v3148_v18  ;;  %v2880_v8 = vrot.slane %v8753_v60, %v7968_v38 }
 0x32a   :  { %v5556_v21 = vrot.slane %v5542_v37, %v7993_v35  ;;  %v6050_v27 = vcombine.low %v3152_v42, %v3156_v9  ;;  %v6051_v57 = vcombine.low %v3160_v10, %v3164_v48  ;;  %v2884_v17 = vrot.slane %v8753_v60, %v7971_v25 }
 0x32b   :  { %v6058_v56 = vrot.slane %v6048_v15, %v7993_v35  ;;  %v6065_v14 = vrot.slane %v6049_v50, %v7993_v35  ;;  %v2888_v36 = vrot.slane %v8753_v60, %v7974_v26  ;;  %v2892_v32 = vrot.slane %v8753_v60, %v7977_v28 }
 0x32c   :  { %v5557_v34 = vcombine.low %v5549_v12, %v5556_v21  ;;  %v6072_v41 = vrot.slane %v6050_v27, %v7993_v35  ;;  %v6079_v43 = vrot.slane %v6051_v57, %v7993_v35  ;;  %v2896_v1 = vrot.slane %v8753_v60, %v7980_v29  ;;  %v8914_v27 = vpop.xlane.xlu1 %1349 }
 0x32d   :  { %v6080_v45 = vcombine.low %v6058_v56, %v6065_v14  ;;  %v2900_v47 = vrot.slane %v8753_v60, %v7983_v30  ;;  %v2904_v49 = vrot.slane %v8753_v60, %v7986_v31  ;;  %v2908_v6 = vrot.slane %v8753_v60, %v7990_v33  ;;  %v1341_v14 = vpop.xlane.xlu0 %1340 }
 0x32e   :  { %v8882_v46 = vadd.f32 %v7965_v23, %v1323_v55  ;;  %6806 = vperm.xlu1 %7541, %v5557_v34   ;;  %v6081_v11 = vcombine.low %v6072_v41, %v6079_v43  ;;  %v5656_v58 = vcombine.low %v2880_v8, %v2884_v17  ;;  %v5657_v16 = vcombine.low %v2888_v36, %v2892_v32 }
 0x32f   :  { %v8887_v20 = vadd.f32 %v7965_v23, %v1344_v40  ;;  %v6088_v44 = vrot.slane %v6080_v45, %v7993_v35  ;;  %v5658_v0 = vcombine.low %v2896_v1, %v2900_v47  ;;  %v5659_v54 = vcombine.low %v2904_v49, %v2908_v6 }
 0x330   :  { %v6095_v61 = vrot.slane %v6081_v11, %v7993_v35  ;;  %v5666_v60 = vrot.slane %v5656_v58, %v7993_v35  ;;  %v5673_v53 = vrot.slane %v5657_v16, %v7993_v35  ;;  %v3072_v2 = vrot.slane %v8841_v52, %v7968_v38 }
 0x331   :  { %v5680_v3 = vrot.slane %v5658_v0, %v7993_v35  ;;  %v5687_v39 = vrot.slane %v5659_v54, %v7993_v35  ;;  %v3076_v40 = vrot.slane %v8841_v52, %v7971_v25  ;;  %v3080_v4 = vrot.slane %v8841_v52, %v7974_v26 }
 0x332   :  { %v6096_v5 = vcombine.low %v6088_v44, %v6095_v61  ;;  %v5688_v18 = vcombine.low %v5666_v60, %v5673_v53  ;;  %v3084_v42 = vrot.slane %v8841_v52, %v7977_v28  ;;  %v3088_v37 = vrot.slane %v8841_v52, %v7980_v29 }
 0x333   :  { %v5689_v9 = vcombine.low %v5680_v3, %v5687_v39  ;;  %v3092_v10 = vrot.slane %v8841_v52, %v7983_v30  ;;  %v3096_v48 = vrot.slane %v8841_v52, %v7986_v31  ;;  %v3100_v12 = vrot.slane %v8841_v52, %v7990_v33 }
 0x334   :  { %6839 = vperm.xlu0 %7542, %v6096_v5   ;;  %v5696_v15 = vrot.slane %v5688_v18, %v7993_v35  ;;  %v5950_v50 = vcombine.low %v3072_v2, %v3076_v40  ;;  %v5951_v8 = vcombine.low %v3080_v4, %v3084_v42  ;;  %v2912_v21 = vrot.slane %v8796_v62, %v7968_v38  ;;  %v8943_v2 = vpop.xlane.xlu1 %1367  ;;  %v1335_v4 = vpop.xlane.xlu0 %1334 }
 0x335   :  { %v5703_v57 = vrot.slane %v5689_v9, %v7993_v35  ;;  %v5952_v17 = vcombine.low %v3088_v37, %v3092_v10  ;;  %v5953_v55 = vcombine.low %v3096_v48, %v3100_v12  ;;  %v2916_v56 = vrot.slane %v8796_v62, %v7971_v25 }
 0x336   :  { %v5960_v52 = vrot.slane %v5950_v50, %v7993_v35  ;;  %v5967_v36 = vrot.slane %v5951_v8, %v7993_v35  ;;  %v2920_v32 = vrot.slane %v8796_v62, %v7974_v26  ;;  %v2924_v34 = vrot.slane %v8796_v62, %v7977_v28 }
 0x337   :  { %v5704_v41 = vcombine.low %v5696_v15, %v5703_v57  ;;  %v5974_v43 = vrot.slane %v5952_v17, %v7993_v35  ;;  %v5981_v1 = vrot.slane %v5953_v55, %v7993_v35  ;;  %v2928_v45 = vrot.slane %v8796_v62, %v7980_v29 }
 0x338   :  { %v5982_v47 = vcombine.low %v5960_v52, %v5967_v36  ;;  %v2932_v49 = vrot.slane %v8796_v62, %v7983_v30  ;;  %v2936_v6 = vrot.slane %v8796_v62, %v7986_v31  ;;  %v2940_v11 = vrot.slane %v8796_v62, %v7990_v33 }
 0x339   :  { %v8936_v58 = vadd.f32 %v7965_v23, %v1341_v14  ;;  %6815 = vperm.xlu1 %7541, %v5704_v41   ;;  %v5983_v16 = vcombine.low %v5974_v43, %v5981_v1  ;;  %v5705_v44 = vcombine.low %v2912_v21, %v2916_v56  ;;  %v5706_v0 = vcombine.low %v2920_v32, %v2924_v34  ;;  %v8972_v32 = vpop.xlane.xlu1 %1361  ;;  %v1353_v1 = vpop.xlane.xlu0 %1352 }
 0x33a   :  { %v8940_v54 = vadd.f32 %v7965_v23, %v8854_v7  ;;  %v5990_v61 = vrot.slane %v5982_v47, %v7993_v35  ;;  %v5707_v60 = vcombine.low %v2928_v45, %v2932_v49  ;;  %v5708_v53 = vcombine.low %v2936_v6, %v2940_v11 }
 0x33b   :  { %v5997_v3 = vrot.slane %v5983_v16, %v7993_v35  ;;  %v5715_v62 = vrot.slane %v5705_v44, %v7993_v35  ;;  %v5722_v39 = vrot.slane %v5706_v0, %v7993_v35  ;;  %v3264_v40 = vrot.slane %v8887_v20, %v7968_v38 }
 0x33c   :  { %v5729_v5 = vrot.slane %v5707_v60, %v7993_v35  ;;  %v5736_v7 = vrot.slane %v5708_v53, %v7993_v35  ;;  %v3268_v18 = vrot.slane %v8887_v20, %v7971_v25  ;;  %v3272_v42 = vrot.slane %v8887_v20, %v7974_v26 }
 0x33d   :  { %v5998_v37 = vcombine.low %v5990_v61, %v5997_v3  ;;  %v5737_v9 = vcombine.low %v5715_v62, %v5722_v39  ;;  %v3276_v10 = vrot.slane %v8887_v20, %v7977_v28  ;;  %v3280_v48 = vrot.slane %v8887_v20, %v7980_v29  ;;  %v8993_v62 = vpop.permute.xlu1 %6692 }
 0x33e   :  { %v5738_v12 = vcombine.low %v5729_v5, %v5736_v7  ;;  %v3284_v15 = vrot.slane %v8887_v20, %v7983_v30  ;;  %v3288_v50 = vrot.slane %v8887_v20, %v7986_v31  ;;  %v3292_v8 = vrot.slane %v8887_v20, %v7990_v33 }
 0x33f   :  { %6833 = vperm.xlu0 %7542, %v5998_v37   ;;  %v5745_v21 = vrot.slane %v5737_v9, %v7993_v35  ;;  %v6244_v57 = vcombine.low %v3264_v40, %v3268_v18  ;;  %v6245_v17 = vcombine.low %v3272_v42, %v3276_v10  ;;  %v2944_v55 = vrot.slane %v8821_v13, %v7968_v38 }
 0x340   :  { %v5752_v56 = vrot.slane %v5738_v12, %v7993_v35  ;;  %v6246_v14 = vcombine.low %v3280_v48, %v3284_v15  ;;  %v6247_v52 = vcombine.low %v3288_v50, %v3292_v8  ;;  %v2948_v36 = vrot.slane %v8821_v13, %v7971_v25 }
 0x341   :  { %v6254_v34 = vrot.slane %v6244_v57, %v7993_v35  ;;  %v6261_v20 = vrot.slane %v6245_v17, %v7993_v35  ;;  %v2952_v41 = vrot.slane %v8821_v13, %v7974_v26  ;;  %v2956_v43 = vrot.slane %v8821_v13, %v7977_v28 }
 0x342   :  { %v5753_v45 = vcombine.low %v5745_v21, %v5752_v56  ;;  %v6268_v47 = vrot.slane %v6246_v14, %v7993_v35  ;;  %v6275_v49 = vrot.slane %v6247_v52, %v7993_v35  ;;  %v2960_v6 = vrot.slane %v8821_v13, %v7980_v29 }
 0x343   :  { %v6276_v11 = vcombine.low %v6254_v34, %v6261_v20  ;;  %v2964_v16 = vrot.slane %v8821_v13, %v7983_v30  ;;  %v2968_v44 = vrot.slane %v8821_v13, %v7986_v31  ;;  %v2972_v0 = vrot.slane %v8821_v13, %v7990_v33  ;;  %v9023_v34 = vpop.permute.xlu1 %6695 }
 0x344   :  { %v8991_v61 = vadd.f32 %v7965_v23, %v1335_v4  ;;  %6818 = vperm.xlu1 %7541, %v5753_v45   ;;  %v6277_v60 = vcombine.low %v6268_v47, %v6275_v49  ;;  %v5754_v53 = vcombine.low %v2944_v55, %v2948_v36  ;;  %v5755_v3 = vcombine.low %v2952_v41, %v2956_v43 }
 0x345   :  { %v8996_v39 = vadd.f32 %v7965_v23, %v1353_v1  ;;  %v6284_v40 = vrot.slane %v6276_v11, %v7993_v35  ;;  %v5756_v5 = vcombine.low %v2960_v6, %v2964_v16  ;;  %v5757_v7 = vcombine.low %v2968_v44, %v2972_v0 }
 0x346   :  { %v6291_v18 = vrot.slane %v6277_v60, %v7993_v35  ;;  %v5764_v13 = vrot.slane %v5754_v53, %v7993_v35  ;;  %v5771_v4 = vrot.slane %v5755_v3, %v7993_v35  ;;  %v3200_v42 = vrot.slane %v8940_v54, %v7968_v38 }
 0x347   :  { %v5778_v37 = vrot.slane %v5756_v5, %v7993_v35  ;;  %v5785_v9 = vrot.slane %v5757_v7, %v7993_v35  ;;  %v3204_v10 = vrot.slane %v8940_v54, %v7971_v25  ;;  %v3208_v48 = vrot.slane %v8940_v54, %v7974_v26 }
 0x348   :  { %v6292_v12 = vcombine.low %v6284_v40, %v6291_v18  ;;  %v5786_v15 = vcombine.low %v5764_v13, %v5771_v4  ;;  %v3212_v50 = vrot.slane %v8940_v54, %v7977_v28  ;;  %v3216_v8 = vrot.slane %v8940_v54, %v7980_v29 }
 0x349   :  { %v5787_v21 = vcombine.low %v5778_v37, %v5785_v9  ;;  %v3220_v57 = vrot.slane %v8940_v54, %v7983_v30  ;;  %v3224_v17 = vrot.slane %v8940_v54, %v7986_v31  ;;  %v3228_v55 = vrot.slane %v8940_v54, %v7990_v33  ;;  %v9051_v9 = vpop.permute.xlu1 %6689 }
 0x34a   :  { %6851 = vperm.xlu0 %7542, %v6292_v12   ;;  %v5794_v56 = vrot.slane %v5786_v15, %v7993_v35  ;;  %v6146_v14 = vcombine.low %v3200_v42, %v3204_v10  ;;  %v6147_v52 = vcombine.low %v3208_v48, %v3212_v50  ;;  %v3104_v36 = vrot.slane %v8838_v51, %v7968_v38 }
 0x34b   :  { %v5801_v20 = vrot.slane %v5787_v21, %v7993_v35  ;;  %v6148_v41 = vcombine.low %v3216_v8, %v3220_v57  ;;  %v6149_v43 = vcombine.low %v3224_v17, %v3228_v55  ;;  %v3108_v1 = vrot.slane %v8838_v51, %v7971_v25 }
 0x34c   :  { %v6156_v45 = vrot.slane %v6146_v14, %v7993_v35  ;;  %v6163_v54 = vrot.slane %v6147_v52, %v7993_v35  ;;  %v3112_v47 = vrot.slane %v8838_v51, %v7974_v26  ;;  %v3116_v49 = vrot.slane %v8838_v51, %v7977_v28 }
 0x34d   :  { %v5802_v6 = vcombine.low %v5794_v56, %v5801_v20  ;;  %v6170_v11 = vrot.slane %v6148_v41, %v7993_v35  ;;  %v6177_v16 = vrot.slane %v6149_v43, %v7993_v35  ;;  %v3120_v44 = vrot.slane %v8838_v51, %v7980_v29 }
 0x34e   :  { %v6178_v0 = vcombine.low %v6156_v45, %v6163_v54  ;;  %v3124_v60 = vrot.slane %v8838_v51, %v7983_v30  ;;  %v3128_v53 = vrot.slane %v8838_v51, %v7986_v31  ;;  %v3132_v3 = vrot.slane %v8838_v51, %v7990_v33 }
 0x34f   :  { %v9046_v40 = vadd.f32 %v7965_v23, %v8884_v59  ;;  %6821 = vperm.xlu1 %7541, %v5802_v6   ;;  %v6179_v5 = vcombine.low %v6170_v11, %v6177_v16  ;;  %v5999_v7 = vcombine.low %v3104_v36, %v3108_v1  ;;  %v6000_v18 = vcombine.low %v3112_v47, %v3116_v49  ;;  %v9079_v6 = vpop.permute.xlu1 %6704 }
 0x350   :  { %v6186_v13 = vrot.slane %v6178_v0, %v7993_v35  ;;  %v6001_v4 = vcombine.low %v3120_v44, %v3124_v60  ;;  %v6002_v42 = vcombine.low %v3128_v53, %v3132_v3  ;;  %v3040_v37 = vrot.slane %v8882_v46, %v7968_v38 }
 0x351   :  { %v6193_v10 = vrot.slane %v6179_v5, %v7993_v35  ;;  %v6009_v51 = vrot.slane %v5999_v7, %v7993_v35  ;;  %v6016_v59 = vrot.slane %v6000_v18, %v7993_v35  ;;  %v3044_v48 = vrot.slane %v8882_v46, %v7971_v25 }
 0x352   :  { %v6023_v12 = vrot.slane %v6001_v4, %v7993_v35  ;;  %v6030_v15 = vrot.slane %v6002_v42, %v7993_v35  ;;  %v3048_v50 = vrot.slane %v8882_v46, %v7974_v26  ;;  %v3052_v8 = vrot.slane %v8882_v46, %v7977_v28 }
 0x353   :  { %v6194_v21 = vcombine.low %v6186_v13, %v6193_v10  ;;  %v6031_v57 = vcombine.low %v6009_v51, %v6016_v59  ;;  %v3056_v17 = vrot.slane %v8882_v46, %v7980_v29  ;;  %v3060_v55 = vrot.slane %v8882_v46, %v7983_v30 }
 0x354   :  { %v6032_v56 = vcombine.low %v6023_v12, %v6030_v15  ;;  %v3064_v14 = vrot.slane %v8882_v46, %v7986_v31  ;;  %v3068_v52 = vrot.slane %v8882_v46, %v7990_v33  ;;  %v5901_v36 = vcombine.low %v3040_v37, %v3044_v48 }
 0x355   :  { %6845 = vperm.xlu0 %7542, %v6194_v21   ;;  %v6039_v20 = vrot.slane %v6031_v57, %v7993_v35  ;;  %v5902_v41 = vcombine.low %v3048_v50, %v3052_v8  ;;  %v5903_v43 = vcombine.low %v3056_v17, %v3060_v55  ;;  %v3360_v1 = vrot.slane %v8996_v39, %v7968_v38  ;;  %v9107_v21 = vpop.permute.xlu1 %6698  ;;  %v1347_v57 = vpop.xlane.xlu0 %1346 }
 0x356   :  { %v6046_v45 = vrot.slane %v6032_v56, %v7993_v35  ;;  %v5904_v54 = vcombine.low %v3064_v14, %v3068_v52  ;;  %v5911_v47 = vrot.slane %v5901_v36, %v7993_v35  ;;  %v3364_v49 = vrot.slane %v8996_v39, %v7971_v25 }
 0x357   :  { %v5918_v46 = vrot.slane %v5902_v41, %v7993_v35  ;;  %v5925_v11 = vrot.slane %v5903_v43, %v7993_v35  ;;  %v3368_v16 = vrot.slane %v8996_v39, %v7974_v26  ;;  %v3372_v44 = vrot.slane %v8996_v39, %v7977_v28 }
 0x358   :  { %v6047_v0 = vcombine.low %v6039_v20, %v6046_v45  ;;  %v5932_v60 = vrot.slane %v5904_v54, %v7993_v35  ;;  %v3376_v53 = vrot.slane %v8996_v39, %v7980_v29  ;;  %v3380_v3 = vrot.slane %v8996_v39, %v7983_v30 }
 0x359   :  { %v5933_v5 = vcombine.low %v5911_v47, %v5918_v46  ;;  %v3384_v7 = vrot.slane %v8996_v39, %v7986_v31  ;;  %v3388_v18 = vrot.slane %v8996_v39, %v7990_v33  ;;  %v6391_v13 = vcombine.low %v3360_v1, %v3364_v49 }
 0x35a   :  { %6836 = vperm.xlu1 %7541, %v6047_v0   ;;  %v5934_v4 = vcombine.low %v5925_v11, %v5932_v60  ;;  %v6392_v42 = vcombine.low %v3368_v16, %v3372_v44  ;;  %v6393_v37 = vcombine.low %v3376_v53, %v3380_v3  ;;  %v3232_v10 = vrot.slane %v8936_v58, %v7968_v38 }
 0x35b   :  { %v5941_v51 = vrot.slane %v5933_v5, %v7993_v35  ;;  %v6394_v59 = vcombine.low %v3384_v7, %v3388_v18  ;;  %v6401_v48 = vrot.slane %v6391_v13, %v7993_v35  ;;  %v3236_v12 = vrot.slane %v8936_v58, %v7971_v25  ;;  %v9136_v7 = vpop.permute.xlu1 %6707  ;;  %v9138_v18 = vpop.xlane.xlu0 %1364 }
 0x35c   :  { %v5948_v15 = vrot.slane %v5934_v4, %v7993_v35  ;;  %v6408_v39 = vrot.slane %v6392_v42, %v7993_v35  ;;  %v6415_v50 = vrot.slane %v6393_v37, %v7993_v35  ;;  %v3240_v8 = vrot.slane %v8936_v58, %v7974_v26 }
 0x35d   :  { %v6422_v17 = vrot.slane %v6394_v59, %v7993_v35  ;;  %v3244_v55 = vrot.slane %v8936_v58, %v7977_v28  ;;  %v3248_v56 = vrot.slane %v8936_v58, %v7980_v29  ;;  %v3252_v14 = vrot.slane %v8936_v58, %v7983_v30 }
 0x35e   :  { %v5949_v52 = vcombine.low %v5941_v51, %v5948_v15  ;;  %v6423_v36 = vcombine.low %v6401_v48, %v6408_v39  ;;  %v3256_v20 = vrot.slane %v8936_v58, %v7986_v31  ;;  %v3260_v41 = vrot.slane %v8936_v58, %v7990_v33 }
 0x35f   :  { %v6424_v43 = vcombine.low %v6415_v50, %v6422_v17  ;;  %v6195_v1 = vcombine.low %v3232_v10, %v3236_v12  ;;  %v6196_v45 = vcombine.low %v3240_v8, %v3244_v55  ;;  %v6197_v54 = vcombine.low %v3248_v56, %v3252_v14 }
 0x360   :  { %6830 = vperm.xlu1 %7541, %v5949_v52   ;;  %v6431_v47 = vrot.slane %v6423_v36, %v7993_v35  ;;  %v6198_v49 = vcombine.low %v3256_v20, %v3260_v41  ;;  %v3392_v46 = vrot.slane %v9046_v40, %v7968_v38  ;;  %v3396_v11 = vrot.slane %v9046_v40, %v7971_v25 }
 0x361   :  { %v6438_v16 = vrot.slane %v6424_v43, %v7993_v35  ;;  %v6205_v44 = vrot.slane %v6195_v1, %v7993_v35  ;;  %v6212_v58 = vrot.slane %v6196_v45, %v7993_v35  ;;  %v6219_v0 = vrot.slane %v6197_v54, %v7993_v35  ;;  %v9162_v1 = vpop.permute.xlu1 %6701  ;;  %v9164_v45 = vpop.xlane.xlu0 %1358 }
 0x362   :  { %v6226_v60 = vrot.slane %v6198_v49, %v7993_v35  ;;  %v3400_v53 = vrot.slane %v9046_v40, %v7974_v26  ;;  %v3404_v3 = vrot.slane %v9046_v40, %v7977_v28  ;;  %v3408_v5 = vrot.slane %v9046_v40, %v7980_v29 }
 0x363   :  { %v6439_v13 = vcombine.low %v6431_v47, %v6438_v16  ;;  %v6227_v4 = vcombine.low %v6205_v44, %v6212_v58  ;;  %v3412_v42 = vrot.slane %v9046_v40, %v7983_v30  ;;  %v3416_v37 = vrot.slane %v9046_v40, %v7986_v31 }
 0x364   :  { %v6228_v10 = vcombine.low %v6219_v0, %v6226_v60  ;;  %v3420_v51 = vrot.slane %v9046_v40, %v7990_v33  ;;  %v6440_v59 = vcombine.low %v3392_v46, %v3396_v11  ;;  %v6441_v48 = vcombine.low %v3400_v53, %v3404_v3 }
 0x365   :  { %6860 = vperm.xlu0 %7542, %v6439_v13   ;;  %v6235_v12 = vrot.slane %v6227_v4, %v7993_v35  ;;  %v6442_v15 = vcombine.low %v3408_v5, %v3412_v42  ;;  %v3168_v39 = vrot.slane %v8991_v61, %v7968_v38  ;;  %v1428_v56 = vadd.f32 %v7965_v23, %v8914_v27 }
 0x366   :  { %v6242_v50 = vrot.slane %v6228_v10, %v7993_v35  ;;  %v6443_v8 = vcombine.low %v3416_v37, %v3420_v51  ;;  %v6450_v17 = vrot.slane %v6440_v59, %v7993_v35  ;;  %v6457_v55 = vrot.slane %v6441_v48, %v7993_v35 }
 0x367   :  { %v6464_v40 = vrot.slane %v6442_v15, %v7993_v35  ;;  %v3172_v14 = vrot.slane %v8991_v61, %v7971_v25  ;;  %v3176_v52 = vrot.slane %v8991_v61, %v7974_v26  ;;  %v3180_v43 = vrot.slane %v8991_v61, %v7977_v28 }
 0x368   :  { %v6243_v36 = vcombine.low %v6235_v12, %v6242_v50  ;;  %v6471_v20 = vrot.slane %v6443_v8, %v7993_v35  ;;  %v6472_v41 = vcombine.low %v6450_v17, %v6457_v55  ;;  %v3184_v27 = vrot.slane %v8991_v61, %v7980_v29  ;;  %v9189_v12 = vpop.permute.xlu1 %6716 }
 0x369   :  { %v3188_v54 = vrot.slane %v8991_v61, %v7983_v30  ;;  %v3192_v47 = vrot.slane %v8991_v61, %v7986_v31  ;;  %v3196_v11 = vrot.slane %v8991_v61, %v7990_v33  ;;  %v6097_v16 = vcombine.low %v3168_v39, %v3172_v14 }
 0x36a   :  { %6848 = vperm.xlu1 %7541, %v6243_v36   ;;  %v6473_v49 = vcombine.low %v6464_v40, %v6471_v20  ;;  %v6480_v46 = vrot.slane %v6472_v41, %v7993_v35  ;;  %v1427_v44 = vadd.f32 %v7965_v23, %v1347_v57  ;;  %v6098_v58 = vcombine.low %v3176_v52, %v3180_v43  ;;  %v9184_v57 = vpop.permute.xlu0 %6686 }
 0x36b   :  { %v6099_v0 = vcombine.low %v3184_v27, %v3188_v54  ;;  %v3328_v60 = vrot.slane %v1428_v56, %v7968_v38  ;;  %v6100_v3 = vcombine.low %v3192_v47, %v3196_v11  ;;  %v6107_v5 = vrot.slane %v6097_v16, %v7993_v35 }
 0x36c   :  { %v6487_v53 = vrot.slane %v6473_v49, %v7993_v35  ;;  %v3332_v13 = vrot.slane %v1428_v56, %v7971_v25  ;;  %v6114_v4 = vrot.slane %v6098_v58, %v7993_v35  ;;  %v3336_v61 = vrot.slane %v1428_v56, %v7974_v26 }
 0x36d   :  { %v6121_v42 = vrot.slane %v6099_v0, %v7993_v35  ;;  %v3340_v37 = vrot.slane %v1428_v56, %v7977_v28  ;;  %v6128_v51 = vrot.slane %v6100_v3, %v7993_v35  ;;  %v3344_v59 = vrot.slane %v1428_v56, %v7980_v29  ;;  %v9207_v0 = vpop.permute.xlu1 %6710 }
 0x36e   :  { %v6488_v10 = vcombine.low %v6480_v46, %v6487_v53  ;;  %v3348_v48 = vrot.slane %v1428_v56, %v7983_v30  ;;  %v6129_v15 = vcombine.low %v6107_v5, %v6114_v4  ;;  %v3352_v39 = vrot.slane %v1428_v56, %v7986_v31  ;;  %v9195_v20 = vpop.permute.xlu0 %6719 }
 0x36f   :  { %v3356_v50 = vrot.slane %v1428_v56, %v7990_v33  ;;  %v6342_v8 = vcombine.low %v3328_v60, %v3332_v13  ;;  %v6130_v17 = vcombine.low %v6121_v42, %v6128_v51  ;;  %v6343_v55 = vcombine.low %v3336_v61, %v3340_v37 }
 0x370   :  { %6863 = vperm.xlu0 %7542, %v6488_v10   ;;  %v6344_v40 = vcombine.low %v3344_v59, %v3348_v48  ;;  %v6137_v14 = vrot.slane %v6129_v15, %v7993_v35  ;;  %v1433_v56 = vadd.f32 %v7965_v23, %v9138_v18  ;;  %v3296_v47 = vrot.slane %v1427_v44, %v7968_v38 }
 0x371   :  { %v6345_v52 = vcombine.low %v3352_v39, %v3356_v50  ;;  %v6352_v36 = vrot.slane %v6342_v8, %v7993_v35  ;;  %v6144_v41 = vrot.slane %v6130_v17, %v7993_v35  ;;  %v6359_v43 = vrot.slane %v6343_v55, %v7993_v35 }
 0x372   :  { %v6366_v27 = vrot.slane %v6344_v40, %v7993_v35  ;;  %v3300_v49 = vrot.slane %v1427_v44, %v7971_v25  ;;  %v3304_v16 = vrot.slane %v1427_v44, %v7974_v26  ;;  %v3308_v58 = vrot.slane %v1427_v44, %v7977_v28  ;;  %v9220_v51 = vpop.permute.xlu0 %6713 }
 0x373   :  { %v6373_v54 = vrot.slane %v6345_v52, %v7993_v35  ;;  %v6145_v46 = vcombine.low %v6137_v14, %v6144_v41  ;;  %v6374_v11 = vcombine.low %v6352_v36, %v6359_v43  ;;  %v9211_v60 = vadd.f32 %v7965_v23, %v8761_v24  ;;  %v9232_v36 = vpop.permute.xlu1 %6728 }
 0x374   :  { %v3312_v18 = vrot.slane %v1427_v44, %v7980_v29  ;;  %v3316_v3 = vrot.slane %v1427_v44, %v7983_v30  ;;  %v3320_v13 = vrot.slane %v1427_v44, %v7986_v31  ;;  %v3324_v4 = vrot.slane %v1427_v44, %v7990_v33 }
 0x375   :  { %v6375_v53 = vcombine.low %v6366_v27, %v6373_v54  ;;  %6842 = vperm.xlu1 %7541, %v6145_v46   ;;  %v6382_v5 = vrot.slane %v6374_v11, %v7993_v35  ;;  %v6293_v42 = vcombine.low %v3296_v47, %v3300_v49  ;;  %v6294_v37 = vcombine.low %v3304_v16, %v3308_v58 }
 0x376   :  { %v6295_v10 = vcombine.low %v3312_v18, %v3316_v3  ;;  %v3488_v24 = vrot.slane %v1433_v56, %v7968_v38  ;;  %v6296_v59 = vcombine.low %v3320_v13, %v3324_v4  ;;  %v3492_v15 = vrot.slane %v1433_v56, %v7971_v25 }
 0x377   :  { %v6389_v61 = vrot.slane %v6375_v53, %v7993_v35  ;;  %v6303_v48 = vrot.slane %v6293_v42, %v7993_v35  ;;  %v3496_v39 = vrot.slane %v1433_v56, %v7974_v26  ;;  %v6310_v8 = vrot.slane %v6294_v37, %v7993_v35  ;;  %v9238_v53 = vpop.permute.xlu0 %6731 }
 0x378   :  { %v6317_v44 = vrot.slane %v6295_v10, %v7993_v35  ;;  %v3500_v17 = vrot.slane %v1433_v56, %v7977_v28  ;;  %v6324_v55 = vrot.slane %v6296_v59, %v7993_v35  ;;  %v3504_v40 = vrot.slane %v1433_v56, %v7980_v29 }
 0x379   :  { %v6390_v50 = vcombine.low %v6382_v5, %v6389_v61  ;;  %v3508_v14 = vrot.slane %v1433_v56, %v7983_v30  ;;  %v3512_v52 = vrot.slane %v1433_v56, %v7986_v31  ;;  %v6325_v41 = vcombine.low %v6303_v48, %v6310_v8 }
 0x37a   :  { %v3516_v43 = vrot.slane %v1433_v56, %v7990_v33  ;;  %v6587_v27 = vcombine.low %v3488_v24, %v3492_v15  ;;  %v6588_v54 = vcombine.low %v3496_v39, %v3500_v17  ;;  %v6326_v47 = vcombine.low %v6317_v44, %v6324_v55  ;;  %v9253_v24 = vpop.permute.xlu1 %6722 }
 0x37b   :  { %6857 = vperm.xlu0 %7542, %v6390_v50   ;;  %v6589_v49 = vcombine.low %v3504_v40, %v3508_v14  ;;  %v6333_v46 = vrot.slane %v6325_v41, %v7993_v35  ;;  %v2976_v13 = vrot.slane %v9211_v60, %v7968_v38  ;;  %v2980_v4 = vrot.slane %v9211_v60, %v7971_v25  ;;  %v9267_v14 = vpop.permute.xlu0 %6725 }
 0x37c   :  { %v6590_v11 = vcombine.low %v3512_v52, %v3516_v43  ;;  %v6597_v16 = vrot.slane %v6587_v27, %v7993_v35  ;;  %v6604_v58 = vrot.slane %v6588_v54, %v7993_v35  ;;  %v6340_v18 = vrot.slane %v6326_v47, %v7993_v35 }
 0x37d   :  { %v6611_v3 = vrot.slane %v6589_v49, %v7993_v35  ;;  %v1431_v42 = vadd.f32 %v7965_v23, %v9164_v45  ;;  %v2984_v37 = vrot.slane %v9211_v60, %v7974_v26  ;;  %v2988_v10 = vrot.slane %v9211_v60, %v7977_v28 }
 0x37e   :  { %v6618_v5 = vrot.slane %v6590_v11, %v7993_v35  ;;  %v6619_v56 = vcombine.low %v6597_v16, %v6604_v58  ;;  %v6341_v61 = vcombine.low %v6333_v46, %v6340_v18  ;;  %v2992_v15 = vrot.slane %v9211_v60, %v7980_v29  ;;  %v9279_v58 = vpop.permute.xlu1 %6740 }
 0x37f   :  { %v2996_v39 = vrot.slane %v9211_v60, %v7983_v30  ;;  %v3000_v45 = vrot.slane %v9211_v60, %v7986_v31  ;;  %v3004_v50 = vrot.slane %v9211_v60, %v7990_v33  ;;  %v5803_v8 = vcombine.low %v2976_v13, %v2980_v4 }
 0x380   :  { %v6620_v59 = vcombine.low %v6611_v3, %v6618_v5  ;;  %v6627_v48 = vrot.slane %v6619_v56, %v7993_v35  ;;  %6854 = vperm.xlu1 %7541, %v6341_v61   ;;  %v1418_v44 = vadd.f32 %v7965_v23, %v8730_v63  ;;  %v5804_v55 = vcombine.low %v2984_v37, %v2988_v10 }
 0x381   :  { %v5805_v40 = vcombine.low %v2992_v15, %v2996_v39  ;;  %v5806_v52 = vcombine.low %v3000_v45, %v3004_v50  ;;  %v5813_v41 = vrot.slane %v5803_v8, %v7993_v35  ;;  %v3424_v43 = vrot.slane %v1431_v42, %v7968_v38  ;;  %v9287_v15 = vpop.permute.xlu0 %6743 }
 0x382   :  { %v6634_v17 = vrot.slane %v6620_v59, %v7993_v35  ;;  %v3428_v27 = vrot.slane %v1431_v42, %v7971_v25  ;;  %v5820_v60 = vrot.slane %v5804_v55, %v7993_v35  ;;  %v3432_v63 = vrot.slane %v1431_v42, %v7974_v26 }
 0x383   :  { %v5827_v47 = vrot.slane %v5805_v40, %v7993_v35  ;;  %v5834_v49 = vrot.slane %v5806_v52, %v7993_v35  ;;  %v3436_v46 = vrot.slane %v1431_v42, %v7977_v28  ;;  %v3440_v11 = vrot.slane %v1431_v42, %v7980_v29 }
 0x384   :  { %v6635_v54 = vcombine.low %v6627_v48, %v6634_v17  ;;  %v3444_v16 = vrot.slane %v1431_v42, %v7983_v30  ;;  %v5835_v18 = vcombine.low %v5813_v41, %v5820_v60  ;;  %v3448_v3 = vrot.slane %v1431_v42, %v7986_v31 }
 0x385   :  { %v3452_v5 = vrot.slane %v1431_v42, %v7990_v33  ;;  %v6489_v56 = vcombine.low %v3424_v43, %v3428_v27  ;;  %v5836_v13 = vcombine.low %v5827_v47, %v5834_v49  ;;  %v6490_v4 = vcombine.low %v3432_v63, %v3436_v46  ;;  %v9298_v43 = vpop.permute.xlu1 %6734 }
 0x386   :  { %6872 = vperm.xlu0 %7542, %v6635_v54   ;;  %v6491_v61 = vcombine.low %v3440_v11, %v3444_v16  ;;  %v1432_v37 = vadd.f32 %v7965_v23, %v8972_v32  ;;  %v5843_v10 = vrot.slane %v5835_v18, %v7993_v35  ;;  %v3008_v50 = vrot.slane %v1418_v44, %v7968_v38 }
 0x387   :  { %v6492_v59 = vcombine.low %v3448_v3, %v3452_v5  ;;  %v6499_v48 = vrot.slane %v6489_v56, %v7993_v35  ;;  %v5850_v39 = vrot.slane %v5836_v13, %v7993_v35  ;;  %v6506_v45 = vrot.slane %v6490_v4, %v7993_v35  ;;  %v9307_v56 = vpop.permute.xlu0 %6737 }
 0x388   :  { %v6513_v42 = vrot.slane %v6491_v61, %v7993_v35  ;;  %v3012_v17 = vrot.slane %v1418_v44, %v7971_v25  ;;  %v3016_v32 = vrot.slane %v1418_v44, %v7974_v26  ;;  %v3020_v55 = vrot.slane %v1418_v44, %v7977_v28 }
 0x389   :  { %v6520_v8 = vrot.slane %v6492_v59, %v7993_v35  ;;  %v5851_v40 = vcombine.low %v5843_v10, %v5850_v39  ;;  %v6521_v52 = vcombine.low %v6499_v48, %v6506_v45  ;;  %v3024_v41 = vrot.slane %v1418_v44, %v7980_v29 }
 0x38a   :  { %v3028_v54 = vrot.slane %v1418_v44, %v7983_v30  ;;  %v3032_v60 = vrot.slane %v1418_v44, %v7986_v31  ;;  %v3036_v47 = vrot.slane %v1418_v44, %v7990_v33  ;;  %v5852_v49 = vcombine.low %v3008_v50, %v3012_v17  ;;  %v9319_v17 = vpop.permute.xlu1 %6752 }
 0x38b   :  { %v6522_v27 = vcombine.low %v6513_v42, %v6520_v8  ;;  %6824 = vperm.xlu1 %7541, %v5851_v40   ;;  %v6529_v63 = vrot.slane %v6521_v52, %v7993_v35  ;;  %v5853_v46 = vcombine.low %v3016_v32, %v3020_v55  ;;  %v3456_v11 = vrot.slane %v1432_v37, %v7968_v38 }
 0x38c   :  { %v5854_v18 = vcombine.low %v3024_v41, %v3028_v54  ;;  %v5855_v3 = vcombine.low %v3032_v60, %v3036_v47  ;;  %v3460_v5 = vrot.slane %v1432_v37, %v7971_v25  ;;  %v5862_v13 = vrot.slane %v5852_v49, %v7993_v35 }
 0x38d   :  { %v6536_v16 = vrot.slane %v6522_v27, %v7993_v35  ;;  %v5869_v4 = vrot.slane %v5853_v46, %v7993_v35  ;;  %v3464_v44 = vrot.slane %v1432_v37, %v7974_v26  ;;  %v3468_v61 = vrot.slane %v1432_v37, %v7977_v28 }
 0x38e   :  { %v5876_v59 = vrot.slane %v5854_v18, %v7993_v35  ;;  %v5883_v48 = vrot.slane %v5855_v3, %v7993_v35  ;;  %v3472_v39 = vrot.slane %v1432_v37, %v7980_v29  ;;  %v3476_v42 = vrot.slane %v1432_v37, %v7983_v30 }
 0x38f   :  { %v6537_v10 = vcombine.low %v6529_v63, %v6536_v16  ;;  %v5884_v45 = vcombine.low %v5862_v13, %v5869_v4  ;;  %v3480_v50 = vrot.slane %v1432_v37, %v7986_v31  ;;  %v3484_v8 = vrot.slane %v1432_v37, %v7990_v33  ;;  %v9327_v37 = vpop.permute.xlu0 %6755  ;;  %v9335_v13 = vpop.permute.xlu1 %6746 }
 0x390   :  { %v1434_v32 = vadd.f32 %v7965_v23, %v8943_v2  ;;  %v5885_v55 = vcombine.low %v5876_v59, %v5883_v48  ;;  %v6538_v40 = vcombine.low %v3456_v11, %v3460_v5  ;;  %v6539_v52 = vcombine.low %v3464_v44, %v3468_v61 }
 0x391   :  { %6866 = vperm.xlu0 %7542, %v6537_v10   ;;  %v5892_v41 = vrot.slane %v5884_v45, %v7993_v35  ;;  %v6540_v27 = vcombine.low %v3472_v39, %v3476_v42  ;;  %v6541_v54 = vcombine.low %v3480_v50, %v3484_v8 }
 0x392   :  { %v5899_v60 = vrot.slane %v5885_v55, %v7993_v35  ;;  %v6548_v47 = vrot.slane %v6538_v40, %v7993_v35  ;;  %v6555_v63 = vrot.slane %v6539_v52, %v7993_v35  ;;  %v3520_v11 = vrot.slane %v1434_v32, %v7968_v38 }
 0x393   :  { %v6562_v49 = vrot.slane %v6540_v27, %v7993_v35  ;;  %v6569_v23 = vrot.slane %v6541_v54, %v7993_v35  ;;  %v3524_v16 = vrot.slane %v1434_v32, %v7971_v25  ;;  %v3528_v3 = vrot.slane %v1434_v32, %v7974_v26  ;;  %v9343_v39 = vpop.permute.xlu0 %6749 }
 0x394   :  { %v5900_v2 = vcombine.low %v5892_v41, %v5899_v60  ;;  %v6570_v46 = vcombine.low %v6548_v47, %v6555_v63  ;;  %v3532_v5 = vrot.slane %v1434_v32, %v7977_v28  ;;  %v3536_v44 = vrot.slane %v1434_v32, %v7980_v29 }
 0x395   :  { %v6571_v18 = vcombine.low %v6562_v49, %v6569_v23  ;;  %v3540_v61 = vrot.slane %v1434_v32, %v7983_v30  ;;  %v3544_v10 = vrot.slane %v1434_v32, %v7986_v31  ;;  %v3548_v25 = vrot.slane %v1434_v32, %v7990_v33  ;;  %v9349_v31 = vpop.permute.xlu1 %6764 }
 0x396   :  { %6827 = vperm.xlu1 %7541, %v5900_v2   ;;  %v6578_v4 = vrot.slane %v6570_v46, %v7993_v35  ;;  %v6636_v59 = vcombine.low %v3520_v11, %v3524_v16  ;;  %v6637_v48 = vcombine.low %v3528_v3, %v3532_v5  ;;  %v9352_v33 = vand.u32 127, %v9621_v19 }
 0x397   :  { %v6585_v38 = vrot.slane %v6571_v18, %v7993_v35  ;;  %v6638_v26 = vcombine.low %v3536_v44, %v3540_v61  ;;  %v6639_v45 = vcombine.low %v3544_v10, %v3548_v25  ;;  %v9355_v40 = vpop.permute.xlu0 %6767 }
 0x398   :  { %v6646_v42 = vrot.slane %v6636_v59, %v7993_v35  ;;  %v6653_v50 = vrot.slane %v6637_v48, %v7993_v35  ;;  %v6890_v41 = vadd.s32 4294967280, %v9352_v33  ;;  %v6897_v27 = vadd.s32 4294967272, %v9352_v33 }
 0x399   :  { %v6586_v28 = vcombine.low %v6578_v4, %v6585_v38  ;;  %v6660_v29 = vrot.slane %v6638_v26, %v7993_v35  ;;  %v6667_v30 = vrot.slane %v6639_v45, %v7993_v35  ;;  %v6883_v54 = vadd.s32 4294967288, %v9352_v33  ;;  %v6759_v47 = vpop.permute.xlu1 %6758 }
 0x39a   :  { %v6668_v8 = vcombine.low %v6646_v42, %v6653_v50  ;;  %v6918_v63 = vadd.s32 4294967248, %v9352_v33  ;;  %v6904_v49 = vadd.s32 4294967264, %v9352_v33  ;;  %v9364_v23 = vsub.s32 %v6890_v41, %v7960_v22 }
 0x39b   :  { %6869 = vperm.xlu0 %7542, %v6586_v28   ;;  %v6669_v32 = vcombine.low %v6660_v29, %v6667_v30  ;;  %v9368_v2 = vsub.s32 %v9352_v33, %v7960_v22  ;;  %v9371_v46 = vsub.s32 %v6897_v27, %v7960_v22  ;;  %v6762_v11 = vpop.permute.xlu0 %6761  ;;  %v9374_v16 = vsub.s32 %v6883_v54, %v7960_v22 }
 0x39c   :  { %v6676_v55 = vrot.slane %v6668_v8, %v7993_v35  ;;  %v6925_v18 = vadd.s32 4294967240, %v9352_v33  ;;  %v6911_v3 = vadd.s32 4294967256, %v9352_v33  ;;  %v9379_v5 = vsub.s32 %v6918_v63, %v7960_v22 }
 0x39d   :  { %v6683_v52 = vrot.slane %v6669_v32, %v7993_v35  ;;  %v9382_v4 = vsub.s32 %v6904_v49, %v7960_v22  ;;  %v6932_v44 = vadd.s32 4294967232, %v9352_v33  ;;  %v6995_v61 = vrot.slane %v9307_v56, %v9374_v16  ;;  %v6777_v38 = vpop.permute.xlu1 %6776 }
 0x39e   :  { %v6991_v10 = vrot.slane %v9298_v43, %v9368_v2  ;;  %v6953_v25 = vadd.s32 4294967208, %v9352_v33  ;;  %v6939_v59 = vadd.s32 4294967224, %v9352_v33  ;;  %v7000_v48 = vrot.slane %v9279_v58, %v9364_v23 }
 0x39f   :  { %v6684_v60 = vcombine.low %v6676_v55, %v6683_v52  ;;  %v7010_v26 = vrot.slane %v9335_v13, %v9382_v4  ;;  %v9396_v28 = vsub.s32 %v6925_v18, %v7960_v22  ;;  %v9399_v45 = vsub.s32 %v6911_v3, %v7960_v22  ;;  %v9410_v29 = vpop.permute.xlu0 %6779 }
 0x3a0   :  { %v7005_v43 = vrot.slane %v9287_v15, %v9371_v46  ;;  %v6996_v56 = vsel %vm6888_vm1, %v6995_v61, %v6991_v10  ;;  %v6946_v42 = vadd.s32 4294967216, %v9352_v33  ;;  %v9406_v50 = vsub.s32 %v6932_v44, %v7960_v22  ;;  %9625 = vst [vmem:[#allocation7_spill] sm:$0xff] %v9410_v29 }
 0x3a1   :  { %6875 = vperm.xlu0 %7542, %v6684_v60   ;;  %v6960_v58 = vadd.s32 4294967200, %v9352_v33  ;;  %v7001_v13 = vsel %vm6895_vm2, %v7000_v48, %v6996_v56  ;;  %v7015_v30 = vrot.slane %v9343_v39, %v9399_v45  ;;  %v9416_v8 = vsub.s32 %v6939_v59, %v7960_v22  ;;  %v6771_v54 = vpop.permute.xlu1 %6770 }
 0x3a2   :  { %v7006_v15 = vsel %vm6902_vm3, %v7005_v43, %v7001_v13  ;;  %v7020_v32 = vrot.slane %v9319_v17, %v9379_v5  ;;  %v7030_v52 = vrot.slane %v6759_v47, %v9406_v50  ;;  %v6967_v41 = vadd.s32 4294967192, %v9352_v33 }
 0x3a3   :  { %v7011_v55 = vsel %vm6909_vm4, %v7010_v26, %v7006_v15  ;;  %v7025_v27 = vrot.slane %v9327_v37, %v9396_v28  ;;  %v9427_v60 = vsub.s32 %v6946_v42, %v7960_v22  ;;  %v6974_v63 = vadd.s32 4294967184, %v9352_v33  ;;  %v6774_v61 = vpop.permute.xlu0 %6773 }
 0x3a4   :  { %v7016_v39 = vsel %vm6916_vm5, %v7015_v30, %v7011_v55  ;;  %v9431_v17 = vsub.s32 %v6960_v58, %v7960_v22  ;;  %v9435_v47 = vsub.s32 %v6953_v25, %v7960_v22  ;;  %v7035_v18 = vrot.slane %v6762_v11, %v9416_v8 }
 0x3a5   :  { %v7021_v49 = vsel %vm6923_vm6, %v7020_v32, %v7016_v39  ;;  %v7040_v3 = vrot.slane %v9349_v31, %v9427_v60  ;;  %v9444_v59 = vsub.s32 %v6967_v41, %v7960_v22  ;;  %v9450_v48 = vsub.s32 %v6974_v63, %v7960_v22  ;;  %v6789_v58 = vpop.permute.xlu1 %6788 }
 0x3a6   :  { %v7026_v37 = vsel %vm6930_vm7, %v7025_v27, %v7021_v49  ;;  %v7050_v10 = vrot.slane %v6771_v54, %v9431_v17  ;;  %v7045_v25 = vrot.slane %v9355_v40, %v9435_v47 }
 0x3a7   :  { %v7031_v44 = vsel %vm6937_vm8, %v7030_v52, %v7026_v37  ;;  %v7055_v26 = vrot.slane %v6774_v61, %v9444_v59  ;;  %v7060_v56 = vrot.slane %v6777_v38, %v9450_v48  ;;  %v6792_v32 = vpop.permute.xlu0 %6791 }
 0x3a8   :  { %v7036_v11 = vsel %vm6944_vm9, %v7035_v18, %v7031_v44 }
 0x3a9   :  { %v7041_v31 = vsel %vm6951_vm10, %v7040_v3, %v7036_v11  ;;  %v6783_v30 = vpop.permute.xlu1 %6782 }
 0x3aa   :  { %v7046_v43 = vsel %vm6958_vm11, %v7045_v25, %v7041_v31 }
 0x3ab   :  { %v7051_v42 = vsel %vm6965_vm12, %v7050_v10, %v7046_v43  ;;  %v6786_v52 = vpop.permute.xlu0 %6785 }
 0x3ac   :  { %v7056_v40 = vsel %vm6972_vm13, %v7055_v26, %v7051_v42  ;;  %v6887_v26 = vrot.slane %v9051_v9, %v9374_v16  ;;  %v7070_v9 = vrot.slane %v6783_v30, %v9368_v2 }
 0x3ad   :  { %v9459_v13 = vsel %vm6979_vm14, %v7060_v56, %v7056_v40  ;;  %v9461_v15 = vpop.permute.xlu1 %6800  ;;  %v6882_v56 = vrot.slane %v9184_v57, %v9368_v2  ;;  %v6908_v57 = vrot.slane %v9107_v21, %v9382_v4 }
 0x3ae   :  { %9626 = vst [vmem:[#allocation8_spill] sm:$0xff] %v9459_v13  ;;  %v6894_v13 = vrot.slane %v8993_v62, %v9364_v23  ;;  %v6915_v62 = vrot.slane %v9162_v1, %v9399_v45 }
 0x3af   :  { %v9465_v27 = vpop.permute.xlu0 %6803  ;;  %v6889_v40 = vsel %vm6888_vm1, %v6887_v26, %v6882_v56 }
 0x3b1   :  { %v6795_v55 = vpop.permute.xlu1 %6794 }
 0x3b3   :  { %v9469_v39 = vpop.permute.xlu0 %6797 }
 0x3b5   :  { %v9463_v41 = vpop.permute.xlu1 %6812 }
 0x3b7   :  { %v9473_v63 = vpop.permute.xlu0 %6809 }
 0x3b9   :  { %v9467_v38 = vpop.permute.xlu1 %6806 }
 0x3bb   :  { %v6840_v18 = vpop.permute.xlu0 %6839 }
 0x3bc   :  { %v7163_v56 = vrot.slane %v6840_v18, %v9371_v46  ;;  %v7089_v18 = vrot.slane %v6795_v55, %v9382_v4  ;;  %v7094_v55 = vrot.slane %v9469_v39, %v9399_v45 }
 0x3bd   :  { %v9471_v54 = vpop.permute.xlu1 %6815 }
 0x3bf   :  { %v6834_v3 = vpop.permute.xlu0 %6833 }
 0x3c0   :  { %v7153_v42 = vrot.slane %v6834_v3, %v9374_v16 }
 0x3c1   :  { %v9475_v49 = vpop.permute.xlu1 %6818 }
 0x3c5   :  { %v6852_v61 = vpop.permute.xlu0 %6851 }
 0x3ca   :  { %v9477_v37 = vpop.permute.xlu1 %6821 }
 0x3cb   :  { %9627 = vst [vmem:[#allocation9_spill] sm:$0xff] %v9477_v37 }
 0x3d0   :  { %v6846_v25 = vpop.permute.xlu0 %6845 }
 0x3d1   :  { %v7173_v1 = vrot.slane %v6846_v25, %v9399_v45  ;;  %v6929_v25 = vrot.slane %v9136_v7, %v9396_v28  ;;  %v6950_v45 = vrot.slane %v9189_v12, %v9427_v60  ;;  %v6957_v12 = vrot.slane %v9195_v20, %v9435_v47 }
 0x3d5   :  { %v6837_v44 = vpop.permute.xlu1 %6836 }
 0x3d6   :  { %v7158_v37 = vrot.slane %v6837_v44, %v9364_v23  ;;  %v7074_v44 = vrot.slane %v6786_v52, %v9374_v16  ;;  %v6922_v16 = vrot.slane %v9079_v6, %v9379_v5 }
 0x3db   :  { %v6831_v10 = vpop.permute.xlu1 %6830 }
 0x3dc   :  { %v7149_v43 = vrot.slane %v6831_v10, %v9368_v2  ;;  %v6896_v10 = vsel %vm6895_vm2, %v6894_v13, %v6889_v40  ;;  %v7075_v13 = vsel %vm6888_vm1, %v7074_v44, %v7070_v9 }
 0x3de   :  { %v7154_v19 = vsel %vm6888_vm1, %v7153_v42, %v7149_v43  ;;  %v6901_v43 = vrot.slane %v9023_v34, %v9371_v46  ;;  %v7084_v42 = vrot.slane %v6792_v32, %v9371_v46 }
 0x3df   :  { %v7159_v3 = vsel %vm6895_vm2, %v7158_v37, %v7154_v19 }
 0x3e0   :  { %v9479_v31 = vpop.permute.xlu0 %6860  ;;  %v6903_v2 = vsel %vm6902_vm3, %v6901_v43, %v6896_v10  ;;  %v7164_v21 = vsel %vm6902_vm3, %v7163_v56, %v7159_v3  ;;  %v6943_v3 = vrot.slane %v9220_v51, %v9416_v8 }
 0x3e1   :  { %v6910_v19 = vsel %vm6909_vm4, %v6908_v57, %v6903_v2  ;;  %v7104_v2 = vrot.slane %v9465_v27, %v9396_v28 }
 0x3e2   :  { %v6917_v37 = vsel %vm6916_vm5, %v6915_v62, %v6910_v19  ;;  %v7099_v62 = vrot.slane %v9461_v15, %v9379_v5  ;;  %v6964_v15 = vrot.slane %v9253_v24, %v9431_v17  ;;  %v7114_v24 = vrot.slane %v9473_v63, %v9416_v8 }
 0x3e5   :  { %v6849_v11 = vpop.permute.xlu1 %6848 }
 0x3e6   :  { %v7178_v9 = vrot.slane %v6849_v11, %v9379_v5 }
 0x3eb   :  { %v9492_v29 = vpop.permute.xlu0 %6863 }
 0x3f0   :  { %v6843_v35 = vpop.permute.xlu1 %6842 }
 0x3f1   :  { %v7168_v26 = vrot.slane %v6843_v35, %v9382_v4  ;;  %v7079_v35 = vrot.slane %v6789_v58, %v9364_v23  ;;  %v6924_v23 = vsel %vm6923_vm6, %v6922_v16, %v6917_v37  ;;  %v6936_v58 = vrot.slane %v9207_v0, %v9406_v50 }
 0x3f2   :  { %v6931_v32 = vsel %vm6930_vm7, %v6929_v25, %v6924_v23  ;;  %v7183_v0 = vrot.slane %v6852_v61, %v9396_v28  ;;  %v7109_v61 = vrot.slane %v9467_v38, %v9406_v50  ;;  %v7198_v28 = vrot.slane %v9479_v31, %v9427_v60 }
 0x3f3   :  { %v7169_v30 = vsel %vm6909_vm4, %v7168_v26, %v7164_v21  ;;  %v7080_v52 = vsel %vm6895_vm2, %v7079_v35, %v7075_v13  ;;  %v6938_v11 = vsel %vm6937_vm8, %v6936_v58, %v6931_v32  ;;  %v6981_v21 = vadd.s32 4294967176, %v9352_v33  ;;  %v9629_v58 = vld [vmem:[#allocation9_spill] sm:$0xff] }
 0x3f4   :  { %v7174_v40 = vsel %vm6916_vm5, %v7173_v1, %v7169_v30  ;;  %v7085_v6 = vsel %vm6902_vm3, %v7084_v42, %v7080_v52  ;;  %v6945_v44 = vsel %vm6944_vm9, %v6943_v3, %v6938_v11  ;;  %v6971_v37 = vrot.slane %v9267_v14, %v9444_v59 }
 0x3f5   :  { %v7090_v57 = vsel %vm6909_vm4, %v7089_v18, %v7085_v6  ;;  %v7179_v4 = vsel %vm6923_vm6, %v7178_v9, %v7174_v40  ;;  %v6952_v5 = vsel %vm6951_vm10, %v6950_v45, %v6945_v44  ;;  %v7203_v31 = vrot.slane %v9492_v29, %v9435_v47  ;;  %v9628_v40 = vld [vmem:[#allocation7_spill] sm:$0xff]  ;;  %v9630_v6 = vld [vmem:[#allocation8_spill] sm:$0xff]  ;;  %v9631_v44 = vld [vmem:[#allocation6_spill] sm:$0xff] }
 0x3f6   :  { %v6858_v34 = vpop.permute.xlu0 %6857  ;;  %v7095_v26 = vsel %vm6916_vm5, %v7094_v55, %v7090_v57  ;;  %v7184_v43 = vsel %vm6930_vm7, %v7183_v0, %v7179_v4  ;;  %v6959_v35 = vsel %vm6958_vm11, %v6957_v12, %v6952_v5  ;;  %v7119_v16 = vrot.slane %v9463_v41, %v9427_v60 }
 0x3f7   :  { %v7100_v39 = vsel %vm6923_vm6, %v7099_v62, %v7095_v26  ;;  %v7193_v13 = vrot.slane %v6858_v34, %v9416_v8  ;;  %v6966_v30 = vsel %vm6965_vm12, %v6964_v15, %v6959_v35  ;;  %v6984_v34 = vsub.s32 %v6981_v21, %v7960_v22  ;;  %v1435_v62 = vld [vmem:[%s9615_s1] sm:$0xf] }
 0x3f8   :  { %v6973_v63 = vsel %vm6972_vm13, %v6971_v37, %v6966_v30  ;;  %v7124_v52 = vrot.slane %v9471_v54, %v9435_v47  ;;  %v6978_v14 = vrot.slane %v9232_v36, %v9450_v48  ;;  %v7129_v29 = vrot.slane %v9475_v49, %v9431_v17 }
 0x3f9   :  { %v6985_v41 = vrot.slane %v9238_v53, %v6984_v34  ;;  %v7065_v23 = vrot.slane %v9628_v40, %v6984_v34  ;;  %v7134_v47 = vrot.slane %v9629_v58, %v9444_v59  ;;  %vm1436_vm0 = vcmp.ne.s32.totalorder %v1435_v62, 0 }
 0x3fa   :  { %v6980_v54 = vsel %vm6979_vm14, %v6978_v14, %v6973_v63 }
 0x3fb   :  { %v6855_v10 = vpop.permute.xlu1 %6854  ;;  %v6987_v32 = vsel %vm6986_vm15, %v6985_v41, %v6980_v54 }
 0x3fc   :  { %v7188_v7 = vrot.slane %v6855_v10, %v9406_v50  ;;  %v7105_v50 = vsel %vm6930_vm7, %v7104_v2, %v7100_v39  ;;  %v7066_v10 = vsel %vm6986_vm15, %v7065_v23, %v9630_v6  ;;  %v9632_v39 = vlaneseq }
 0x3fd   :  { %v7110_v19 = vsel %vm6937_vm8, %v7109_v61, %v7105_v50 }
 0x3fe   :  { %v7189_v56 = vsel %vm6937_vm8, %v7188_v7, %v7184_v43  ;;  %v7115_v1 = vsel %vm6944_vm9, %v7114_v24, %v7110_v19  ;;  %v7225_v7 = vcombine.low %v6987_v32, %v7066_v10  ;;  %vm7253_vm1 = vcmp.lt.s32.totalorder %v9632_v39, 512 }
 0x3ff   :  { %v7194_v38 = vsel %vm6944_vm9, %v7193_v13, %v7189_v56  ;;  %v7120_v42 = vsel %vm6951_vm10, %v7119_v16, %v7115_v1 }
 0x400   :  { %v7199_v20 = vsel %vm6951_vm10, %v7198_v28, %v7194_v38  ;;  %v7125_v36 = vsel %vm6958_vm11, %v7124_v52, %v7120_v42  ;;  %v7233_v45 = vrot.slane %v7225_v7, %v9631_v44 }
 0x401   :  { %v9529_v46 = vpop.permute.xlu0 %6872  ;;  %v7204_v22 = vsel %vm6958_vm11, %v7203_v31, %v7199_v20  ;;  %v7130_v53 = vsel %vm6965_vm12, %v7129_v29, %v7125_v36 }
 0x402   :  { %v7218_v57 = vrot.slane %v9529_v46, %v9450_v48  ;;  %v7135_v4 = vsel %vm6972_vm13, %v7134_v47, %v7130_v53 }
 0x406   :  { %v6825_v27 = vpop.permute.xlu1 %6824 }
 0x407   :  { %v7139_v9 = vrot.slane %v6825_v27, %v9450_v48 }
 0x409   :  { %v7140_v0 = vsel %vm6979_vm14, %v7139_v9, %v7135_v4 }
 0x40c   :  { %v6867_v51 = vpop.permute.xlu0 %6866 }
 0x40d   :  { %v7208_v8 = vrot.slane %v6867_v51, %v9431_v17 }
 0x40f   :  { %v7209_v25 = vsel %vm6965_vm12, %v7208_v8, %v7204_v22 }
 0x411   :  { %v6828_v60 = vpop.permute.xlu1 %6827 }
 0x412   :  { %v7144_v17 = vrot.slane %v6828_v60, %v6984_v34 }
 0x414   :  { %v7145_v3 = vsel %vm6986_vm15, %v7144_v17, %v7140_v0 }
 0x416   :  { %v6870_v33 = vpop.permute.xlu0 %6869 }
 0x417   :  { %v7213_v18 = vrot.slane %v6870_v33, %v9444_v59 }
 0x419   :  { %v7214_v49 = vsel %vm6972_vm13, %v7213_v18, %v7209_v25 }
 0x41a   :  { %v7219_v11 = vsel %vm6979_vm14, %v7218_v57, %v7214_v49 }
 0x41c   :  { %v6876_v59 = vpop.permute.xlu0 %6875 }
 0x41d   :  { %v7223_v55 = vrot.slane %v6876_v59, %v6984_v34 }
 0x41f   :  { %v7224_v26 = vsel %vm6986_vm15, %v7223_v55, %v7219_v11 }
 0x420   :  { %v7226_v43 = vcombine.low %v7145_v3, %v7224_v26 }
 0x422   :  { %v7240_v48 = vrot.slane %v7226_v43, %v9631_v44 }
 0x424   :  { %v7241_v46 = vcombine.low %v7233_v45, %v7240_v48 }
 0x426   :  { %v7248_v61 = vrot.slane %v7241_v46, %v9631_v44 }
 0x428   :  { %v7250_v56 = vsel %vm1436_vm0, %v7248_v61, -1e+10 }
 0x429   :  { %7255 = vst.msk [vmem:[%s9620_s6] sm:$0xf] %vm7253_vm1, %v7250_v56 }
 0x42a   :  { %7260 = vsyncpa [#allocation4], 1 }

</bundles_post_ra>
